<compile_context>
chip_gen: v6e
topology: v6e:2x2x1
jax: 0.10.0
libtpu: 0.0.40
codegen_flags: <defaults>
</compile_context>

<pallas_src>
import functools

import jax
import jax.numpy as jnp
from jax import lax
from jax.experimental import pallas as pl
from jax.experimental.pallas import tpu as pltpu


# ---------------------------------------------------------------------------
# Fused ResBlock kernel (one grid step = one row tile of one image)
# ---------------------------------------------------------------------------
def resblock_kernel(xm_ref, xh_ref, w1_ref, wd_ref, w2_ref,
                    b1_ref, bd_ref, b2_ref, o_ref, *, h_img):
    """out = bn2(conv2(ELU(bn1(conv1(x))))) + bn_d(conv_d(x)) for one row tile.

    xm_ref: (1, TH,  W+4, Cin)  bf16   main rows of the zero-padded input
    xh_ref: (1, 4,   W+4, Cin)  bf16   4 halo rows below the main block
    w*_ref: (9*Cin|9*Cout, Cout) bf16  taps folded into K, BN scale folded in
    b*_ref: (1, Cout) f32              folded BN shift (includes conv bias)
    o_ref : (1, TH, W, Cout) f32
    """
    _, th, w, cout = o_ref.shape
    cin = xm_ref.shape[-1]
    i = pl.program_id(1)

    # (TH+4, W+4, Cin) halo'd slab for this row tile (main block + 4 halo rows).
    x = jnp.concatenate([xm_ref[0], xh_ref[0]], axis=0)

    # --- stage 1: conv1 and the downsample conv share one in-VMEM im2col ------
    # A1[hy, hx, (ky*3+kx)*Cin : +Cin] = x[hy+ky, hx+kx, :]   -> K = 9*Cin,
    # so all tap accumulation happens inside the MXU (no per-tap VPU adds).
    taps = [x[ky:ky + th + 2, kx:kx + w + 2, :]
            for ky in range(3) for kx in range(3)]
    a1 = jnp.concatenate(taps, axis=-1)                       # (TH+2, W+2, 9*Cin)
    m1 = (th + 2) * (w + 2)

    h = jnp.dot(a1.reshape(m1, 9 * cin), w1_ref[...],
                preferred_element_type=jnp.float32) + b1_ref[...]
    h = jnp.where(h > 0.0, h, jnp.exp(jnp.minimum(h, 0.0)) - 1.0)   # ELU(alpha=1)
    h = h.reshape(th + 2, w + 2, cout)

    # Zero the halo positions that fall outside the image: they stand in for
    # conv2's zero padding.  Halo rows shared with neighbouring tiles keep the
    # recomputed h values (same math as the un-tiled conv).
    gr = i * th - 1 + lax.broadcasted_iota(jnp.int32, (th + 2, w + 2, 1), 0)
    gc = lax.broadcasted_iota(jnp.int32, (th + 2, w + 2, 1), 1) - 1
    valid = (gr >= 0) & (gr < h_img) & (gc >= 0) & (gc < w)
    hv = jnp.where(valid, h, 0.0).astype(jnp.bfloat16)         # h stays in VMEM

    # Downsample residual from the interior rows of the same im2col operand.
    rd = jnp.dot(a1[1:th + 1, 1:w + 1, :].reshape(th * w, 9 * cin), wd_ref[...],
                 preferred_element_type=jnp.float32) + bd_ref[...]

    # --- stage 2: conv2 over the bf16 h tile, again one K = 9*Cout matmul -----
    taps2 = [hv[ky:ky + th, kx:kx + w, :]
             for ky in range(3) for kx in range(3)]
    a2 = jnp.concatenate(taps2, axis=-1).reshape(th * w, 9 * cout)
    out = jnp.dot(a2, w2_ref[...], preferred_element_type=jnp.float32) + b2_ref[...]

    o_ref[0] = (out + rd).reshape(th, w, cout).astype(o_ref.dtype)


# ---------------------------------------------------------------------------
# Host-side glue: tile sizing, layout, BN folding (cheap, pure JAX / Python)
# ---------------------------------------------------------------------------
def _ceil_to(v, m):
    return ((v + m - 1) // m) * m


def _vmem_bytes(shape, itemsize):
    """Crude VMEM footprint estimate with (8, 128) padding of the minor dims."""
    s = list(shape)
    s[-1] = _ceil_to(s[-1], 128)
    if len(s) >= 2:
        s[-2] = _ceil_to(s[-2], 8)
    n = 1
    for d in s:
        n *= d
    return n * itemsize


def _estimate_step_vmem(th, w, cin, cout):
    m1, m = (th + 2) * (w + 2), th * w
    b = 0
    b += 2 * _vmem_bytes((th, w + 4, cin), 2)            # x main block (x2 bufs)
    b += 2 * _vmem_bytes((4, w + 4, cin), 2)             # x halo block
    b += 2 * (2 * _vmem_bytes((9 * cin, cout), 2)
              + _vmem_bytes((9 * cout, cout), 2))        # resident weights
    b += 2 * _vmem_bytes((th, w, cout), 4)               # out tile (x2 bufs)
    b += _vmem_bytes((m1, 9 * cin), 2)                   # im2col A1
    b += _vmem_bytes((m, 9 * cout), 2)                   # im2col A2
    b += _vmem_bytes((m1, cout), 4) + 2 * _vmem_bytes((m, cout), 4)  # f32 temps
    b += _vmem_bytes((m1, cout), 2)                      # bf16 h tile
    return b


def _choose_row_tile(h, w, cin, cout, target_elems=2048, budget_bytes=18 << 20):
    """Largest row tile TH (multiple of 4, prefers divisors of H) whose grid-step
    working set fits the byte budget; sized for v7x's 64 MiB VMEM."""
    cap = min(_ceil_to(h, 4), max(4, (target_elems // max(w, 1)) // 4 * 4))
    divisors, others = [], []
    for t in range(cap, 0, -4):
        (divisors if h % t == 0 else others).append(t)
    for t in divisors + others:
        if _estimate_step_vmem(t, w, cin, cout) <= budget_bytes:
            return t
    return 4


def _fold_bn(conv_bias, gamma, beta, mean, var, eps=1e-5):
    """bn(conv_nobias + bias) == conv_nobias @ (W * scale) + shift."""
    scale = gamma / jnp.sqrt(var + eps)
    shift = (conv_bias - mean) * scale + beta
    return scale, shift


def _fold_weight(w_oihw, scale):
    """(Cout,Cin,3,3) -> (9*Cin, Cout) bf16, K ordered (ky,kx,cin), BN scale folded."""
    co, ci, kh, kw = w_oihw.shape
    wt = jnp.transpose(w_oihw, (2, 3, 1, 0)).reshape(kh * kw * ci, co)
    return (wt * scale.reshape(1, co)).astype(jnp.bfloat16)


def resblock_forward(x_nchw, params):
    """Pallas ResBlock forward (downsample=True, pooling=False, eval mode)."""
    n, cin, h, w = x_nchw.shape
    cout = params["w1"].shape[0]
    th = _choose_row_tile(h, w, cin, cout)
    nrt = -(-h // th)
    hp = nrt * th                                      # row-padded height

    # NCHW -> NHWC in bf16 (cast first: halves the bytes moved by the relayout),
    # then zero-pad: 2 rows/cols of conv halo + rows up to a multiple of TH.
    x_nhwc = jnp.transpose(x_nchw.astype(jnp.bfloat16), (0, 2, 3, 1))
    x_pad = jnp.pad(x_nhwc, ((0, 0), (2, 2 + hp - h), (2, 2), (0, 0)))

    # Fold conv bias + eval-mode BN into (weight scale, shift).
    s1, b1 = _fold_bn(params["b1"], *params["bn1"])
    s2, b2 = _fold_bn(params["b2"], *params["bn2"])
    sd, bd = _fold_bn(params["bd"], *params["bnd"])
    w1 = _fold_weight(params["w1"], s1)                # (9*Cin,  Cout)
    w2 = _fold_weight(params["w2"], s2)                # (9*Cout, Cout)
    wd = _fold_weight(params["wd"], sd)                # (9*Cin,  Cout)
    b1p, bdp, b2p = (b.reshape(1, cout).astype(jnp.float32) for b in (b1, bd, b2))

    est = _estimate_step_vmem(th, w, cin, cout)
    vmem_limit = int(min(48 << 20, max(32 << 20, 3 * est)))

    kernel = functools.partial(resblock_kernel, h_img=h)
    out_pad = pl.pallas_call(
        kernel,
        out_shape=jax.ShapeDtypeStruct((n, hp, w, cout), jnp.float32),
        grid=(n, nrt),
        in_specs=[
            # main TH rows of this tile + the 4 halo rows below it (same array,
            # two plain Blocked specs -> no overlapping-copy materialised in HBM)
            pl.BlockSpec((1, th, w + 4, cin), lambda b, i: (b, i, 0, 0)),
            pl.BlockSpec((1, 4, w + 4, cin),
                         lambda b, i: (b, (i + 1) * (th // 4), 0, 0)),
            # grid-invariant weights / shifts stay resident in VMEM
            pl.BlockSpec((9 * cin, cout), lambda b, i: (0, 0)),
            pl.BlockSpec((9 * cin, cout), lambda b, i: (0, 0)),
            pl.BlockSpec((9 * cout, cout), lambda b, i: (0, 0)),
            pl.BlockSpec((1, cout), lambda b, i: (0, 0)),
            pl.BlockSpec((1, cout), lambda b, i: (0, 0)),
            pl.BlockSpec((1, cout), lambda b, i: (0, 0)),
        ],
        out_specs=pl.BlockSpec((1, th, w, cout), lambda b, i: (b, i, 0, 0)),
        compiler_params=pltpu.CompilerParams(
            dimension_semantics=("parallel", "parallel"),
            vmem_limit_bytes=vmem_limit),
    )(x_pad, x_pad, w1, wd, w2, b1p, bdp, b2p)

    out = out_pad[:, :h]
    # pooling=False -> no maxpool; Dropout in eval mode -> identity.
    return jnp.transpose(out, (0, 3, 1, 2))            # back to NCHW


# ---------------------------------------------------------------------------
# Pure-JAX reference (f32) for correctness check only
# ---------------------------------------------------------------------------
def _ref_conv(x, w, b):
    y = lax.conv_general_dilated(x, w, (1, 1), ((1, 1), (1, 1)),
                                 dimension_numbers=("NCHW", "OIHW", "NCHW"))
    return y + b[None, :, None, None]


def _ref_bn(y, bn, eps=1e-5):
    gamma, beta, mean, var = bn
    return ((y - mean[None, :, None, None]) / jnp.sqrt(var[None, :, None, None] + eps)
            * gamma[None, :, None, None] + beta[None, :, None, None])


def resblock_reference(x, p):
    out = _ref_bn(_ref_conv(x, p["w1"], p["b1"]), p["bn1"])
    out = jnp.where(out > 0.0, out, jnp.exp(jnp.minimum(out, 0.0)) - 1.0)  # ELU
    out = _ref_bn(_ref_conv(out, p["w2"], p["b2"]), p["bn2"])
    residual = _ref_bn(_ref_conv(x, p["wd"], p["bd"]), p["bnd"])
    return out + residual


# ---------------------------------------------------------------------------
def _make_params(key, cin, cout):
    ks = jax.random.split(key, 12)

    def bn(k):
        k1, k2, k3, k4 = jax.random.split(k, 4)
        gamma = 1.0 + 0.1 * jax.random.normal(k1, (cout,), jnp.float32)
        beta = 0.1 * jax.random.normal(k2, (cout,), jnp.float32)
        mean = 0.1 * jax.random.normal(k3, (cout,), jnp.float32)
        var = 0.5 + jnp.abs(jax.random.normal(k4, (cout,), jnp.float32))
        return (gamma, beta, mean, var)

    return {
        "w1": 0.1 * jax.random.normal(ks[0], (cout, cin, 3, 3), jnp.float32),
        "b1": 0.1 * jax.random.normal(ks[1], (cout,), jnp.float32),
        "bn1": bn(ks[2]),
        "w2": 0.1 * jax.random.normal(ks[3], (cout, cout, 3, 3), jnp.float32),
        "b2": 0.1 * jax.random.normal(ks[4], (cout,), jnp.float32),
        "bn2": bn(ks[5]),
        "wd": 0.1 * jax.random.normal(ks[6], (cout, cin, 3, 3), jnp.float32),
        "bd": 0.1 * jax.random.normal(ks[7], (cout,), jnp.float32),
        "bnd": bn(ks[8]),
    }


if __name__ == "__main__":
    key = jax.random.PRNGKey(0)
    kx, kp = jax.random.split(key)
    N, Cin, Cout, H, W = 2, 4, 8, 16, 16
    x = jax.random.normal(kx, (N, Cin, H, W), jnp.float32)
    params = _make_params(kp, Cin, Cout)

    out = jax.jit(resblock_forward)(x, params)
    out = jax.block_until_ready(out)

    ref = resblock_reference(x, params)
    assert out.shape == (N, Cout, H, W), out.shape
    # bf16 matmul operands -> loosened tolerance vs the f32 reference
    assert jnp.allclose(out, ref, atol=5e-2, rtol=5e-2), float(jnp.max(jnp.abs(out - ref)))
    print("KERNEL_OK")
</pallas_src>

<mosaic_0001>
module attributes {stable_mosaic.version = 11 : i64} {
  func.func @resblock_kernel(%arg0: i32, %arg1: i32, %arg2: memref<1x16x20x4xbf16, #tpu.memory_space<vmem>>, %arg3: memref<1x4x20x4xbf16, #tpu.memory_space<vmem>>, %arg4: memref<36x8xbf16, #tpu.memory_space<vmem>>, %arg5: memref<36x8xbf16, #tpu.memory_space<vmem>>, %arg6: memref<72x8xbf16, #tpu.memory_space<vmem>>, %arg7: memref<1x8xf32, #tpu.memory_space<vmem>>, %arg8: memref<1x8xf32, #tpu.memory_space<vmem>>, %arg9: memref<1x8xf32, #tpu.memory_space<vmem>>, %arg10: memref<1x16x16x8xf32, #tpu.memory_space<vmem>>) attributes {dimension_semantics = [#tpu.dimension_semantics<parallel>, #tpu.dimension_semantics<parallel>], iteration_bounds = array<i64: 2, 1>, scalar_prefetch = 0 : i64, scratch_operands = 0 : i64, tpu.core_type = #tpu.core_type<tc>, window_params = [{transform_indices = @transform_0, window_bounds = array<i64: 1, 16, 20, 4>}, {transform_indices = @transform_1, window_bounds = array<i64: 1, 4, 20, 4>}, {pipeline_mode = #tpu.pipeline_mode<synchronous>, transform_indices = @transform_2, window_bounds = array<i64: 36, 8>}, {pipeline_mode = #tpu.pipeline_mode<synchronous>, transform_indices = @transform_3, window_bounds = array<i64: 36, 8>}, {pipeline_mode = #tpu.pipeline_mode<synchronous>, transform_indices = @transform_4, window_bounds = array<i64: 72, 8>}, {pipeline_mode = #tpu.pipeline_mode<synchronous>, transform_indices = @transform_5, window_bounds = array<i64: 1, 8>}, {pipeline_mode = #tpu.pipeline_mode<synchronous>, transform_indices = @transform_6, window_bounds = array<i64: 1, 8>}, {pipeline_mode = #tpu.pipeline_mode<synchronous>, transform_indices = @transform_7, window_bounds = array<i64: 1, 8>}, {transform_indices = @transform_8, window_bounds = array<i64: 1, 16, 16, 8>}]} {
    %c0 = arith.constant 0 : index
    %c0_0 = arith.constant 0 : index
    %c0_1 = arith.constant 0 : index
    %c0_2 = arith.constant 0 : index
    %0 = vector.load %arg2[%c0, %c0_0, %c0_1, %c0_2] : memref<1x16x20x4xbf16, #tpu.memory_space<vmem>>, vector<1x16x20x4xbf16>
    %1 = vector.shape_cast %0 : vector<1x16x20x4xbf16> to vector<16x20x4xbf16>
    %c0_3 = arith.constant 0 : index
    %c0_4 = arith.constant 0 : index
    %c0_5 = arith.constant 0 : index
    %c0_6 = arith.constant 0 : index
    %2 = vector.load %arg3[%c0_3, %c0_4, %c0_5, %c0_6] : memref<1x4x20x4xbf16, #tpu.memory_space<vmem>>, vector<1x4x20x4xbf16>
    %3 = vector.shape_cast %2 : vector<1x4x20x4xbf16> to vector<4x20x4xbf16>
    %4 = tpu.concatenate %1, %3 in 0 : vector<16x20x4xbf16>, vector<4x20x4xbf16> -> vector<20x20x4xbf16>
    %5 = vector.extract_strided_slice %4 {offsets = [0, 0, 0], sizes = [18, 18, 4], strides = [1, 1, 1]} : vector<20x20x4xbf16> to vector<18x18x4xbf16>
    %6 = vector.extract_strided_slice %4 {offsets = [0, 1, 0], sizes = [18, 18, 4], strides = [1, 1, 1]} : vector<20x20x4xbf16> to vector<18x18x4xbf16>
    %7 = vector.extract_strided_slice %4 {offsets = [0, 2, 0], sizes = [18, 18, 4], strides = [1, 1, 1]} : vector<20x20x4xbf16> to vector<18x18x4xbf16>
    %8 = vector.extract_strided_slice %4 {offsets = [1, 0, 0], sizes = [18, 18, 4], strides = [1, 1, 1]} : vector<20x20x4xbf16> to vector<18x18x4xbf16>
    %9 = vector.extract_strided_slice %4 {offsets = [1, 1, 0], sizes = [18, 18, 4], strides = [1, 1, 1]} : vector<20x20x4xbf16> to vector<18x18x4xbf16>
    %10 = vector.extract_strided_slice %4 {offsets = [1, 2, 0], sizes = [18, 18, 4], strides = [1, 1, 1]} : vector<20x20x4xbf16> to vector<18x18x4xbf16>
    %11 = vector.extract_strided_slice %4 {offsets = [2, 0, 0], sizes = [18, 18, 4], strides = [1, 1, 1]} : vector<20x20x4xbf16> to vector<18x18x4xbf16>
    %12 = vector.extract_strided_slice %4 {offsets = [2, 1, 0], sizes = [18, 18, 4], strides = [1, 1, 1]} : vector<20x20x4xbf16> to vector<18x18x4xbf16>
    %13 = vector.extract_strided_slice %4 {offsets = [2, 2, 0], sizes = [18, 18, 4], strides = [1, 1, 1]} : vector<20x20x4xbf16> to vector<18x18x4xbf16>
    %14 = tpu.concatenate %5, %6, %7, %8, %9, %10, %11, %12, %13 in 2 : vector<18x18x4xbf16>, vector<18x18x4xbf16>, vector<18x18x4xbf16>, vector<18x18x4xbf16>, vector<18x18x4xbf16>, vector<18x18x4xbf16>, vector<18x18x4xbf16>, vector<18x18x4xbf16>, vector<18x18x4xbf16> -> vector<18x18x36xbf16>
    %15 = vector.shape_cast %14 : vector<18x18x36xbf16> to vector<324x36xbf16>
    %c0_7 = arith.constant 0 : index
    %c0_8 = arith.constant 0 : index
    %16 = vector.load %arg4[%c0_7, %c0_8] : memref<36x8xbf16, #tpu.memory_space<vmem>>, vector<36x8xbf16>
    %cst = arith.constant dense<0.000000e+00> : vector<324x8xf32>
    %17 = tpu.matmul %15, %16, %cst {dimension_numbers = #tpu.dot_dimension_numbers<[1], [0], [0], [1], [0, 0, 1, 1], [], []>} : vector<324x36xbf16>, vector<36x8xbf16>, vector<324x8xf32> -> vector<324x8xf32>
    %c0_9 = arith.constant 0 : index
    %c0_10 = arith.constant 0 : index
    %18 = vector.load %arg7[%c0_9, %c0_10] : memref<1x8xf32, #tpu.memory_space<vmem>>, vector<1x8xf32>
    %19 = vector.broadcast %18 : vector<1x8xf32> to vector<324x8xf32>
    %20 = arith.addf %17, %19 : vector<324x8xf32>
    %cst_11 = arith.constant 0.000000e+00 : f32
    %21 = vector.broadcast %cst_11 : f32 to vector<324x8xf32>
    %22 = arith.cmpf ogt, %20, %21 : vector<324x8xf32>
    %cst_12 = arith.constant 0.000000e+00 : f32
    %23 = vector.broadcast %cst_12 : f32 to vector<324x8xf32>
    %24 = arith.minimumf %20, %23 : vector<324x8xf32>
    %25 = math.exp %24 : vector<324x8xf32>
    %cst_13 = arith.constant 1.000000e+00 : f32
    %26 = vector.broadcast %cst_13 : f32 to vector<324x8xf32>
    %27 = arith.subf %25, %26 : vector<324x8xf32>
    %28 = arith.select %22, %20, %27 : vector<324x8xi1>, vector<324x8xf32>
    %29 = vector.shape_cast %28 : vector<324x8xf32> to vector<18x18x8xf32>
    %c16_i32 = arith.constant 16 : i32
    %30 = arith.muli %arg1, %c16_i32 : i32
    %c1_i32 = arith.constant 1 : i32
    %31 = arith.subi %30, %c1_i32 : i32
    %32 = tpu.iota {dimensions = array<i32: 0>} : vector<18x18x1xi32>
    %33 = vector.broadcast %31 : i32 to vector<18x18x1xi32>
    %34 = arith.addi %33, %32 : vector<18x18x1xi32>
    %35 = tpu.iota {dimensions = array<i32: 1>} : vector<18x18x1xi32>
    %c1_i32_14 = arith.constant 1 : i32
    %36 = vector.broadcast %c1_i32_14 : i32 to vector<18x18x1xi32>
    %37 = arith.subi %35, %36 : vector<18x18x1xi32>
    %c0_i32 = arith.constant 0 : i32
    %38 = vector.broadcast %c0_i32 : i32 to vector<18x18x1xi32>
    %39 = arith.cmpi sge, %34, %38 : vector<18x18x1xi32>
    %c16_i32_15 = arith.constant 16 : i32
    %40 = vector.broadcast %c16_i32_15 : i32 to vector<18x18x1xi32>
    %41 = arith.cmpi slt, %34, %40 : vector<18x18x1xi32>
    %42 = arith.andi %39, %41 : vector<18x18x1xi1>
    %c0_i32_16 = arith.constant 0 : i32
    %43 = vector.broadcast %c0_i32_16 : i32 to vector<18x18x1xi32>
    %44 = arith.cmpi sge, %37, %43 : vector<18x18x1xi32>
    %45 = arith.andi %42, %44 : vector<18x18x1xi1>
    %c16_i32_17 = arith.constant 16 : i32
    %46 = vector.broadcast %c16_i32_17 : i32 to vector<18x18x1xi32>
    %47 = arith.cmpi slt, %37, %46 : vector<18x18x1xi32>
    %48 = arith.andi %45, %47 : vector<18x18x1xi1>
    %cst_18 = arith.constant 0.000000e+00 : f32
    %49 = vector.shape_cast %48 : vector<18x18x1xi1> to vector<18x18x1xi1>
    %50 = vector.broadcast %49 : vector<18x18x1xi1> to vector<18x18x8xi1>
    %51 = vector.broadcast %cst_18 : f32 to vector<18x18x8xf32>
    %52 = arith.select %50, %29, %51 : vector<18x18x8xi1>, vector<18x18x8xf32>
    %53 = arith.truncf %52 : vector<18x18x8xf32> to vector<18x18x8xbf16>
    %54 = vector.extract_strided_slice %14 {offsets = [1, 1, 0], sizes = [16, 16, 36], strides = [1, 1, 1]} : vector<18x18x36xbf16> to vector<16x16x36xbf16>
    %55 = vector.shape_cast %54 : vector<16x16x36xbf16> to vector<256x36xbf16>
    %c0_19 = arith.constant 0 : index
    %c0_20 = arith.constant 0 : index
    %56 = vector.load %arg5[%c0_19, %c0_20] : memref<36x8xbf16, #tpu.memory_space<vmem>>, vector<36x8xbf16>
    %cst_21 = arith.constant dense<0.000000e+00> : vector<256x8xf32>
    %57 = tpu.matmul %55, %56, %cst_21 {dimension_numbers = #tpu.dot_dimension_numbers<[1], [0], [0], [1], [0, 0, 1, 1], [], []>} : vector<256x36xbf16>, vector<36x8xbf16>, vector<256x8xf32> -> vector<256x8xf32>
    %c0_22 = arith.constant 0 : index
    %c0_23 = arith.constant 0 : index
    %58 = vector.load %arg8[%c0_22, %c0_23] : memref<1x8xf32, #tpu.memory_space<vmem>>, vector<1x8xf32>
    %59 = vector.broadcast %58 : vector<1x8xf32> to vector<256x8xf32>
    %60 = arith.addf %57, %59 : vector<256x8xf32>
    %61 = vector.extract_strided_slice %53 {offsets = [0, 0, 0], sizes = [16, 16, 8], strides = [1, 1, 1]} : vector<18x18x8xbf16> to vector<16x16x8xbf16>
    %62 = vector.extract_strided_slice %53 {offsets = [0, 1, 0], sizes = [16, 16, 8], strides = [1, 1, 1]} : vector<18x18x8xbf16> to vector<16x16x8xbf16>
    %63 = vector.extract_strided_slice %53 {offsets = [0, 2, 0], sizes = [16, 16, 8], strides = [1, 1, 1]} : vector<18x18x8xbf16> to vector<16x16x8xbf16>
    %64 = vector.extract_strided_slice %53 {offsets = [1, 0, 0], sizes = [16, 16, 8], strides = [1, 1, 1]} : vector<18x18x8xbf16> to vector<16x16x8xbf16>
    %65 = vector.extract_strided_slice %53 {offsets = [1, 1, 0], sizes = [16, 16, 8], strides = [1, 1, 1]} : vector<18x18x8xbf16> to vector<16x16x8xbf16>
    %66 = vector.extract_strided_slice %53 {offsets = [1, 2, 0], sizes = [16, 16, 8], strides = [1, 1, 1]} : vector<18x18x8xbf16> to vector<16x16x8xbf16>
    %67 = vector.extract_strided_slice %53 {offsets = [2, 0, 0], sizes = [16, 16, 8], strides = [1, 1, 1]} : vector<18x18x8xbf16> to vector<16x16x8xbf16>
    %68 = vector.extract_strided_slice %53 {offsets = [2, 1, 0], sizes = [16, 16, 8], strides = [1, 1, 1]} : vector<18x18x8xbf16> to vector<16x16x8xbf16>
    %69 = vector.extract_strided_slice %53 {offsets = [2, 2, 0], sizes = [16, 16, 8], strides = [1, 1, 1]} : vector<18x18x8xbf16> to vector<16x16x8xbf16>
    %70 = tpu.concatenate %61, %62, %63, %64, %65, %66, %67, %68, %69 in 2 : vector<16x16x8xbf16>, vector<16x16x8xbf16>, vector<16x16x8xbf16>, vector<16x16x8xbf16>, vector<16x16x8xbf16>, vector<16x16x8xbf16>, vector<16x16x8xbf16>, vector<16x16x8xbf16>, vector<16x16x8xbf16> -> vector<16x16x72xbf16>
    %71 = vector.shape_cast %70 : vector<16x16x72xbf16> to vector<256x72xbf16>
    %c0_24 = arith.constant 0 : index
    %c0_25 = arith.constant 0 : index
    %72 = vector.load %arg6[%c0_24, %c0_25] : memref<72x8xbf16, #tpu.memory_space<vmem>>, vector<72x8xbf16>
    %cst_26 = arith.constant dense<0.000000e+00> : vector<256x8xf32>
    %73 = tpu.matmul %71, %72, %cst_26 {dimension_numbers = #tpu.dot_dimension_numbers<[1], [0], [0], [1], [0, 0, 1, 1], [], []>} : vector<256x72xbf16>, vector<72x8xbf16>, vector<256x8xf32> -> vector<256x8xf32>
    %c0_27 = arith.constant 0 : index
    %c0_28 = arith.constant 0 : index
    %74 = vector.load %arg9[%c0_27, %c0_28] : memref<1x8xf32, #tpu.memory_space<vmem>>, vector<1x8xf32>
    %75 = vector.broadcast %74 : vector<1x8xf32> to vector<256x8xf32>
    %76 = arith.addf %73, %75 : vector<256x8xf32>
    %77 = arith.addf %76, %60 : vector<256x8xf32>
    %78 = vector.shape_cast %77 : vector<256x8xf32> to vector<16x16x8xf32>
    %c0_29 = arith.constant 0 : index
    %c0_30 = arith.constant 0 : index
    %c0_31 = arith.constant 0 : index
    %c0_32 = arith.constant 0 : index
    %79 = vector.load %arg10[%c0_29, %c0_30, %c0_31, %c0_32] : memref<1x16x16x8xf32, #tpu.memory_space<vmem>>, vector<1x16x16x8xf32>
    %80 = vector.shape_cast %79 : vector<1x16x16x8xf32> to vector<16x16x8xf32>
    %81 = vector.shape_cast %78 : vector<16x16x8xf32> to vector<1x16x16x8xf32>
    tpu.vector_store %arg10[%c0_29, %c0_30, %c0_31, %c0_32], %81 {strides = array<i32>} : memref<1x16x16x8xf32, #tpu.memory_space<vmem>>, vector<1x16x16x8xf32>,
    return
  }
  func.func @transform_0(%arg0: i32, %arg1: i32) -> (i32, i32, i32, i32) {
    %c0_i32 = arith.constant 0 : i32
    %c0_i32_0 = arith.constant 0 : i32
    %c0_i32_1 = arith.constant 0 : i32
    return %arg0, %arg1, %c0_i32, %c0_i32_0 : i32, i32, i32, i32
  }
  func.func @transform_1(%arg0: i32, %arg1: i32) -> (i32, i32, i32, i32) {
    %c1_i32 = arith.constant 1 : i32
    %0 = arith.addi %arg1, %c1_i32 : i32
    %c4_i32 = arith.constant 4 : i32
    %1 = arith.muli %0, %c4_i32 : i32
    %c0_i32 = arith.constant 0 : i32
    %c0_i32_0 = arith.constant 0 : i32
    %c0_i32_1 = arith.constant 0 : i32
    return %arg0, %1, %c0_i32, %c0_i32_0 : i32, i32, i32, i32
  }
  func.func @transform_2(%arg0: i32, %arg1: i32) -> (i32, i32) {
    %c0_i32 = arith.constant 0 : i32
    %c0_i32_0 = arith.constant 0 : i32
    %c0_i32_1 = arith.constant 0 : i32
    return %c0_i32, %c0_i32_0 : i32, i32
  }
  func.func @transform_3(%arg0: i32, %arg1: i32) -> (i32, i32) {
    %c0_i32 = arith.constant 0 : i32
    %c0_i32_0 = arith.constant 0 : i32
    %c0_i32_1 = arith.constant 0 : i32
    return %c0_i32, %c0_i32_0 : i32, i32
  }
  func.func @transform_4(%arg0: i32, %arg1: i32) -> (i32, i32) {
    %c0_i32 = arith.constant 0 : i32
    %c0_i32_0 = arith.constant 0 : i32
    %c0_i32_1 = arith.constant 0 : i32
    return %c0_i32, %c0_i32_0 : i32, i32
  }
  func.func @transform_5(%arg0: i32, %arg1: i32) -> (i32, i32) {
    %c0_i32 = arith.constant 0 : i32
    %c0_i32_0 = arith.constant 0 : i32
    %c0_i32_1 = arith.constant 0 : i32
    return %c0_i32, %c0_i32_0 : i32, i32
  }
  func.func @transform_6(%arg0: i32, %arg1: i32) -> (i32, i32) {
    %c0_i32 = arith.constant 0 : i32
    %c0_i32_0 = arith.constant 0 : i32
    %c0_i32_1 = arith.constant 0 : i32
    return %c0_i32, %c0_i32_0 : i32, i32
  }
  func.func @transform_7(%arg0: i32, %arg1: i32) -> (i32, i32) {
    %c0_i32 = arith.constant 0 : i32
    %c0_i32_0 = arith.constant 0 : i32
    %c0_i32_1 = arith.constant 0 : i32
    return %c0_i32, %c0_i32_0 : i32, i32
  }
  func.func @transform_8(%arg0: i32, %arg1: i32) -> (i32, i32, i32, i32) {
    %c0_i32 = arith.constant 0 : i32
    %c0_i32_0 = arith.constant 0 : i32
    %c0_i32_1 = arith.constant 0 : i32
    return %arg0, %arg1, %c0_i32, %c0_i32_0 : i32, i32, i32, i32
  }
}

</mosaic_0001>

<bundles_post_ra>
// kernel: resblock_forward.1
= control target key start
LH: loop header
LB: loop body
LE: loop exit
PB: predicated region body
PF: predicated region fallthrough
CT: control target
= control target key end

     0   :  { %s9166_s27 = smov 0   ;;  %s9168_s28 = smov 0   ;;  %s13103_s0 = inlined_call_operand.vmem [shape: bf16[2,20,20,4], index: 0, kind: input, shape index: {}, may-alias: {0,1}]   ;;  %s13104_s1 = inlined_call_operand.vmem [shape: bf16[2,20,20,4], index: 1, kind: input, shape index: {}, may-alias: {0,1}]   ;;  %s13105_s2 = inlined_call_operand.vmem [shape: bf16[36,8], index: 2, kind: input, shape index: {}]   ;;  %s13106_s3 = inlined_call_operand.vmem [shape: bf16[36,8], index: 3, kind: input, shape index: {}]   ;;  %s13107_s4 = inlined_call_operand.vmem [shape: bf16[72,8], index: 4, kind: input, shape index: {}]   ;;  %s13108_s5 = inlined_call_operand.vmem [shape: f32[1,8], index: 5, kind: input, shape index: {}]   ;;  %s13109_s6 = inlined_call_operand.vmem [shape: f32[1,8], index: 6, kind: input, shape index: {}]   ;;  %s13110_s7 = inlined_call_operand.vmem [shape: f32[1,8], index: 7, kind: input, shape index: {}]   ;;  %s13111_s8 = inlined_call_operand.vmem [shape: f32[2,16,16,8], index: 8, kind: output, shape index: {}]  }
   0x1   :  { %s9170_s29 = smov 0  }
   0x2 LB: > { %s30_s30 = sadd.s32 1, %s9097_s28  ;;  %p8438_p0 = scmp.ge.s32.totalorder %s9101_s29, 1  ;;  %s9101_s29 = sphi %s9170_s29, %s18_s29   ;;  %s9097_s28 = sphi %s9168_s28, %s13270_s28   ;;  %s9093_s27 = sphi %s9166_s27, %s13269_s27  }
   0x3   : > { %p32_p1 = scmp.ge.s32.totalorder %s30_s30, 2  ;;  %p320_p2 = scmp.lt.s32.totalorder %s9101_s29, 3 }
   0x5   : > { %s13272_s30 = smov (%p32_p1, %s30_s30), 0  ;;  %p321_p3 = pnand %p8438_p0, %p320_p2 }
   0x7   : > { %324 = sbr.rel (%p321_p3) target bundleno = 1286 (0x506), region = 52 }
   0xc   : > { %p387_p4 = scmp.lt.s32.totalorder %s9093_s27, 1  ;;  %vm633_vm0 = vsmask.f32 7424  ;;  %s9103_s13 = smov 4   ;;  %vm976_vm1 = vcmask 1046528   ;;  %vm13142_vm2 = vcmask 1041408  }
   0xd   : > { %s9104_s18 = smov 8   ;;  %s9105_s19 = smov 16   ;;  %vm9112_vm3 = vmmov 0   ;;  %vm1660_vm4 = vcmask 64512   ;;  %vm13141_vm5 = vcmask 31744   ;;  %vm1733_vm6 = vcmask 97280  }
   0xe   : > { %s13274_s27 = smov (!%p387_p4, %s9093_s27), 1  ;;  %s9106_s20 = smov 12   ;;  %vm1806_vm7 = vcmask 130048   ;;  %vm1879_vm8 = vcmask 162816   ;;  %vm1952_vm9 = vcmask 195584   ;;  %vm2025_vm10 = vcmask 228352  }
   0xf   : > { %s8859_s9 = smul.u32 240, %s13274_s27  ;;  %s9107_s23 = smov 24   ;;  %vm2098_vm11 = vcmask 261120   ;;  %vm4363_vm12 = vcmask 293888  }
  0x10   : > { %s9109_s24 = smov 20   ;;  %s9111_s10 = smov 28  }
  0x11   : > { %s9192_s12 = scalar_lea.vmem %s13103_s0, %s8859_s9  ;;  %s8615_s14 = sadd.s32 192, %s8859_s9 }
  0x12   : > { %v9195_v0 = vld [vmem:[%s9192_s12 + $0x14] ss:$0 sps:$4 sm:$0x33]   ;;  %v9198_v1 = vld [vmem:[%s9192_s12] sm:$0xff]   ;;  %v9206_v5 = vld [vmem:[%s9192_s12 + $0x18] sm:$0xff]   ;;  %s9376_s17 = scalar_lea.vmem %s13104_s1, %s8615_s14  ;;  %s9110_s9 = smov 32  }
  0x13   : > { %v9201_v2 = vld [vmem:[%s9192_s12 + $0x8] ss:$0 sps:$4 sm:$0x33]   ;;  %v657_v3 = vshll.u32 %v9195_v0, 16  ;;  %v661_v4 = vshrl.u32 %v9195_v0, 16  ;;  %v635_v9 = vshrl.u32 %v9198_v1, 16 }
  0x14   : > { %v642_v6 = vshll.u32 %v9201_v2, 16  ;;  %v646_v7 = vshrl.u32 %v9201_v2, 16  ;;  %v9211_v8 = vld [vmem:[%s9192_s12 + $0x20] ss:$0 sps:$4 sm:$0x33]   ;;  %v637_v11 = vshll.u32 %v9198_v1, 16 }
  0x15   : > { %v9214_v10 = vrot.slane %v657_v3, 1  ;;  %v672_v13 = vshll.u32 %v9211_v8, 16  ;;  %v676_v14 = vshrl.u32 %v9211_v8, 16  ;;  %v9220_v15 = vld [vmem:[%s9192_s12 + $0x2c] ss:$0 sps:$4 sm:$0x33]  }
  0x16   : > { %v644_v12 = vrot.slane %v642_v6, 1  ;;  %v639_v17 = vrot.slane %v637_v11, 1  ;;  %v665_v18 = vshrl.u32 %v9206_v5, 16  ;;  %v687_v21 = vshll.u32 %v9220_v15, 16  ;;  %v9229_v23 = vld [vmem:[%s9192_s12 + $0x24] sm:$0xff]   ;;  %v9242_v30 = vld [vmem:[%s9192_s12 + $0xc] sm:$0xff]  }
  0x17   : > { %v9223_v16 = vor.u32 %v661_v4, %v9214_v10  ;;  %v674_v20 = vrot.slane %v672_v13, 1  ;;  %v691_v22 = vshrl.u32 %v9220_v15, 16  ;;  %v667_v25 = vshll.u32 %v9206_v5, 16  ;;  %v9235_v26 = vld [vmem:[%s9192_s12 + $0x38] ss:$0 sps:$4 sm:$0x33]  }
  0x18   : > { %v648_v19 = vor.u32 %v646_v7, %v644_v12  ;;  %v640_v24 = vor.u32 %v639_v17, %v635_v9  ;;  %v689_v28 = vrot.slane %v687_v21, 1  ;;  %v682_v29 = vshll.u32 %v9229_v23, 16  ;;  %v9248_v35 = vld [vmem:[%s9192_s12 + $0x30] sm:$0xff]   ;;  %v9253_v39 = vld [vmem:[%s9192_s12 + $0x3c] sm:$0xff]   ;;  %v9279_v55 = vld [vmem:[%s9192_s12 + $0x48] sm:$0xff]   ;;  %s9119_s25 = smov 56  }
  0x19   : > { %910 = vrot.lane.b32.xlu1 %v9223_v16, %s9103_s13  ;;  %v9238_v27 = vor.u32 %v676_v14, %v674_v20  ;;  %v669_v32 = vrot.slane %v667_v25, 1  ;;  %v702_v33 = vshll.u32 %v9235_v26, 16  ;;  %v680_v34 = vshrl.u32 %v9229_v23, 16  ;;  %v9267_v49 = vld [vmem:[%s9192_s12 + $0x44] ss:$0 sps:$4 sm:$0x33]  }
  0x1a   : > { %906 = vrot.lane.b32.xlu0 %v648_v19, %s9103_s13  ;;  %v645_v31 = vsel %vm633_vm0, %v640_v24, %v644_v12  ;;  %v706_v36 = vshrl.u32 %v9235_v26, 16  ;;  %v684_v37 = vrot.slane %v682_v29, 1  ;;  %v652_v38 = vshll.u32 %v9242_v30, 16  ;;  %v9276_v54 = vld [vmem:[%s9192_s12 + $0x50] ss:$0 sps:$4 sm:$0x33]  }
  0x1b   : > { %v9257_v40 = vor.u32 %v691_v22, %v689_v28  ;;  %v670_v41 = vor.u32 %v669_v32, %v665_v18  ;;  %v704_v42 = vrot.slane %v702_v33, 1  ;;  %v650_v43 = vshrl.u32 %v9242_v30, 16  ;;  %v9288_v61 = vld [vmem:[%s9192_s12 + $0x54] sm:$0xff]   ;;  %v9292_v63 = vld [vmem:[%s9192_s12 + $0x5c] ss:$0 sps:$4 sm:$0x33]  }
  0x1c   : > { %v654_v44 = vrot.slane %v652_v38, 1  ;;  %v697_v45 = vshll.u32 %v9248_v35, 16  ;;  %v685_v47 = vor.u32 %v684_v37, %v680_v34  ;;  %v695_v48 = vshrl.u32 %v9248_v35, 16  ;;  %v9306_v11 = vld [vmem:[%s9192_s12 + $0x60] sm:$0xff]   ;;  %s9120_s26 = smov 64  }
  0x1d   : > { %914 = vrot.lane.b32.xlu1 %v9238_v27, %s9103_s13  ;;  %v9263_v46 = vsel %vm633_vm0, %v670_v41, %v674_v20  ;;  %v712_v51 = vshll.u32 %v9253_v39, 16  ;;  %v9272_v52 = vor.u32 %v706_v36, %v704_v42  ;;  %v717_v53 = vshll.u32 %v9267_v49, 16  ;;  %v9319_v21 = vld [vmem:[%s9192_s12 + $0x68] ss:$0 sps:$4 sm:$0x33]  }
  0x1e   : > { %904 = vrot.lane.b32.xlu0 %v645_v31, %s9103_s13  ;;  %v699_v50 = vrot.slane %v697_v45, 1  ;;  %v655_v56 = vor.u32 %v654_v44, %v650_v43  ;;  %v9284_v57 = vsel %vm633_vm0, %v685_v47, %v689_v28  ;;  %v710_v59 = vshrl.u32 %v9253_v39, 16  ;;  %v8923_v31 = vld [vmem:[%s9192_s12 + $0x6c] sm:$0xff]   ;;  %v8922_v37 = vld [vmem:[%s9192_s12 + $0x74] ss:$0 sps:$4 sm:$0x33]  }
  0x1f   : > { %v714_v60 = vrot.slane %v712_v51, 1  ;;  %v727_v62 = vshll.u32 %v9279_v55, 16  ;;  %v719_v3 = vrot.slane %v717_v53, 1  ;;  %v721_v4 = vshrl.u32 %v9267_v49, 16  ;;  %v8925_v45 = vld [vmem:[%s9192_s12 + $0x78] sm:$0xff]  }
  0x20   : > { %v700_v58 = vor.u32 %v699_v50, %v695_v48  ;;  %v732_v6 = vshll.u32 %v9276_v54, 16  ;;  %v9302_v7 = vsel %vm633_vm0, %v655_v56, %v9214_v10  ;;  %v725_v9 = vshrl.u32 %v9279_v55, 16  ;;  %v8924_v47 = vld [vmem:[%s9192_s12 + $0x80] ss:$0 sps:$4 sm:$0x33]  }
  0x21   : > { %918 = vrot.lane.b32.xlu1 %v9257_v40, %s9103_s13  ;;  %v715_v13 = vor.u32 %v714_v60, %v710_v59  ;;  %v729_v14 = vrot.slane %v727_v62, 1  ;;  %v742_v17 = vshll.u32 %v9288_v61, 16  ;;  %v736_v18 = vshrl.u32 %v9276_v54, 16 }
  0x22   : > { %912 = vrot.lane.b32.xlu0 %v9263_v46, %s9103_s13  ;;  %v9309_v12 = vsel %vm633_vm0, %v700_v58, %v704_v42  ;;  %v747_v19 = vshll.u32 %v9292_v63, 16  ;;  %v9316_v10 = vor.u32 %v721_v4, %v719_v3  ;;  %v734_v20 = vrot.slane %v732_v6, 1  ;;  %v8926_v6 = vld [vmem:[%s9192_s12 + $0x8c] ss:$0 sps:$4 sm:$0x33]  }
  0x23   : > { %v757_v22 = vshll.u32 %v9306_v11, 16  ;;  %v9325_v24 = vsel %vm633_vm0, %v715_v13, %v719_v3  ;;  %v730_v25 = vor.u32 %v729_v14, %v725_v9  ;;  %v740_v28 = vshrl.u32 %v9288_v61, 16  ;;  %v8927_v3 = vld [vmem:[%s9192_s12 + $0x84] sm:$0xff]  }
  0x24   : > { %v744_v29 = vrot.slane %v742_v17, 1  ;;  %v749_v32 = vrot.slane %v747_v19, 1  ;;  %v751_v33 = vshrl.u32 %v9292_v63, 16  ;;  %v9332_v34 = vor.u32 %v736_v18, %v734_v20  ;;  %v8929_v18 = vld [vmem:[%s9192_s12 + $0x90] sm:$0xff]  }
  0x25   : > { %922 = vrot.lane.b32.xlu1 %v9272_v52, %s9103_s13  ;;  %v762_v36 = vshll.u32 %v9319_v21, 16  ;;  %v755_v38 = vshrl.u32 %v9306_v11, 16  ;;  %v759_v41 = vrot.slane %v757_v22, 1  ;;  %v9340_v42 = vsel %vm633_vm0, %v730_v25, %v734_v20 }
  0x26   : > { %916 = vrot.lane.b32.xlu0 %v9284_v57, %s9103_s13  ;;  %v745_v43 = vor.u32 %v744_v29, %v740_v28  ;;  %v772_v44 = vshll.u32 %v8923_v31, 16  ;;  %v9346_v48 = vor.u32 %v751_v33, %v749_v32  ;;  %v766_v51 = vshrl.u32 %v9319_v21, 16  ;;  %v8928_v33 = vld [vmem:[%s9192_s12 + $0x98] ss:$0 sps:$4 sm:$0x33]  }
  0x27   : > { %v764_v50 = vrot.slane %v762_v36, 1  ;;  %v777_v53 = vshll.u32 %v8922_v37, 16  ;;  %v770_v56 = vshrl.u32 %v8923_v31, 16  ;;  %v760_v59 = vor.u32 %v759_v41, %v755_v38 }
  0x28   : > { %v9352_v58 = vsel %vm633_vm0, %v745_v43, %v749_v32  ;;  %v774_v60 = vrot.slane %v772_v44, 1  ;;  %v787_v62 = vshll.u32 %v8925_v45, 16  ;;  %v792_v4 = vshll.u32 %v8924_v47, 16  ;;  %v8931_v44 = vld [vmem:[%s9192_s12 + $0x9c] sm:$0xff]  }
  0x29   : > { %908 = vrot.lane.b32.xlu1 %v9302_v7, %s9103_s13  ;;  %v9358_v9 = vor.u32 %v766_v51, %v764_v50  ;;  %v779_v13 = vrot.slane %v777_v53, 1  ;;  %v781_v14 = vshrl.u32 %v8922_v37, 16  ;;  %v785_v17 = vshrl.u32 %v8925_v45, 16 }
  0x2a   : > { %920 = vrot.lane.b32.xlu0 %v9309_v12, %s9103_s13  ;;  %v9366_v19 = vsel %vm633_vm0, %v760_v59, %v764_v50  ;;  %v775_v20 = vor.u32 %v774_v60, %v770_v56  ;;  %v789_v22 = vrot.slane %v787_v62, 1  ;;  %v802_v25 = vshll.u32 %v8927_v3, 16 }
  0x2b   : > { %v794_v28 = vrot.slane %v792_v4, 1  ;;  %v796_v29 = vshrl.u32 %v8924_v47, 16  ;;  %v9370_v31 = vor.u32 %v781_v14, %v779_v13  ;;  %v807_v32 = vshll.u32 %v8926_v6, 16  ;;  %v8930_v47 = vld [vmem:[%s9192_s12 + $0xa4] ss:$0 sps:$4 sm:$0x33]  }
  0x2c   : > { %v817_v36 = vshll.u32 %v8929_v18, 16  ;;  %v9381_v37 = vsel %vm633_vm0, %v775_v20, %v779_v13  ;;  %v790_v38 = vor.u32 %v789_v22, %v785_v17  ;;  %v800_v41 = vshrl.u32 %v8927_v3, 16  ;;  %v8933_v4 = vld [vmem:[%s9192_s12 + $0xa8] sm:$0xff]   ;;  %v8932_v13 = vld [vmem:[%s9192_s12 + $0xb0] ss:$0 sps:$4 sm:$0x33]  }
  0x2d   : > { %926 = vrot.lane.b32.xlu1 %v9316_v10, %s9103_s13  ;;  %v804_v43 = vrot.slane %v802_v25, 1  ;;  %v811_v45 = vshrl.u32 %v8926_v6, 16  ;;  %v9387_v50 = vor.u32 %v796_v29, %v794_v28  ;;  %v809_v51 = vrot.slane %v807_v32, 1  ;;  %v8934_v32 = vld [vmem:[%s9192_s12 + $0xbc] ss:$0 sps:$4 sm:$0x33]  }
  0x2e   : > { %924 = vrot.lane.b32.xlu0 %v9325_v24, %s9103_s13  ;;  %v822_v53 = vshll.u32 %v8928_v33, 16  ;;  %v815_v56 = vshrl.u32 %v8929_v18, 16  ;;  %v819_v59 = vrot.slane %v817_v36, 1  ;;  %v9392_v60 = vsel %vm633_vm0, %v790_v38, %v794_v28 }
  0x2f   : > { %v805_v62 = vor.u32 %v804_v43, %v800_v41  ;;  %v832_v3 = vshll.u32 %v8931_v44, 16  ;;  %v826_v6 = vshrl.u32 %v8928_v33, 16  ;;  %v9398_v14 = vor.u32 %v811_v45, %v809_v51  ;;  %v8935_v33 = vld [vmem:[%s9192_s12 + $0xb4] sm:$0xff]   ;;  %v8937_v45 = vld [vmem:[%s9376_s17] sm:$0xff]  }
  0x30   : > { %v824_v17 = vrot.slane %v822_v53, 1  ;;  %v837_v20 = vshll.u32 %v8930_v47, 16  ;;  %v830_v18 = vshrl.u32 %v8931_v44, 16  ;;  %v820_v25 = vor.u32 %v819_v59, %v815_v56 }
  0x31   : > { %930 = vrot.lane.b32.xlu1 %v9332_v34, %s9103_s13  ;;  %13150 = vst [vmem:[#allocation2_spill] sm:$0xff] %v9398_v14  ;;  %v9403_v22 = vsel %vm633_vm0, %v805_v62, %v809_v51  ;;  %v834_v28 = vrot.slane %v832_v3, 1  ;;  %v847_v29 = vshll.u32 %v8933_v4, 16  ;;  %v841_v36 = vshrl.u32 %v8930_v47, 16 }
  0x32   : > { %928 = vrot.lane.b32.xlu0 %v9340_v42, %s9103_s13  ;;  %v9409_v38 = vor.u32 %v826_v6, %v824_v17  ;;  %v839_v41 = vrot.slane %v837_v20, 1  ;;  %v852_v43 = vshll.u32 %v8932_v13, 16  ;;  %v845_v44 = vshrl.u32 %v8933_v4, 16  ;;  %v8936_v20 = vld [vmem:[%s9376_s17 + $0x8] ss:$0 sps:$4 sm:$0x33]  }
  0x33   : > { %v9415_v51 = vsel %vm633_vm0, %v820_v25, %v824_v17  ;;  %v835_v53 = vor.u32 %v834_v28, %v830_v18  ;;  %v849_v56 = vrot.slane %v847_v29, 1  ;;  %v862_v47 = vshll.u32 %v8935_v33, 16  ;;  %v8939_v29 = vld [vmem:[%s9376_s17 + $0xc] sm:$0xff]  }
  0x34   : > { %13151 = vst [vmem:[#allocation3_spill] sm:$0xff] %v9409_v38  ;;  %v9419_v59 = vor.u32 %v841_v36, %v839_v41  ;;  %v854_v62 = vrot.slane %v852_v43, 1  ;;  %v856_v3 = vshrl.u32 %v8932_v13, 16  ;;  %v867_v6 = vshll.u32 %v8934_v32, 16 }
  0x35   : > { %934 = vrot.lane.b32.xlu1 %v9346_v48, %s9103_s13  ;;  %v860_v4 = vshrl.u32 %v8935_v33, 16  ;;  %v9425_v17 = vsel %vm633_vm0, %v835_v53, %v839_v41  ;;  %v850_v18 = vor.u32 %v849_v56, %v845_v44  ;;  %v864_v25 = vrot.slane %v862_v47, 1 }
  0x36   : > { %932 = vrot.lane.b32.xlu0 %v9352_v58, %s9103_s13  ;;  %13152 = vst [vmem:[#allocation4_spill] sm:$0xff] %v9419_v59  ;;  %v877_v28 = vshll.u32 %v8937_v45, 16  ;;  %v9430_v36 = vor.u32 %v856_v3, %v854_v62  ;;  %v869_v43 = vrot.slane %v867_v6, 1  ;;  %v871_v13 = vshrl.u32 %v8934_v32, 16 }
  0x37   : > { %v875_v33 = vshrl.u32 %v8937_v45, 16  ;;  %v9436_v41 = vsel %vm633_vm0, %v850_v18, %v854_v62  ;;  %v865_v44 = vor.u32 %v864_v25, %v860_v4  ;;  %v892_v56 = vshll.u32 %v8939_v29, 16 }
  0x38   : > { %13153 = vst [vmem:[#allocation5_spill] sm:$0xff] %v9430_v36  ;;  %13154 = vst [vmem:[#allocation6_spill] sm:$0xff] %v9436_v41  ;;  %v879_v53 = vrot.slane %v877_v28, 1  ;;  %v9440_v47 = vor.u32 %v871_v13, %v869_v43  ;;  %v886_v6 = vshrl.u32 %v8936_v20, 16  ;;  %v890_v62 = vshrl.u32 %v8939_v29, 16 }
  0x39   : > { %938 = vrot.lane.b32.xlu1 %v9358_v9, %s9103_s13  ;;  %v894_v18 = vrot.slane %v892_v56, 1  ;;  %v977_v13 = vrot.slane %v9198_v1, 1  ;;  %v9481_v56 = vrot.slane %v9211_v8, 1 }
  0x3a   : > { %936 = vrot.lane.b32.xlu0 %v9366_v19, %s9103_s13  ;;  %13155 = vst [vmem:[#allocation7_spill] sm:$0xff] %v9440_v47  ;;  %v880_v45 = vor.u32 %v879_v53, %v875_v33  ;;  %v980_v53 = vrot.slane %v9242_v30, 1 }
  0x3d   : > { %942 = vrot.lane.b32.xlu1 %v9370_v31, %s9103_s13 }
  0x3e   : > { %940 = vrot.lane.b32.xlu0 %v9381_v37, %s9103_s13 }
  0x41   : > { %946 = vrot.lane.b32.xlu1 %v9387_v50, %s9103_s13 }
  0x42   : > { %944 = vrot.lane.b32.xlu0 %v9392_v60, %s9103_s13 }
  0x45   : > { %950 = vrot.lane.b32.xlu1 %v9398_v14, %s9103_s13  ;;  %v8938_v14 = vld [vmem:[%s9376_s17 + $0x14] ss:$0 sps:$4 sm:$0x33]  }
  0x46   : > { %948 = vrot.lane.b32.xlu0 %v9403_v22, %s9103_s13  ;;  %v897_v32 = vshll.u32 %v8938_v14, 16  ;;  %v901_v28 = vshrl.u32 %v8938_v14, 16  ;;  %v978_v14 = vrot.slane %v9201_v2, 1 }
  0x48   : > { %v899_v25 = vrot.slane %v897_v32, 1  ;;  %v979_v33 = vsel %vm976_vm1, %v977_v13, %v978_v14  ;;  %v9490_v32 = vrot.slane %v9220_v15, 1 }
  0x49   : > { %954 = vrot.lane.b32.xlu1 %v9409_v38, %s9103_s13  ;;  %v882_v38 = vshll.u32 %v8936_v20, 16  ;;  %v895_v20 = vor.u32 %v894_v18, %v890_v62  ;;  %v9501_v18 = vrot.slane %v9235_v26, 1 }
  0x4a   : > { %952 = vrot.lane.b32.xlu0 %v9415_v51, %s9103_s13 }
  0x4b   : > { %v884_v3 = vrot.slane %v882_v38, 1  ;;  %v9463_v29 = vsel %vm633_vm0, %v895_v20, %v899_v25  ;;  %v9513_v20 = vrot.slane %v9267_v49, 1 }
  0x4c   : > { %13160 = vst [vmem:[#allocation12_spill] sm:$0xff] %v9463_v29 }
  0x4d   : > { %958 = vrot.lane.b32.xlu1 %v9419_v59, %s9103_s13  ;;  %v9445_v59 = vsel %vm633_vm0, %v865_v44, %v869_v43  ;;  %v9449_v4 = vor.u32 %v886_v6, %v884_v3  ;;  %v9454_v38 = vsel %vm633_vm0, %v880_v45, %v884_v3  ;;  %v9458_v43 = vor.u32 %v901_v28, %v899_v25 }
  0x4e   : > { %956 = vrot.lane.b32.xlu0 %v9425_v17, %s9103_s13  ;;  %13156 = vst [vmem:[#allocation8_spill] sm:$0xff] %v9445_v59  ;;  %13158 = vst [vmem:[#allocation10_spill] sm:$0xff] %v9454_v38  ;;  %v9473_v44 = vrot.slane %v9195_v0, 1  ;;  %v983_v3 = vrot.slane %v9206_v5, 1  ;;  %v986_v45 = vrot.slane %v9229_v23, 1  ;;  %v989_v25 = vrot.slane %v9248_v35, 1 }
  0x4f   : > { %13157 = vst [vmem:[#allocation9_spill] sm:$0xff] %v9449_v4  ;;  %13159 = vst [vmem:[#allocation11_spill] sm:$0xff] %v9458_v43 }
  0x50   : > { %v982_v2 = vsel %vm976_vm1, %v980_v53, %v9473_v44  ;;  %v985_v6 = vsel %vm976_vm1, %v983_v3, %v9481_v56  ;;  %v9498_v62 = vsel %vm976_vm1, %v986_v45, %v9490_v32  ;;  %v9510_v28 = vsel %vm976_vm1, %v989_v25, %v9501_v18  ;;  %v8940_v45 = vld [vmem:[%s13105_s2 + $0x10] ss:$0 sps:$4 sm:$0x33]  }
  0x51   : > { %962 = vrot.lane.b32.xlu1 %v9430_v36, %s9103_s13  ;;  %v995_v53 = vrot.slane %v9279_v55, 1  ;;  %v13118_v25 = vmov 0.0  }
  0x52   : > { %960 = vrot.lane.b32.xlu0 %v9436_v41, %s9103_s13  ;;  %8681 = vmatprep.subr.bf16.mxu0 %v13118_v25 }
  0x53   : > { %8851 = vmatprep.subr.bf16.mxu1 %v13118_v25  ;;  %8687 = vmatprep.mubr.msk.bf16.mxu0 %vm9112_vm3, %v13118_v25 }
  0x54   : > { %8763 = vmatprep.mubr.msk.bf16.mxu1 %vm9112_vm3, %v13118_v25 }
  0x55   : > { %966 = vrot.lane.b32.xlu1 %v9440_v47, %s9103_s13 }
  0x56   : > { %964 = vrot.lane.b32.xlu0 %v9445_v59, %s9103_s13 }
  0x59   : > { %970 = vrot.lane.b32.xlu1 %v9449_v4, %s9103_s13 }
  0x5a   : > { %968 = vrot.lane.b32.xlu0 %v9454_v38, %s9103_s13 }
  0x5d   : > { %974 = vrot.lane.b32.xlu1 %v9458_v43, %s9103_s13 }
  0x5e   : > { %972 = vrot.lane.b32.xlu0 %v9463_v29, %s9103_s13 }
  0x61   : > { %1033 = vrot.lane.b32.xlu1 %v978_v14, %s9104_s18  ;;  %v992_v14 = vrot.slane %v9253_v39, 1 }
  0x62   : > { %1031 = vrot.lane.b32.xlu0 %v979_v33, %s9104_s18  ;;  %v9525_v33 = vrot.slane %v9276_v54, 1 }
  0x63   : > { %v9522_v13 = vsel %vm976_vm1, %v992_v14, %v9513_v20  ;;  %v4429_v14 = vsel %vm13142_vm2, %v8940_v45, 0 }
  0x64   : > { %v9534_v3 = vsel %vm976_vm1, %v995_v53, %v9525_v33  ;;  %8682 = vmatpush3.bf16.msra.mxu0 %v4429_v14  ;;  %8854 = vmatpush3.bf16.msra.mxu1 %v4429_v14 }
  0x65   : > { %1037 = vrot.lane.b32.xlu1 %v9473_v44, %s9104_s18  ;;  %8683 = vmatprep.subr.bf16.mxu0 %v13118_v25 }
  0x66   : > { %1035 = vrot.lane.b32.xlu0 %v982_v2, %s9104_s18  ;;  %8852 = vmatprep.subr.bf16.mxu1 %v13118_v25 }
  0x69   : > { %1041 = vrot.lane.b32.xlu1 %v9481_v56, %s9104_s18 }
  0x6a   : > { %1039 = vrot.lane.b32.xlu0 %v985_v6, %s9104_s18 }
  0x6d   : > { %1045 = vrot.lane.b32.xlu1 %v9490_v32, %s9104_s18 }
  0x6e   : > { %1043 = vrot.lane.b32.xlu0 %v9498_v62, %s9104_s18 }
  0x71   : > { %1049 = vrot.lane.b32.xlu1 %v9501_v18, %s9104_s18 }
  0x72   : > { %1047 = vrot.lane.b32.xlu0 %v9510_v28, %s9104_s18 }
  0x75   : > { %1053 = vrot.lane.b32.xlu1 %v9513_v20, %s9104_s18 }
  0x76   : > { %1051 = vrot.lane.b32.xlu0 %v9522_v13, %s9104_s18 }
  0x79   : > { %1057 = vrot.lane.b32.xlu1 %v9525_v33, %s9104_s18 }
  0x7a   : > { %1055 = vrot.lane.b32.xlu0 %v9534_v3, %s9104_s18 }
  0x7d   : > { %1198 = vrot.lane.b32.xlu1 %v9302_v7, %s9105_s19  ;;  %v8941_v7 = vld [vmem:[%s13105_s2 + $0x8] sm:$0xff]  }
  0x7e   : > { %1111 = vrot.lane.b32.xlu0 %v9242_v30, %s9106_s20  ;;  %8684 = vmatpush3.bf16.msra.mxu0 %v8941_v7 }
  0x7f   : > { %8685 = vmatprep.subr.bf16.mxu0 %v13118_v25  ;;  %8855 = vmatpush3.bf16.msra.mxu1 %v8941_v7 }
  0x80   : > { %8853 = vmatprep.subr.bf16.mxu1 %v13118_v25 }
  0x81   : > { %1353 = vrot.lane.b32.xlu1 %v9206_v5, %s9107_s23 }
  0x82   : > { %1273 = vrot.lane.b32.xlu0 %v982_v2, %s9109_s24  ;;  %v8942_v2 = vld [vmem:[%s13105_s2] sm:$0xff]  }
  0x83   : > { %8686 = vmatpush3.bf16.msra.mxu0 %v8942_v2  ;;  %8856 = vmatpush3.bf16.msra.mxu1 %v8942_v2 }
  0x85   : > { %1515 = vrot.lane.b32.xlu1 %v985_v6, %s9110_s9 }
  0x86   : > { %1440 = vrot.lane.b32.xlu0 %v9263_v46, %s9111_s10 }
  0x89   : > { %1202 = vrot.lane.b32.xlu1 %v9263_v46, %s9105_s19 }
  0x8a   : > { %1115 = vrot.lane.b32.xlu0 %v9206_v5, %s9106_s20 }
  0x8b   : > { %v9570_v53 = vpop.permute.xlu1 %910 }
  0x8c   : > { %v9572_v45 = vpop.permute.xlu0 %906 }
  0x8d   : > { %1357 = vrot.lane.b32.xlu1 %v9229_v23, %s9107_s23 }
  0x8e   : > { %1277 = vrot.lane.b32.xlu0 %v985_v6, %s9109_s24 }
  0x8f   : > { %v9581_v46 = vpop.permute.xlu1 %914 }
  0x90   : > { %v9583_v5 = vpop.permute.xlu0 %904 }
  0x91   : > { %1444 = vrot.lane.b32.xlu1 %v9284_v57, %s9111_s10 }
  0x92   : > { %1113 = vrot.lane.b32.xlu0 %v9195_v0, %s9106_s20 }
  0x93   : > { %v9589_v14 = vpop.permute.xlu1 %918 }
  0x94   : > { %v9591_v7 = vpop.permute.xlu0 %912 }
  0x95   : > { %1519 = vrot.lane.b32.xlu1 %v9498_v62, %s9110_s9 }
  0x96   : > { %1200 = vrot.lane.b32.xlu0 %v9223_v16, %s9105_s19 }
  0x97   : > { %v9597_v6 = vpop.permute.xlu1 %922 }
  0x98   : > { %v9599_v2 = vpop.permute.xlu0 %916 }
  0x99   : > { %1355 = vrot.lane.b32.xlu1 %v9211_v8, %s9107_s23 }
  0x9a   : > { %1275 = vrot.lane.b32.xlu0 %v9473_v44, %s9109_s24 }
  0x9b   : > { %v9605_v0 = vpop.permute.xlu1 %908 }
  0x9c   : > { %v9607_v25 = vpop.permute.xlu0 %920 }
  0x9d   : > { %1442 = vrot.lane.b32.xlu1 %v9238_v27, %s9111_s10 }
  0x9e   : > { %1119 = vrot.lane.b32.xlu0 %v9229_v23, %s9106_s20 }
  0x9f   : > { %v9613_v16 = vpop.permute.xlu1 %926 }
  0xa0   : > { %v9615_v43 = vpop.permute.xlu0 %924 }
  0xa1   : > { %1517 = vrot.lane.b32.xlu1 %v9481_v56, %s9110_s9 }
  0xa2   : > { %1206 = vrot.lane.b32.xlu0 %v9284_v57, %s9105_s19 }
  0xa3   : > { %v9621_v44 = vpop.permute.xlu1 %930 }
  0xa4   : > { %v9623_v29 = vpop.permute.xlu0 %928 }
  0xa5   : > { %1361 = vrot.lane.b32.xlu1 %v9248_v35, %s9107_s23 }
  0xa6   : > { %1281 = vrot.lane.b32.xlu0 %v9498_v62, %s9109_s24 }
  0xa7   : > { %v9629_v23 = vpop.permute.xlu1 %934 }
  0xa8   : > { %v9631_v4 = vpop.permute.xlu0 %932 }
  0xa9   : > { %1448 = vrot.lane.b32.xlu1 %v9309_v12, %s9111_s10 }
  0xaa   : > { %1117 = vrot.lane.b32.xlu0 %v9211_v8, %s9106_s20 }
  0xab   : > { %v9637_v57 = vpop.permute.xlu1 %938 }
  0xac   : > { %13161 = vst [vmem:[#allocation13_spill] sm:$0xff] %v9637_v57  ;;  %v9639_v47 = vpop.permute.xlu0 %936 }
  0xad   : > { %13162 = vst [vmem:[#allocation14_spill] sm:$0xff] %v9639_v47  ;;  %1523 = vrot.lane.b32.xlu1 %v9510_v28, %s9110_s9 }
  0xae   : > { %1204 = vrot.lane.b32.xlu0 %v9238_v27, %s9105_s19 }
  0xaf   : > { %v9645_v62 = vpop.permute.xlu1 %942 }
  0xb0   : > { %13163 = vst [vmem:[#allocation15_spill] sm:$0xff] %v9645_v62  ;;  %v9647_v38 = vpop.permute.xlu0 %940 }
  0xb1   : > { %13164 = vst [vmem:[#allocation16_spill] sm:$0xff] %v9647_v38  ;;  %1359 = vrot.lane.b32.xlu1 %v9220_v15, %s9107_s23 }
  0xb2   : > { %1279 = vrot.lane.b32.xlu0 %v9481_v56, %s9109_s24 }
  0xb3   : > { %v9653_v8 = vpop.permute.xlu1 %946 }
  0xb4   : > { %13165 = vst [vmem:[#allocation17_spill] sm:$0xff] %v9653_v8  ;;  %v9655_v57 = vpop.permute.xlu0 %944 }
  0xb5   : > { %13166 = vst [vmem:[#allocation18_spill] sm:$0xff] %v9655_v57  ;;  %1446 = vrot.lane.b32.xlu1 %v9257_v40, %s9111_s10  ;;  %v2211_v57 = vlaneseq }
  0xb6   : > { %1123 = vrot.lane.b32.xlu0 %v9248_v35, %s9106_s20 }
  0xb7   : > { %v9661_v27 = vpop.permute.xlu1 %950 }
  0xb8   : > { %13167 = vst [vmem:[#allocation19_spill] sm:$0xff] %v9661_v27  ;;  %v9663_v62 = vpop.permute.xlu0 %948 }
  0xb9   : > { %13168 = vst [vmem:[#allocation20_spill] sm:$0xff] %v9663_v62  ;;  %1521 = vrot.lane.b32.xlu1 %v9490_v32, %s9110_s9  ;;  %v9113_v62 = vmov 1966171168  }
  0xba   : > { %1210 = vrot.lane.b32.xlu0 %v9309_v12, %s9105_s19 }
  0xbb   : > { %v9669_v56 = vpop.permute.xlu1 %954 }
  0xbc   : > { %13169 = vst [vmem:[#allocation21_spill] sm:$0xff] %v9669_v56  ;;  %v9671_v8 = vpop.permute.xlu0 %952 }
  0xbd   : > { %13170 = vst [vmem:[#allocation22_spill] sm:$0xff] %v9671_v8  ;;  %1365 = vrot.lane.b32.xlu1 %v9253_v39, %s9107_s23 }
  0xbe   : > { %1285 = vrot.lane.b32.xlu0 %v9510_v28, %s9109_s24 }
  0xbf   : > { %v9677_v35 = vpop.permute.xlu1 %958 }
  0xc0   : > { %13171 = vst [vmem:[#allocation23_spill] sm:$0xff] %v9677_v35  ;;  %v9679_v27 = vpop.permute.xlu0 %956 }
  0xc1   : > { %13172 = vst [vmem:[#allocation24_spill] sm:$0xff] %v9679_v27  ;;  %1452 = vrot.lane.b32.xlu1 %v9325_v24, %s9111_s10 }
  0xc2   : > { %1121 = vrot.lane.b32.xlu0 %v9220_v15, %s9106_s20 }
  0xc3   : > { %v9685_v12 = vpop.permute.xlu1 %962 }
  0xc4   : > { %13173 = vst [vmem:[#allocation25_spill] sm:$0xff] %v9685_v12  ;;  %v9687_v56 = vpop.permute.xlu0 %960 }
  0xc5   : > { %13174 = vst [vmem:[#allocation26_spill] sm:$0xff] %v9687_v56  ;;  %1527 = vrot.lane.b32.xlu1 %v9522_v13, %s9110_s9 }
  0xc6   : > { %1208 = vrot.lane.b32.xlu0 %v9257_v40, %s9105_s19 }
  0xc7   : > { %v9693_v28 = vpop.permute.xlu1 %966 }
  0xc8   : > { %13175 = vst [vmem:[#allocation27_spill] sm:$0xff] %v9693_v28  ;;  %v9695_v35 = vpop.permute.xlu0 %964 }
  0xc9   : > { %13176 = vst [vmem:[#allocation28_spill] sm:$0xff] %v9695_v35  ;;  %1363 = vrot.lane.b32.xlu1 %v9235_v26, %s9107_s23 }
  0xca   : > { %1283 = vrot.lane.b32.xlu0 %v9490_v32, %s9109_s24 }
  0xcb   : > { %v9701_v15 = vpop.permute.xlu1 %970 }
  0xcc   : > { %13177 = vst [vmem:[#allocation29_spill] sm:$0xff] %v9701_v15  ;;  %v9703_v12 = vpop.permute.xlu0 %968 }
  0xcd   : > { %13178 = vst [vmem:[#allocation30_spill] sm:$0xff] %v9703_v12  ;;  %1525 = vrot.lane.b32.xlu1 %v9501_v18, %s9110_s9 }
  0xce   : > { %1450 = vrot.lane.b32.xlu0 %v9272_v52, %s9111_s10 }
  0xcf   : > { %v9709_v40 = vpop.permute.xlu1 %974 }
  0xd0   : > { %13179 = vst [vmem:[#allocation31_spill] sm:$0xff] %v9709_v40  ;;  %v9711_v28 = vpop.permute.xlu0 %972 }
  0xd1   : > { %13180 = vst [vmem:[#allocation32_spill] sm:$0xff] %v9711_v28  ;;  %1214 = vrot.lane.b32.xlu1 %v9325_v24, %s9105_s19 }
  0xd2   : > { %1127 = vrot.lane.b32.xlu0 %v9253_v39, %s9106_s20 }
  0xd3   : > { %v9717_v32 = vpop.permute.xlu1 %1033 }
  0xd4   : > { %v1032_v15 = vpop.permute.xlu0 %1031 }
  0xd5   : > { %1289 = vrot.lane.b32.xlu1 %v9522_v13, %s9109_s24 }
  0xd6   : > { %1125 = vrot.lane.b32.xlu0 %v9235_v26, %s9106_s20 }
  0xd7   : > { %v9723_v12 = vpop.permute.xlu1 %1037 }
  0xd8   : > { %v9725_v40 = vpop.permute.xlu0 %1035 }
  0xd9   : > { %1369 = vrot.lane.b32.xlu1 %v9279_v55, %s9107_s23 }
  0xda   : > { %1212 = vrot.lane.b32.xlu0 %v9272_v52, %s9105_s19 }
  0xdb   : > { %v9731_v39 = vpop.permute.xlu1 %1041 }
  0xdc   : > { %v9733_v24 = vpop.permute.xlu0 %1039 }
  0xdd   : > { %1456 = vrot.lane.b32.xlu1 %v9340_v42, %s9111_s10 }
  0xde   : > { %1287 = vrot.lane.b32.xlu0 %v9501_v18, %s9109_s24 }
  0xdf   : > { %v9739_v26 = vpop.permute.xlu1 %1045 }
  0xe0   : > { %v9741_v13 = vpop.permute.xlu0 %1043 }
  0xe1   : > { %1531 = vrot.lane.b32.xlu1 %v9534_v3, %s9110_s9 }
  0xe2   : > { %1367 = vrot.lane.b32.xlu0 %v9267_v49, %s9107_s23 }
  0xe3   : > { %v9747_v52 = vpop.permute.xlu1 %1049 }
  0xe4   : > { %v9749_v28 = vpop.permute.xlu0 %1047 }
  0xe5   : > { %1529 = vrot.lane.b32.xlu1 %v9513_v20, %s9110_s9 }
  0xe6   : > { %1454 = vrot.lane.b32.xlu0 %v9316_v10, %s9111_s10 }
  0xe7   : > { %v9755_v18 = vpop.permute.xlu1 %1053 }
  0xe8   : > { %v9757_v35 = vpop.permute.xlu0 %1051 }
  0xe9   : > { %1218 = vrot.lane.b32.xlu1 %v9340_v42, %s9105_s19  ;;  %v1589_v42 = vsel %vm13141_vm5, %v9198_v1, %v9583_v5  ;;  %v9782_v1 = vrot.slane %v9292_v63, 1 }
  0xea   : > { %1131 = vrot.lane.b32.xlu0 %v9279_v55, %s9106_s20  ;;  %v2209_v55 = vunpack.c.l.s4 %v9113_v62  ;;  %v1662_v36 = vsel %vm1660_vm4, %v1589_v42, %v1032_v15  ;;  %v9784_v62 = vshrl.u32 %v2211_v57, 7 }
  0xeb   : > { %v9763_v56 = vpop.permute.xlu1 %1057 }
  0xec   : > { %v9765_v27 = vpop.permute.xlu0 %1055  ;;  %v2210_v5 = vunpack.c.0.s8 %v2209_v55  ;;  %13181 = vst [vmem:[#allocation33_spill] sm:$0xff] %v9784_v62 }
  0xed   : > { %1293 = vrot.lane.b32.xlu1 %v9534_v3, %s9109_s24 }
  0xee   : > { %1129 = vrot.lane.b32.xlu0 %v9267_v49, %s9106_s20  ;;  %v998_v49 = vrot.slane %v9288_v61, 1  ;;  %v9797_v57 = vsub.s32 %v2210_v5, %v9784_v62 }
  0xef   : > { %v1199_v8 = vpop.permute.xlu1 %1198 }
  0xf0   : > { %v1112_v59 = vpop.permute.xlu0 %1111 }
  0xf1   : > { %v1735_v38 = vsel %vm1733_vm6, %v1662_v36, %v1112_v59  ;;  %1373 = vrot.lane.b32.xlu1 %v9288_v61, %s9107_s23 }
  0xf2   : > { %1216 = vrot.lane.b32.xlu0 %v9316_v10, %s9105_s19  ;;  %v1808_v15 = vsel %vm1806_vm7, %v1735_v38, %v1199_v8  ;;  %v9794_v10 = vsel %vm976_vm1, %v998_v49, %v9782_v1  ;;  %v1593_v49 = vsel %vm13141_vm5, %v9242_v30, %v9605_v0 }
  0xf3   : > { %v1354_v3 = vpop.permute.xlu1 %1353 }
  0xf4   : > { %v1274_v59 = vpop.permute.xlu0 %1273 }
  0xf5   : > { %v1881_v36 = vsel %vm1879_vm8, %v1808_v15, %v1274_v59  ;;  %1460 = vrot.lane.b32.xlu1 %v9352_v58, %s9111_s10 }
  0xf6   : > { %1291 = vrot.lane.b32.xlu0 %v9513_v20, %s9109_s24  ;;  %v1954_v38 = vsel %vm1952_vm9, %v1881_v36, %v1354_v3  ;;  %v1666_v3 = vsel %vm1660_vm4, %v1593_v49, %v9725_v40 }
  0xf7   : > { %v1516_v42 = vpop.permute.xlu1 %1515 }
  0xf8   : > { %v1441_v8 = vpop.permute.xlu0 %1440 }
  0xf9   : > { %v2027_v55 = vsel %vm2025_vm10, %v1954_v38, %v1441_v8  ;;  %1535 = vrot.lane.b32.xlu1 %v9794_v10, %s9110_s9 }
  0xfa   : > { %v2100_v20 = vsel %vm2098_vm11, %v2027_v55, %v1516_v42  ;;  %1371 = vrot.lane.b32.xlu0 %v9276_v54, %s9107_s23 }
  0xfb   : > { %v2207_v15 = vcombine.high %v2100_v20, %v2100_v20  ;;  %v2214_v5 = vrot.slane %v2100_v20, %v9797_v57  ;;  %v1203_v59 = vpop.permute.xlu1 %1202 }
  0xfc   : > { %v1116_v36 = vpop.permute.xlu0 %1115 }
  0xfd   : > { %v2221_v38 = vrot.slane %v2207_v15, %v9797_v57  ;;  %v2222_v8 = vcombine.high %v2214_v5, %v2214_v5  ;;  %v1739_v42 = vsel %vm1733_vm6, %v1666_v3, %v1116_v36  ;;  %1533 = vrot.lane.b32.xlu1 %v9525_v33, %s9110_s9  ;;  %v2230_v0 = vrot.slane %v2214_v5, %v9797_v57 }
  0xfe   : > { %1458 = vrot.lane.b32.xlu0 %v9332_v34, %s9111_s10  ;;  %v1812_v40 = vsel %vm1806_vm7, %v1739_v42, %v1203_v59 }
  0xff   : > { %v2223_v30 = vcombine.high %v2221_v38, %v2221_v38  ;;  %v2244_v55 = vrot.slane %v2222_v8, %v9797_v57  ;;  %v1358_v20 = vpop.permute.xlu1 %1357  ;;  %v2237_v15 = vrot.slane %v2221_v38, %v9797_v57 }
 0x100   : > { %v1278_v49 = vpop.permute.xlu0 %1277 }
 0x101   : > { %v2251_v62 = vrot.slane %v2223_v30, %v9797_v57  ;;  %v3353_v3 = vcombine.low %v2230_v0, %v2244_v55  ;;  %v8484_v36 = vcombine.high %v2230_v0, %v2244_v55  ;;  %1222 = vrot.lane.b32.xlu1 %v9352_v58, %s9105_s19  ;;  %v1885_v47 = vsel %vm1879_vm8, %v1812_v40, %v1278_v49 }
 0x102   : > { %1135 = vrot.lane.b32.xlu0 %v9288_v61, %s9106_s20  ;;  %v1958_v58 = vsel %vm1952_vm9, %v1885_v47, %v1358_v20  ;;  %v1001_v47 = vrot.slane %v9306_v11, 1  ;;  %v9853_v20 = vrot.slane %v9319_v21, 1 }
 0x103   : > { %v3355_v5 = vcombine.low %v2237_v15, %v2251_v62  ;;  %v8485_v8 = vcombine.high %v2237_v15, %v2251_v62  ;;  %v3363_v41 = vrot.slane %v3353_v3, %v9797_v57  ;;  %v3370_v59 = vrot.slane %v8484_v36, %v9797_v57  ;;  %v1445_v42 = vpop.permute.xlu1 %1444 }
 0x104   : > { %v1114_v38 = vpop.permute.xlu0 %1113  ;;  %v2031_v62 = vsel %vm2025_vm10, %v1958_v58, %v1445_v42 }
 0x105   : > { %v3377_v30 = vrot.slane %v3355_v5, %v9797_v57  ;;  %v3384_v0 = vrot.slane %v8485_v8, %v9797_v57  ;;  %1297 = vrot.lane.b32.xlu1 %v9794_v10, %s9109_s24  ;;  %v3385_v61 = vcombine.low %v3363_v41, %v3370_v59  ;;  %v9029_v5 = vld [vmem:[%s9192_s12 + $0x8] ss:$0 sps:$4 sm:$0x33]  }
 0x106   : > { %1133 = vrot.lane.b32.xlu0 %v9276_v54, %s9106_s20  ;;  %v1591_v8 = vsel %vm13141_vm5, %v9029_v5, %v9572_v45 }
 0x107   : > { %v1520_v55 = vpop.permute.xlu1 %1519  ;;  %v3386_v40 = vcombine.low %v3377_v30, %v3384_v0  ;;  %v3393_v54 = vrot.slane %v3385_v61, %v9797_v57 }
 0x108   : > { %v9839_v49 = vsel %vm2098_vm11, %v2031_v62, %v1520_v55  ;;  %v1201_v15 = vpop.permute.xlu0 %1200 }
 0x109   : > { %v2270_v3 = vcombine.high %v9839_v49, %v9839_v49  ;;  %v2277_v36 = vrot.slane %v9839_v49, %v9797_v57  ;;  %1377 = vrot.lane.b32.xlu1 %v9306_v11, %s9107_s23  ;;  %v3400_v41 = vrot.slane %v3386_v40, %v9797_v57 }
 0x10a   : > { %1220 = vrot.lane.b32.xlu0 %v9332_v34, %s9105_s19  ;;  %v1664_v34 = vsel %vm1660_vm4, %v1591_v8, %v9717_v32  ;;  %v9872_v32 = vsel %vm976_vm1, %v1001_v47, %v9853_v20 }
 0x10b   : > { %v2284_v59 = vrot.slane %v2270_v3, %v9797_v57  ;;  %v2285_v42 = vcombine.high %v2277_v36, %v2277_v36  ;;  %v1356_v30 = vpop.permute.xlu1 %1355  ;;  %v3401_v58 = vcombine.low %v3393_v54, %v3400_v41  ;;  %v1737_v61 = vsel %vm1733_vm6, %v1664_v34, %v1114_v38 }
 0x10c   : > { %v1276_v0 = vpop.permute.xlu0 %1275  ;;  %v1810_v45 = vsel %vm1806_vm7, %v1737_v61, %v1201_v15  ;;  %v2293_v38 = vrot.slane %v2277_v36, %v9797_v57  ;;  %v13182_v3 = vmov 0.0  }
 0x10d   : > { %v2286_v11 = vcombine.high %v2284_v59, %v2284_v59  ;;  %v2300_v21 = vrot.slane %v2284_v59, %v9797_v57  ;;  %v2307_v62 = vrot.slane %v2285_v42, %v9797_v57  ;;  %1464 = vrot.lane.b32.xlu1 %v9366_v19, %s9111_s10  ;;  %8688 = vmatmul.mubr.msk.bf16.vlgmr.msra.gmra.mxu0 %vm4363_vm12, %v3401_v58 }
 0x10e   : > { %1295 = vrot.lane.b32.xlu0 %v9525_v33, %s9109_s24  ;;  %v1883_v55 = vsel %vm1879_vm8, %v1810_v45, %v1276_v0  ;;  %8691 = vmatprep.mubr.msk.bf16.mxu0 %vm9112_vm3, %v13182_v3  ;;  %v2315_v36 = vcombine.high %v2293_v38, %v2293_v38 }
 0x10f   : > { %v1443_v40 = vpop.permute.xlu1 %1442  ;;  %v9879_v54 = vrot.slane %v2286_v11, %v9797_v57  ;;  %v2316_v15 = vcombine.high %v2300_v21, %v2300_v21  ;;  %v2317_v41 = vcombine.high %v2307_v62, %v2307_v62  ;;  %v1956_v33 = vsel %vm1952_vm9, %v1883_v55, %v1356_v30 }
 0x110   : > { %v1120_v5 = vpop.permute.xlu0 %1119  ;;  %v2029_v47 = vsel %vm2025_vm10, %v1956_v33, %v1443_v40  ;;  %v3403_v61 = vcombine.low %v2307_v62, %v2315_v36 }
 0x111   : > { %1539 = vrot.lane.b32.xlu1 %v9872_v32, %s9110_s9  ;;  %v3404_v59 = vcombine.low %v2317_v41, %v2300_v21  ;;  %v3405_v42 = vcombine.low %v9879_v54, %v2316_v15 }
 0x112   : > { %1375 = vrot.lane.b32.xlu0 %v9292_v63, %s9107_s23  ;;  %v9030_v63 = vld [vmem:[%s9192_s12 + $0x18] sm:$0xff]   ;;  %v3419_v62 = vrot.slane %v3403_v61, %v9797_v57 }
 0x113   : > { %v1518_v8 = vpop.permute.xlu1 %1517  ;;  %v1597_v30 = vsel %vm13141_vm5, %v9030_v63, %v9591_v7  ;;  %v3426_v40 = vrot.slane %v3404_v59, %v9797_v57  ;;  %v3433_v15 = vrot.slane %v3405_v42, %v9797_v57 }
 0x114   : > { %v2102_v34 = vsel %vm2098_vm11, %v2029_v47, %v1518_v8  ;;  %v1207_v0 = vpop.permute.xlu0 %1206  ;;  %v1670_v45 = vsel %vm1660_vm4, %v1597_v30, %v9733_v24  ;;  %v9904_v47 = vld [vmem:[%s9192_s12 + $0x5c] ss:$0 sps:$4 sm:$0x33]  }
 0x115   : > { %v2262_v58 = vrot.slane %v2102_v34, %v9797_v57  ;;  %1537 = vrot.lane.b32.xlu1 %v9782_v1, %s9110_s9  ;;  %v1743_v41 = vsel %vm1733_vm6, %v1670_v45, %v1120_v5  ;;  %v3435_v5 = vcombine.low %v3426_v40, %v3433_v15  ;;  %v9918_v34 = vld [vmem:[%s9192_s12 + $0x60] sm:$0xff]   ;;  %v9033_v45 = vld [vmem:[%s9192_s12 + $0x14] ss:$0 sps:$4 sm:$0x33]  }
 0x116   : > { %1462 = vrot.lane.b32.xlu0 %v9346_v48, %s9111_s10  ;;  %v1816_v7 = vsel %vm1806_vm7, %v1743_v41, %v1207_v0 }
 0x117   : > { %v2269_v11 = vrot.slane %v2262_v58, %v9797_v57  ;;  %v1362_v21 = vpop.permute.xlu1 %1361  ;;  %v3449_v61 = vrot.slane %v3435_v5, %v9797_v57 }
 0x118   : > { %v1282_v55 = vpop.permute.xlu0 %1281 }
 0x119   : > { %v3402_v33 = vcombine.low %v2269_v11, %v2293_v38  ;;  %1137 = vrot.lane.b32.xlu1 %v9904_v47, %s9106_s20  ;;  %v1889_v36 = vsel %vm1879_vm8, %v1816_v7, %v1282_v55  ;;  %v1595_v55 = vsel %vm13141_vm5, %v9033_v45, %v9570_v53 }
 0x11a   : > { %1059 = vrot.lane.b32.xlu0 %v9794_v10, %s9104_s18  ;;  %v1962_v42 = vsel %vm1952_vm9, %v1889_v36, %v1362_v21  ;;  %v1668_v41 = vsel %vm1660_vm4, %v1595_v55, %v9723_v12  ;;  %v6791_v55 = vshrl.u32 %v9839_v49, 16 }
 0x11b   : > { %v3412_v24 = vrot.slane %v3402_v33, %v9797_v57  ;;  %v1449_v8 = vpop.permute.xlu1 %1448 }
 0x11c   : > { %v1118_v59 = vpop.permute.xlu0 %1117  ;;  %v2035_v10 = vsel %vm2025_vm10, %v1962_v42, %v1449_v8 }
 0x11d   : > { %v3434_v38 = vcombine.low %v3412_v24, %v3419_v62  ;;  %1224 = vrot.lane.b32.xlu1 %v9346_v48, %s9105_s19  ;;  %v1741_v7 = vsel %vm1733_vm6, %v1668_v41, %v1118_v59  ;;  %v6793_v62 = vshll.u32 %v9839_v49, 16 }
 0x11e   : > { %1139 = vrot.lane.b32.xlu0 %v9918_v34, %s9106_s20 }
 0x11f   : > { %v1524_v0 = vpop.permute.xlu1 %1523  ;;  %v3442_v58 = vrot.slane %v3434_v38, %v9797_v57  ;;  %v9959_v38 = vld [vmem:[%s9192_s12 + $0x6c] sm:$0xff]  }
 0x120   : > { %v9925_v63 = vsel %vm2098_vm11, %v2035_v10, %v1524_v0  ;;  %v1205_v30 = vpop.permute.xlu0 %1204  ;;  %v1004_v42 = vrot.slane %v9959_v38, 1  ;;  %v9963_v10 = vld [vmem:[%s9192_s12 + $0x74] ss:$0 sps:$4 sm:$0x33]  }
 0x121   : > { %v2333_v48 = vcombine.high %v9925_v63, %v9925_v63  ;;  %1299 = vrot.lane.b32.xlu1 %v9782_v1, %s9109_s24  ;;  %v2340_v11 = vrot.slane %v9925_v63, %v9797_v57  ;;  %v3450_v21 = vcombine.low %v3442_v58, %v3449_v61  ;;  %v1814_v36 = vsel %vm1806_vm7, %v1741_v7, %v1205_v30 }
 0x122   : > { %1226 = vrot.lane.b32.xlu0 %v9366_v19, %s9105_s19  ;;  %v9034_v19 = vld [vmem:[%s9192_s12 + $0x68] ss:$0 sps:$4 sm:$0x33]   ;;  %v9966_v0 = vrot.slane %v9963_v10, 1  ;;  %v6795_v58 = vrot.slane %v6793_v62, 1 }
 0x123   : > { %v2347_v40 = vrot.slane %v2333_v48, %v9797_v57  ;;  %v1360_v15 = vpop.permute.xlu1 %1359  ;;  %8692 = vmatmul.mubr.msk.bf16.gmra.mxu0 %vm4363_vm12, %v3450_v21  ;;  %v2348_v53 = vcombine.high %v2340_v11, %v2340_v11  ;;  %v2356_v41 = vrot.slane %v2340_v11, %v9797_v57 }
 0x124   : > { %v1280_v33 = vpop.permute.xlu0 %1279  ;;  %8695 = vmatprep.mubr.msk.bf16.mxu0 %vm9112_vm3, %v13182_v3  ;;  %v9991_v11 = vsel %vm976_vm1, %v1004_v42, %v9966_v0 }
 0x125   : > { %v2349_v24 = vcombine.high %v2347_v40, %v2347_v40  ;;  %1379 = vrot.lane.b32.xlu1 %v9034_v19, %s9107_s23  ;;  %v1887_v12 = vsel %vm1879_vm8, %v1814_v36, %v1280_v33  ;;  %v9969_v30 = vrot.slane %v2347_v40, %v9797_v57  ;;  %v2370_v61 = vrot.slane %v2348_v53, %v9797_v57 }
 0x126   : > { %1301 = vrot.lane.b32.xlu0 %v9872_v32, %s9109_s24  ;;  %v1960_v48 = vsel %vm1952_vm9, %v1887_v12, %v1360_v15  ;;  %v9037_v15 = vld [vmem:[%s9192_s12 + $0x24] sm:$0xff]   ;;  %v6796_v36 = vor.u32 %v6795_v58, %v6791_v55 }
 0x127   : > { %v1447_v8 = vpop.permute.xlu1 %1446  ;;  %v9954_v59 = vrot.slane %v2349_v24, %v9797_v57  ;;  %v1601_v53 = vsel %vm13141_vm5, %v9037_v15, %v9599_v2  ;;  %v8486_v49 = vcombine.high %v2356_v41, %v2370_v61  ;;  %v3452_v12 = vcombine.low %v2356_v41, %v2370_v61 }
 0x128   : > { %v1124_v5 = vpop.permute.xlu0 %1123  ;;  %v2033_v21 = vsel %vm2025_vm10, %v1960_v48, %v1447_v8  ;;  %v2318_v8 = vcombine.high %v9879_v54, %v9879_v54  ;;  %v1674_v2 = vsel %vm1660_vm4, %v1601_v53, %v9741_v13 }
 0x129   : > { %1466 = vrot.lane.b32.xlu1 %v9358_v9, %s9111_s10  ;;  %v3454_v33 = vcombine.low %v9969_v30, %v9954_v59  ;;  %v3475_v54 = vrot.slane %v8486_v49, %v9797_v57  ;;  %v3468_v13 = vrot.slane %v3452_v12, %v9797_v57 }
 0x12a   : > { %1381 = vrot.lane.b32.xlu0 %v9959_v38, %s9107_s23 }
 0x12b   : > { %v1522_v45 = vpop.permute.xlu1 %1521  ;;  %v3482_v55 = vrot.slane %v3454_v33, %v9797_v57 }
 0x12c   : > { %v2106_v40 = vsel %vm2098_vm11, %v2033_v21, %v1522_v45  ;;  %v1211_v7 = vpop.permute.xlu0 %1210 }
 0x12d   : > { %v2325_v24 = vrot.slane %v2106_v40, %v9797_v57  ;;  %v6797_v62 = vshll.u32 %v2106_v40, 16  ;;  %1541 = vrot.lane.b32.xlu1 %v9853_v20, %s9110_s9  ;;  %v1747_v40 = vsel %vm1733_vm6, %v1674_v2, %v1124_v5 }
 0x12e   : > { %1468 = vrot.lane.b32.xlu0 %v9381_v37, %s9111_s10  ;;  %v1820_v61 = vsel %vm1806_vm7, %v1747_v40, %v1211_v7 }
 0x12f   : > { %v2332_v48 = vrot.slane %v2325_v24, %v9797_v57  ;;  %v6799_v21 = vrot.slane %v6797_v62, 1  ;;  %v1366_v45 = vpop.permute.xlu1 %1365 }
 0x130   : > { %v1286_v58 = vpop.permute.xlu0 %1285 }
 0x131   : > { %v3451_v15 = vcombine.low %v2318_v8, %v2332_v48  ;;  %1061 = vrot.lane.b32.xlu1 %v9782_v1, %s9104_s18  ;;  %v10003_v42 = vsel %vm633_vm0, %v6796_v36, %v6799_v21  ;;  %v1893_v5 = vsel %vm1879_vm8, %v1820_v61, %v1286_v58  ;;  %v3484_v1 = vcombine.low %v3475_v54, %v3482_v55 }
 0x132   : > { %13183 = vst [vmem:[#allocation34_spill] sm:$0xff] %v10003_v42  ;;  %1543 = vrot.lane.b32.xlu0 %v9991_v11, %s9110_s9  ;;  %v1966_v53 = vsel %vm1952_vm9, %v1893_v5, %v1366_v45 }
 0x133   : > { %v3461_v41 = vrot.slane %v3451_v15, %v9797_v57  ;;  %v1453_v33 = vpop.permute.xlu1 %1452  ;;  %v3498_v48 = vrot.slane %v3484_v1, %v9797_v57 }
 0x134   : > { %v1122_v24 = vpop.permute.xlu0 %1121  ;;  %v2039_v7 = vsel %vm2025_vm10, %v1966_v53, %v1453_v33 }
 0x135   : > { %v3483_v62 = vcombine.low %v3461_v41, %v3468_v13  ;;  %1228 = vrot.lane.b32.xlu1 %v9358_v9, %s9105_s19 }
 0x136   : > { %1141 = vrot.lane.b32.xlu0 %v9034_v19, %s9106_s20  ;;  %v9038_v19 = vld [vmem:[%s9192_s12 + $0x20] ss:$0 sps:$4 sm:$0x33]  }
 0x137   : > { %v1528_v36 = vpop.permute.xlu1 %1527  ;;  %v3491_v49 = vrot.slane %v3483_v62, %v9797_v57  ;;  %v1599_v45 = vsel %vm13141_vm5, %v9038_v19, %v9581_v46 }
 0x138   : > { %v10019_v12 = vsel %vm2098_vm11, %v2039_v7, %v1528_v36  ;;  %v1209_v8 = vpop.permute.xlu0 %1208  ;;  %v1672_v58 = vsel %vm1660_vm4, %v1599_v45, %v9731_v39 }
 0x139   : > { %v2396_v21 = vcombine.high %v10019_v12, %v10019_v12  ;;  %v2403_v9 = vrot.slane %v10019_v12, %v9797_v57  ;;  %1063 = vrot.lane.b32.xlu1 %v9872_v32, %s9104_s18  ;;  %v3499_v2 = vcombine.low %v3491_v49, %v3498_v48  ;;  %v6803_v32 = vshll.u32 %v9925_v63, 16 }
 0x13a   : > { %1303 = vrot.lane.b32.xlu0 %v9853_v20, %s9109_s24  ;;  %v1745_v61 = vsel %vm1733_vm6, %v1672_v58, %v1122_v24  ;;  %v6801_v49 = vshrl.u32 %v9925_v63, 16  ;;  %v8487_v58 = vcombine.high %v9969_v30, %v9954_v59 }
 0x13b   : > { %v10036_v55 = vrot.slane %v2396_v21, %v9797_v57  ;;  %v2411_v40 = vcombine.high %v2403_v9, %v2403_v9  ;;  %v2419_v15 = vrot.slane %v2403_v9, %v9797_v57  ;;  %v1364_v54 = vpop.permute.xlu1 %1363  ;;  %8696 = vmatmul.mubr.msk.bf16.gmra.mxu0 %vm4363_vm12, %v3499_v2  ;;  %v1818_v41 = vsel %vm1806_vm7, %v1745_v61, %v1209_v8 }
 0x13c   : > { %v1284_v46 = vpop.permute.xlu0 %1283  ;;  %8699 = vmatprep.mubr.msk.bf16.mxu0 %vm9112_vm3, %v13182_v3  ;;  %v6805_v62 = vrot.slane %v6803_v32, 1 }
 0x13d   : > { %v2433_v13 = vrot.slane %v2411_v40, %v9797_v57  ;;  %1143 = vrot.lane.b32.xlu1 %v9959_v38, %s9106_s20  ;;  %v1891_v39 = vsel %vm1879_vm8, %v1818_v41, %v1284_v46  ;;  %v10053_v5 = vrot.slane %v10036_v55, %v9797_v57  ;;  %v2441_v33 = vcombine.high %v2419_v15, %v2419_v15 }
 0x13e   : > { %1383 = vrot.lane.b32.xlu0 %v9963_v10, %s9107_s23  ;;  %v1964_v53 = vsel %vm1952_vm9, %v1891_v39, %v1364_v54  ;;  %v6806_v45 = vor.u32 %v6805_v62, %v6801_v49  ;;  %v9039_v54 = vld [vmem:[%s9192_s12 + $0x78] sm:$0xff]  }
 0x13f   : > { %v2443_v24 = vcombine.high %v2433_v13, %v2433_v13  ;;  %v1526_v1 = vpop.permute.xlu1 %1525  ;;  %v3502_v48 = vcombine.low %v2433_v13, %v2441_v33  ;;  %v1007_v32 = vrot.slane %v9039_v54, 1  ;;  %v10075_v13 = vld [vmem:[%s9192_s12 + $0x80] ss:$0 sps:$4 sm:$0x33]  }
 0x140   : > { %v1451_v7 = vpop.permute.xlu0 %1450  ;;  %v10078_v59 = vrot.slane %v10075_v13, 1 }
 0x141   : > { %v3503_v38 = vcombine.low %v2443_v24, %v10053_v5  ;;  %v2037_v36 = vsel %vm2025_vm10, %v1964_v53, %v1451_v7  ;;  %1230 = vrot.lane.b32.xlu1 %v9381_v37, %s9105_s19  ;;  %v3524_v30 = vrot.slane %v3502_v48, %v9797_v57  ;;  %v3510_v24 = vrot.slane %v8487_v58, %v9797_v57 }
 0x142   : > { %v2110_v8 = vsel %vm2098_vm11, %v2037_v36, %v1526_v1  ;;  %1470 = vrot.lane.b32.xlu0 %v9370_v31, %s9111_s10  ;;  %v9041_v1 = vld [vmem:[%s9192_s12 + $0x30] sm:$0xff]   ;;  %v10094_v7 = vsel %vm976_vm1, %v1007_v32, %v10078_v59  ;;  %v6813_v32 = vshll.u32 %v10019_v12, 16 }
 0x143   : > { %v2388_v21 = vrot.slane %v2110_v8, %v9797_v57  ;;  %v6807_v9 = vshll.u32 %v2110_v8, 16  ;;  %v1215_v19 = vpop.permute.xlu1 %1214  ;;  %v3531_v63 = vrot.slane %v3503_v38, %v9797_v57  ;;  %v1605_v62 = vsel %vm13141_vm5, %v9041_v1, %v9607_v25 }
 0x144   : > { %v1128_v2 = vpop.permute.xlu0 %1127  ;;  %v1678_v36 = vsel %vm1660_vm4, %v1605_v62, %v9749_v28 }
 0x145   : > { %v2395_v37 = vrot.slane %v2388_v21, %v9797_v57  ;;  %v6809_v40 = vrot.slane %v6807_v9, 1  ;;  %1305 = vrot.lane.b32.xlu1 %v9991_v11, %s9109_s24  ;;  %v1751_v8 = vsel %vm1733_vm6, %v1678_v36, %v1128_v2  ;;  %v9043_v36 = vld [vmem:[%s9192_s12 + $0x84] sm:$0xff]  }
 0x146   : > { %1545 = vrot.lane.b32.xlu0 %v9966_v0, %s9110_s9 }
 0x147   : > { %v3501_v61 = vcombine.low %v2395_v37, %v2419_v15  ;;  %v1290_v46 = vpop.permute.xlu1 %1289  ;;  %v10082_v41 = vsel %vm633_vm0, %v6806_v45, %v6809_v40  ;;  %v3533_v15 = vcombine.low %v3524_v30, %v3531_v63  ;;  %v1824_v45 = vsel %vm1806_vm7, %v1751_v8, %v1215_v19  ;;  %v9042_v40 = vld [vmem:[%s9192_s12 + $0x2c] ss:$0 sps:$4 sm:$0x33]  }
 0x148   : > { %13184 = vst [vmem:[#allocation35_spill] sm:$0xff] %v10082_v41  ;;  %v1126_v39 = vpop.permute.xlu0 %1125  ;;  %v1897_v28 = vsel %vm1879_vm8, %v1824_v45, %v1290_v46  ;;  %v1603_v19 = vsel %vm13141_vm5, %v9042_v40, %v9589_v14  ;;  %v2412_v63 = vcombine.high %v10036_v55, %v10036_v55  ;;  %v10147_v8 = vld [vmem:[%s9192_s12 + $0x8c] ss:$0 sps:$4 sm:$0x33]  }
 0x149   : > { %v3517_v33 = vrot.slane %v3501_v61, %v9797_v57  ;;  %1472 = vrot.lane.b32.xlu1 %v9392_v60, %s9111_s10  ;;  %v3547_v25 = vrot.slane %v3533_v15, %v9797_v57 }
 0x14a   : > { %1385 = vrot.lane.b32.xlu0 %v9039_v54, %s9107_s23 }
 0x14b   : > { %v1370_v53 = vpop.permute.xlu1 %1369  ;;  %v3532_v38 = vcombine.low %v3510_v24, %v3517_v33  ;;  %v2440_v24 = vrot.slane %v2412_v63, %v9797_v57 }
 0x14c   : > { %v1213_v49 = vpop.permute.xlu0 %1212 }
 0x14d   : > { %1067 = vrot.lane.b32.xlu1 %v9991_v11, %s9104_s18  ;;  %v3540_v48 = vrot.slane %v3532_v38, %v9797_v57  ;;  %v1970_v11 = vsel %vm1952_vm9, %v1897_v28, %v1370_v53 }
 0x14e   : > { %1547 = vrot.lane.b32.xlu0 %v10094_v7, %s9110_s9 }
 0x14f   : > { %v1457_v21 = vpop.permute.xlu1 %1456  ;;  %v3548_v9 = vcombine.low %v3540_v48, %v3547_v25  ;;  %v10150_v48 = vrot.slane %v10147_v8, 1 }
 0x150   : > { %v1288_v58 = vpop.permute.xlu0 %1287  ;;  %v2043_v2 = vsel %vm2025_vm10, %v1970_v11, %v1457_v21 }
 0x151   : > { %8700 = vmatmul.mubr.msk.bf16.gmra.mxu0 %vm4363_vm12, %v3548_v9  ;;  %1234 = vrot.lane.b32.xlu1 %v9392_v60, %s9105_s19 }
 0x152   : > { %1147 = vrot.lane.b32.xlu0 %v9039_v54, %s9106_s20  ;;  %8703 = vmatprep.mubr.msk.bf16.mxu0 %vm9112_vm3, %v13182_v3  ;;  %v1676_v54 = vsel %vm1660_vm4, %v1603_v19, %v9739_v26  ;;  %v6815_v26 = vrot.slane %v6813_v32, 1 }
 0x153   : > { %v1532_v37 = vpop.permute.xlu1 %1531  ;;  %v1749_v14 = vsel %vm1733_vm6, %v1676_v54, %v1126_v39 }
 0x154   : > { %v10122_v60 = vsel %vm2098_vm11, %v2043_v2, %v1532_v37  ;;  %v1368_v61 = vpop.permute.xlu0 %1367  ;;  %v1822_v55 = vsel %vm1806_vm7, %v1749_v14, %v1213_v49  ;;  %v1010_v49 = vrot.slane %v9043_v36, 1  ;;  %v2444_v37 = vcombine.high %v2440_v24, %v2440_v24 }
 0x155   : > { %v2466_v46 = vrot.slane %v10122_v60, %v9797_v57  ;;  %1065 = vrot.lane.b32.xlu1 %v9853_v20, %s9104_s18  ;;  %v1895_v15 = vsel %vm1879_vm8, %v1822_v55, %v1288_v58  ;;  %v2442_v20 = vcombine.high %v10053_v5, %v10053_v5  ;;  %v6811_v5 = vshrl.u32 %v10019_v12, 16 }
 0x156   : > { %1309 = vrot.lane.b32.xlu0 %v10094_v7, %s9109_s24  ;;  %v1968_v53 = vsel %vm1952_vm9, %v1895_v15, %v1368_v61  ;;  %v10164_v61 = vsel %vm976_vm1, %v1010_v49, %v10150_v48  ;;  %v2459_v14 = vcombine.high %v10122_v60, %v10122_v60 }
 0x157   : > { %v2474_v30 = vcombine.high %v2466_v46, %v2466_v46  ;;  %v1530_v33 = vpop.permute.xlu1 %1529  ;;  %v2482_v62 = vrot.slane %v2466_v46, %v9797_v57  ;;  %v3549_v11 = vcombine.low %v2440_v24, %v2442_v20  ;;  %v6816_v2 = vor.u32 %v6815_v26, %v6811_v5  ;;  %v9045_v24 = vld [vmem:[%s9192_s12 + $0x3c] sm:$0xff]  }
 0x158   : > { %v1455_v1 = vpop.permute.xlu0 %1454  ;;  %v1609_v26 = vsel %vm13141_vm5, %v9045_v24, %v9615_v43 }
 0x159   : > { %v2496_v39 = vrot.slane %v2474_v30, %v9797_v57  ;;  %1145 = vrot.lane.b32.xlu1 %v9963_v10, %s9106_s20  ;;  %v2041_v38 = vsel %vm2025_vm10, %v1968_v53, %v1455_v1  ;;  %v3559_v30 = vrot.slane %v3549_v11, %v9797_v57  ;;  %v1682_v1 = vsel %vm1660_vm4, %v1609_v26, %v9757_v35 }
 0x15a   : > { %1389 = vrot.lane.b32.xlu0 %v9043_v36, %s9107_s23  ;;  %v2114_v9 = vsel %vm2098_vm11, %v2041_v38, %v1530_v33  ;;  %v2473_v53 = vrot.slane %v2459_v14, %v9797_v57 }
 0x15b   : > { %v3551_v25 = vcombine.low %v2482_v62, %v2496_v39  ;;  %v8488_v21 = vcombine.high %v2482_v62, %v2496_v39  ;;  %v1219_v45 = vpop.permute.xlu1 %1218  ;;  %v2451_v10 = vrot.slane %v2114_v9, %v9797_v57  ;;  %v6817_v58 = vshll.u32 %v2114_v9, 16 }
 0x15c   : > { %v1132_v28 = vpop.permute.xlu0 %1131  ;;  %v2475_v9 = vcombine.high %v2473_v53, %v2473_v53 }
 0x15d   : > { %1232 = vrot.lane.b32.xlu1 %v9370_v31, %s9105_s19  ;;  %v3573_v40 = vrot.slane %v3551_v25, %v9797_v57  ;;  %v3580_v12 = vrot.slane %v8488_v21, %v9797_v57  ;;  %v2458_v19 = vrot.slane %v2451_v10, %v9797_v57  ;;  %v6819_v63 = vrot.slane %v6817_v58, 1 }
 0x15e   : > { %1476 = vrot.lane.b32.xlu0 %v9403_v22, %s9111_s10  ;;  %v1755_v39 = vsel %vm1733_vm6, %v1682_v1, %v1132_v28 }
 0x15f   : > { %v1294_v32 = vpop.permute.xlu1 %1293  ;;  %v3550_v54 = vcombine.low %v2444_v37, %v2458_v19  ;;  %v10167_v31 = vsel %vm633_vm0, %v6816_v2, %v6819_v63  ;;  %v3582_v33 = vcombine.low %v3573_v40, %v3580_v12  ;;  %v1828_v35 = vsel %vm1806_vm7, %v1755_v39, %v1219_v45  ;;  %v9046_v45 = vld [vmem:[%s9192_s12 + $0x38] ss:$0 sps:$4 sm:$0x33]  }
 0x160   : > { %v1130_v46 = vpop.permute.xlu0 %1129  ;;  %13185 = vst [vmem:[#allocation36_spill] sm:$0xff] %v10167_v31  ;;  %v1901_v21 = vsel %vm1879_vm8, %v1828_v35, %v1294_v32  ;;  %v1607_v28 = vsel %vm13141_vm5, %v9046_v45, %v9597_v6  ;;  %v2503_v40 = vrot.slane %v2475_v9, %v9797_v57  ;;  %v6823_v12 = vshll.u32 %v10122_v60, 16  ;;  %v10238_v35 = vld [vmem:[%s9192_s12 + $0x98] ss:$0 sps:$4 sm:$0x33]  }
 0x161   : > { %1307 = vrot.lane.b32.xlu1 %v9966_v0, %s9109_s24  ;;  %v3566_v55 = vrot.slane %v3550_v54, %v9797_v57  ;;  %v3596_v43 = vrot.slane %v3582_v33, %v9797_v57  ;;  %v1680_v37 = vsel %vm1660_vm4, %v1607_v28, %v9747_v52  ;;  %v2489_v54 = vrot.slane %v2473_v53, %v9797_v57  ;;  %v9049_v28 = vld [vmem:[%s9192_s12 + $0x48] sm:$0xff]  }
 0x162   : > { %1551 = vrot.lane.b32.xlu0 %v10164_v61, %s9110_s9  ;;  %v1753_v19 = vsel %vm1733_vm6, %v1680_v37, %v1130_v46  ;;  %v6825_v33 = vrot.slane %v6823_v12, 1 }
 0x163   : > { %v1374_v15 = vpop.permute.xlu1 %1373  ;;  %v3581_v62 = vcombine.low %v3559_v30, %v3566_v55  ;;  %v3598_v46 = vcombine.low %v2489_v54, %v2503_v40  ;;  %v8489_v24 = vcombine.high %v2489_v54, %v2503_v40 }
 0x164   : > { %v1217_v20 = vpop.permute.xlu0 %1216  ;;  %v1974_v10 = vsel %vm1952_vm9, %v1901_v21, %v1374_v15 }
 0x165   : > { %1387 = vrot.lane.b32.xlu1 %v10075_v13, %s9107_s23  ;;  %v3589_v38 = vrot.slane %v3581_v62, %v9797_v57  ;;  %v1826_v6 = vsel %vm1806_vm7, %v1753_v19, %v1217_v20  ;;  %v6821_v20 = vshrl.u32 %v10122_v60, 16  ;;  %v3608_v60 = vrot.slane %v3598_v46, %v9797_v57 }
 0x166   : > { %1071 = vrot.lane.b32.xlu0 %v10094_v7, %s9104_s18 }
 0x167   : > { %v1461_v49 = vpop.permute.xlu1 %1460  ;;  %v3597_v25 = vcombine.low %v3589_v38, %v3596_v43  ;;  %v6826_v38 = vor.u32 %v6825_v33, %v6821_v20  ;;  %v9047_v43 = vld [vmem:[%s9192_s12 + $0x90] sm:$0xff]  }
 0x168   : > { %v1292_v5 = vpop.permute.xlu0 %1291  ;;  %v2047_v7 = vsel %vm2025_vm10, %v1974_v10, %v1461_v49  ;;  %v1013_v49 = vrot.slane %v9047_v43, 1 }
 0x169   : > { %1474 = vrot.lane.b32.xlu1 %v9387_v50, %s9111_s10  ;;  %8704 = vmatmul.mubr.msk.bf16.gmra.mxu0 %vm4363_vm12, %v3597_v25  ;;  %v1899_v14 = vsel %vm1879_vm8, %v1826_v6, %v1292_v5  ;;  %v10241_v5 = vrot.slane %v10238_v35, 1 }
 0x16a   : > { %1151 = vrot.lane.b32.xlu0 %v9043_v36, %s9106_s20  ;;  %8707 = vmatprep.mubr.msk.bf16.mxu0 %vm9112_vm3, %v13182_v3 }
 0x16b   : > { %v1536_v58 = vpop.permute.xlu1 %1535  ;;  %v10262_v12 = vsel %vm976_vm1, %v1013_v49, %v10241_v5 }
 0x16c   : > { %v10204_v11 = vsel %vm2098_vm11, %v2047_v7, %v1536_v58  ;;  %v1372_v2 = vpop.permute.xlu0 %1371 }
 0x16d   : > { %v2529_v36 = vrot.slane %v10204_v11, %v9797_v57  ;;  %1549 = vrot.lane.b32.xlu1 %v10078_v59, %s9110_s9  ;;  %v1972_v30 = vsel %vm1952_vm9, %v1899_v14, %v1372_v2  ;;  %v1613_v2 = vsel %vm13141_vm5, %v9049_v28, %v9623_v29  ;;  %v2522_v37 = vcombine.high %v10204_v11, %v10204_v11 }
 0x16e   : > { %1238 = vrot.lane.b32.xlu0 %v9403_v22, %s9105_s19  ;;  %v1686_v6 = vsel %vm1660_vm4, %v1613_v2, %v9765_v27  ;;  %v6833_v49 = vshll.u32 %v10204_v11, 16 }
 0x16f   : > { %v2537_v63 = vcombine.high %v2529_v36, %v2529_v36  ;;  %v2545_v52 = vrot.slane %v2529_v36, %v9797_v57  ;;  %v1534_v32 = vpop.permute.xlu1 %1533 }
 0x170   : > { %v1459_v55 = vpop.permute.xlu0 %1458  ;;  %v6835_v2 = vrot.slane %v6833_v49, 1 }
 0x171   : > { %1069 = vrot.lane.b32.xlu1 %v9966_v0, %s9104_s18  ;;  %v2045_v22 = vsel %vm2025_vm10, %v1972_v30, %v1459_v55  ;;  %v10228_v26 = vrot.slane %v2537_v63, %v9797_v57  ;;  %v2567_v15 = vcombine.high %v2545_v52, %v2545_v52 }
 0x172   : > { %1313 = vrot.lane.b32.xlu0 %v10164_v61, %s9109_s24  ;;  %v2118_v62 = vsel %vm2098_vm11, %v2045_v22, %v1534_v32  ;;  %v2536_v32 = vrot.slane %v2522_v37, %v9797_v57 }
 0x173   : > { %v1223_v1 = vpop.permute.xlu1 %1222  ;;  %v2514_v39 = vrot.slane %v2118_v62, %v9797_v57  ;;  %v6827_v53 = vshll.u32 %v2118_v62, 16  ;;  %v3601_v25 = vcombine.low %v10228_v26, %v2567_v15  ;;  %v9050_v62 = vld [vmem:[%s9192_s12 + $0x44] ss:$0 sps:$4 sm:$0x33]  }
 0x174   : > { %v1136_v0 = vpop.permute.xlu0 %1135  ;;  %v2538_v22 = vcombine.high %v2536_v32, %v2536_v32 }
 0x175   : > { %1149 = vrot.lane.b32.xlu1 %v10075_v13, %s9106_s20  ;;  %v2521_v21 = vrot.slane %v2514_v39, %v9797_v57  ;;  %v6829_v9 = vrot.slane %v6827_v53, 1  ;;  %v3615_v13 = vrot.slane %v8489_v24, %v9797_v57  ;;  %v1759_v63 = vsel %vm1733_vm6, %v1686_v6, %v1136_v0 }
 0x176   : > { %1393 = vrot.lane.b32.xlu0 %v9047_v43, %s9107_s23  ;;  %v1832_v27 = vsel %vm1806_vm7, %v1759_v63, %v1223_v1  ;;  %v2552_v24 = vrot.slane %v2536_v32, %v9797_v57  ;;  %v1611_v0 = vsel %vm13141_vm5, %v9050_v62, %v9613_v16  ;;  %v13187_v16 = vld [vmem:[#allocation2_spill] sm:$0xff] }
 0x177   : > { %v1298_v10 = vpop.permute.xlu1 %1297  ;;  %v3600_v58 = vcombine.low %v2521_v21, %v2545_v52  ;;  %v10250_v45 = vsel %vm633_vm0, %v6826_v38, %v6829_v9  ;;  %v3630_v19 = vcombine.low %v3608_v60, %v3615_v13  ;;  %v1684_v38 = vsel %vm1660_vm4, %v1611_v0, %v9755_v18  ;;  %v10345_v0 = vld [vmem:[%s9192_s12 + $0xa4] ss:$0 sps:$4 sm:$0x33]  }
 0x178   : > { %v1134_v7 = vpop.permute.xlu0 %1133  ;;  %13186 = vst [vmem:[#allocation37_spill] sm:$0xff] %v10250_v45  ;;  %v1905_v46 = vsel %vm1879_vm8, %v1832_v27, %v1298_v10  ;;  %v2568_v21 = vcombine.high %v2552_v24, %v2552_v24 }
 0x179   : > { %1236 = vrot.lane.b32.xlu1 %v9387_v50, %s9105_s19  ;;  %v3622_v36 = vrot.slane %v3600_v58, %v9797_v57  ;;  %v3629_v50 = vrot.slane %v3601_v25, %v9797_v57  ;;  %v3638_v14 = vrot.slane %v3630_v19, %v9797_v57  ;;  %v2566_v25 = vrot.slane %v2538_v22, %v9797_v57 }
 0x17a   : > { %1480 = vrot.lane.b32.xlu0 %v9415_v51, %s9111_s10  ;;  %v1757_v9 = vsel %vm1733_vm6, %v1684_v38, %v1134_v7  ;;  %v6831_v7 = vshrl.u32 %v10204_v11, 16 }
 0x17b   : > { %v1378_v40 = vpop.permute.xlu1 %1377  ;;  %v3631_v52 = vcombine.low %v3622_v36, %v3629_v50  ;;  %v3648_v36 = vcombine.low %v2566_v25, %v2568_v21 }
 0x17c   : > { %v1221_v29 = vpop.permute.xlu0 %1220  ;;  %v1978_v15 = vsel %vm1952_vm9, %v1905_v46, %v1378_v40  ;;  %v6836_v32 = vor.u32 %v6835_v2, %v6831_v7  ;;  %v9054_v7 = vld [vmem:[%s9192_s12 + $0x54] sm:$0xff]  }
 0x17d   : > { %1311 = vrot.lane.b32.xlu1 %v10078_v59, %s9109_s24  ;;  %v3645_v55 = vrot.slane %v3631_v52, %v9797_v57  ;;  %v1830_v18 = vsel %vm1806_vm7, %v1757_v9, %v1221_v29  ;;  %v3664_v27 = vrot.slane %v3648_v36, %v9797_v57 }
 0x17e   : > { %1555 = vrot.lane.b32.xlu0 %v10262_v12, %s9110_s9 }
 0x17f   : > { %v1465_v54 = vpop.permute.xlu1 %1464  ;;  %v3646_v33 = vcombine.low %v3638_v14, %v3645_v55 }
 0x180   : > { %v1296_v30 = vpop.permute.xlu0 %1295  ;;  %v2051_v20 = vsel %vm2025_vm10, %v1978_v15, %v1465_v54  ;;  %v2570_v54 = vcombine.high %v2566_v25, %v2566_v25  ;;  %v10339_v15 = vld [vmem:[%s9192_s12 + $0x9c] sm:$0xff]  }
 0x181   : > { %1391 = vrot.lane.b32.xlu1 %v10147_v8, %s9107_s23  ;;  %8708 = vmatmul.mubr.msk.bf16.gmra.mxu0 %vm4363_vm12, %v3646_v33  ;;  %v1016_v62 = vrot.slane %v10339_v15, 1 }
 0x182   : > { %1075 = vrot.lane.b32.xlu0 %v10164_v61, %s9104_s18  ;;  %8711 = vmatprep.mubr.msk.bf16.mxu0 %vm9112_vm3, %v13182_v3  ;;  %v2569_v61 = vcombine.high %v10228_v26, %v10228_v26  ;;  %v1903_v26 = vsel %vm1879_vm8, %v1830_v18, %v1296_v30 }
 0x183   : > { %v1540_v1 = vpop.permute.xlu1 %1539 }
 0x184   : > { %v10289_v39 = vsel %vm2098_vm11, %v2051_v20, %v1540_v1  ;;  %v1376_v53 = vpop.permute.xlu0 %1375  ;;  %v3647_v28 = vcombine.low %v2569_v61, %v2552_v24 }
 0x185   : > { %v2592_v60 = vrot.slane %v10289_v39, %v9797_v57  ;;  %1478 = vrot.lane.b32.xlu1 %v13187_v16, %s9111_s10  ;;  %v1976_v37 = vsel %vm1952_vm9, %v1903_v26, %v1376_v53  ;;  %v10348_v53 = vrot.slane %v10345_v0, 1  ;;  %v2585_v61 = vcombine.high %v10289_v39, %v10289_v39 }
 0x186   : > { %1155 = vrot.lane.b32.xlu0 %v9047_v43, %s9106_s20 }
 0x187   : > { %v2600_v10 = vcombine.high %v2592_v60, %v2592_v60  ;;  %v1538_v13 = vpop.permute.xlu1 %1537  ;;  %v10319_v6 = vrot.slane %v2592_v60, %v9797_v57  ;;  %v10360_v21 = vsel %vm976_vm1, %v1016_v62, %v10348_v53 }
 0x188   : > { %v1463_v58 = vpop.permute.xlu0 %1462 }
 0x189   : > { %1553 = vrot.lane.b32.xlu1 %v10150_v48, %s9110_s9  ;;  %v10311_v40 = vrot.slane %v2600_v10, %v9797_v57  ;;  %v2049_v43 = vsel %vm2025_vm10, %v1976_v37, %v1463_v58  ;;  %v9053_v10 = vld [vmem:[%s9192_s12 + $0x50] ss:$0 sps:$4 sm:$0x33]   ;;  %v6843_v58 = vshll.u32 %v10289_v39, 16 }
 0x18a   : > { %1242 = vrot.lane.b32.xlu0 %v9415_v51, %s9105_s19  ;;  %v2122_v50 = vsel %vm2098_vm11, %v2049_v43, %v1538_v13  ;;  %v3657_v51 = vrot.slane %v3647_v28, %v9797_v57  ;;  %v1615_v13 = vsel %vm13141_vm5, %v9053_v10, %v9621_v44 }
 0x18b   : > { %v1138_v19 = vpop.permute.xlu1 %1137  ;;  %v2577_v29 = vrot.slane %v2122_v50, %v9797_v57  ;;  %v6837_v63 = vshll.u32 %v2122_v50, 16  ;;  %v3650_v11 = vcombine.low %v10319_v6, %v10311_v40  ;;  %v1688_v26 = vsel %vm1660_vm4, %v1615_v13, %v9763_v56  ;;  %v13189_v56 = vld [vmem:[#allocation3_spill] sm:$0xff] }
 0x18c   : > { %v1060_v52 = vpop.permute.xlu0 %1059  ;;  %v3679_v20 = vcombine.low %v3657_v51, %v3664_v27  ;;  %v1761_v28 = vsel %vm1733_vm6, %v1688_v26, %v1138_v19  ;;  %v1617_v50 = vsel %vm13141_vm5, %v9054_v7, %v9631_v4  ;;  %v6845_v19 = vrot.slane %v6843_v58, 1 }
 0x18d   : > { %1073 = vrot.lane.b32.xlu1 %v10078_v59, %s9104_s18  ;;  %v2584_v14 = vrot.slane %v2577_v29, %v9797_v57  ;;  %v6839_v55 = vrot.slane %v6837_v63, 1  ;;  %v3678_v59 = vrot.slane %v3650_v11, %v9797_v57  ;;  %v1690_v63 = vsel %vm1660_vm4, %v1617_v50, %v1060_v52 }
 0x18e   : > { %1317 = vrot.lane.b32.xlu0 %v10262_v12, %s9109_s24  ;;  %v3687_v49 = vrot.slane %v3679_v20, %v9797_v57  ;;  %v6841_v4 = vshrl.u32 %v10289_v39, 16 }
 0x18f   : > { %v1225_v30 = vpop.permute.xlu1 %1224  ;;  %v3649_v46 = vcombine.low %v2570_v54, %v2584_v14  ;;  %v10332_v22 = vsel %vm633_vm0, %v6836_v32, %v6839_v55 }
 0x190   : > { %v1140_v33 = vpop.permute.xlu0 %1139  ;;  %13188 = vst [vmem:[#allocation2_spill] sm:$0xff] %v10332_v22  ;;  %v1834_v44 = vsel %vm1806_vm7, %v1761_v28, %v1225_v30 }
 0x191   : > { %1153 = vrot.lane.b32.xlu1 %v10147_v8, %s9106_s20  ;;  %v3671_v24 = vrot.slane %v3649_v46, %v9797_v57  ;;  %v1763_v51 = vsel %vm1733_vm6, %v1690_v63, %v1140_v33  ;;  %v6846_v33 = vor.u32 %v6845_v19, %v6841_v4  ;;  %v10448_v63 = vld [vmem:[%s9192_s12 + $0xa8] sm:$0xff]  }
 0x192   : > { %1397 = vrot.lane.b32.xlu0 %v10339_v15, %s9107_s23 }
 0x193   : > { %v1300_v1 = vpop.permute.xlu1 %1299  ;;  %v3680_v38 = vcombine.low %v3671_v24, %v3678_v59 }
 0x194   : > { %v1227_v8 = vpop.permute.xlu0 %1226  ;;  %v1907_v43 = vsel %vm1879_vm8, %v1834_v44, %v1300_v1 }
 0x195   : > { %1240 = vrot.lane.b32.xlu1 %v13187_v16, %s9105_s19  ;;  %v3694_v60 = vrot.slane %v3680_v38, %v9797_v57  ;;  %v2599_v16 = vrot.slane %v2585_v61, %v9797_v57  ;;  %v1836_v27 = vsel %vm1806_vm7, %v1763_v51, %v1227_v8 }
 0x196   : > { %1484 = vrot.lane.b32.xlu0 %v9425_v17, %s9111_s10 }
 0x197   : > { %v1380_v25 = vpop.permute.xlu1 %1379  ;;  %v3695_v18 = vcombine.low %v3687_v49, %v3694_v60  ;;  %v2601_v36 = vcombine.high %v2599_v16, %v2599_v16  ;;  %v2615_v46 = vrot.slane %v2599_v16, %v9797_v57  ;;  %v8490_v49 = vcombine.high %v10319_v6, %v10311_v40 }
 0x198   : > { %v1302_v9 = vpop.permute.xlu0 %1301  ;;  %v1980_v29 = vsel %vm1952_vm9, %v1907_v43, %v1380_v25 }
 0x199   : > { %1315 = vrot.lane.b32.xlu1 %v10150_v48, %s9109_s24  ;;  %8712 = vmatmul.mubr.msk.bf16.gmra.mxu0 %vm4363_vm12, %v3695_v18  ;;  %v2629_v55 = vrot.slane %v2601_v36, %v9797_v57  ;;  %v1909_v52 = vsel %vm1879_vm8, %v1836_v27, %v1302_v9  ;;  %v3706_v13 = vrot.slane %v8490_v49, %v9797_v57 }
 0x19a   : > { %1559 = vrot.lane.b32.xlu0 %v10360_v21, %s9110_s9  ;;  %8715 = vmatprep.mubr.msk.bf16.mxu0 %vm9112_vm3, %v13182_v3  ;;  %v1619_v36 = vsel %vm13141_vm5, %v9904_v47, %v9629_v23  ;;  %v1019_v23 = vrot.slane %v10448_v63, 1  ;;  %v10454_v47 = vld [vmem:[%s9192_s12 + $0xb0] ss:$0 sps:$4 sm:$0x33]  }
 0x19b   : > { %v1467_v2 = vpop.permute.xlu1 %1466  ;;  %v3697_v62 = vcombine.low %v2615_v46, %v2629_v55  ;;  %v8491_v18 = vcombine.high %v2615_v46, %v2629_v55 }
 0x19c   : > { %v1382_v37 = vpop.permute.xlu0 %1381  ;;  %v2053_v32 = vsel %vm2025_vm10, %v1980_v29, %v1467_v2 }
 0x19d   : > { %1482 = vrot.lane.b32.xlu1 %v13189_v56, %s9111_s10  ;;  %v1982_v59 = vsel %vm1952_vm9, %v1909_v52, %v1382_v37  ;;  %v3713_v10 = vrot.slane %v3697_v62, %v9797_v57 }
 0x19e   : > { %1395 = vrot.lane.b32.xlu0 %v10238_v35, %s9107_s23 }
 0x19f   : > { %v1542_v54 = vpop.permute.xlu1 %1541  ;;  %v3728_v2 = vcombine.low %v3706_v13, %v3713_v10  ;;  %v13193_v10 = vld [vmem:[#allocation4_spill] sm:$0xff] }
 0x1a0   : > { %v2126_v11 = vsel %vm2098_vm11, %v2053_v32, %v1542_v54  ;;  %v1469_v14 = vpop.permute.xlu0 %1468  ;;  %v10457_v32 = vrot.slane %v10454_v47, 1 }
 0x1a1   : > { %v6847_v30 = vshll.u32 %v2126_v11, 16  ;;  %1557 = vrot.lane.b32.xlu1 %v10241_v5, %s9110_s9  ;;  %v2055_v39 = vsel %vm2025_vm10, %v1982_v59, %v1469_v14  ;;  %v2640_v8 = vrot.slane %v2126_v11, %v9797_v57  ;;  %v3736_v50 = vrot.slane %v3728_v2, %v9797_v57 }
 0x1a2   : > { %1079 = vrot.lane.b32.xlu0 %v10262_v12, %s9104_s18  ;;  %v10472_v59 = vsel %vm976_vm1, %v1019_v23, %v10457_v32 }
 0x1a3   : > { %v6849_v24 = vrot.slane %v6847_v30, 1  ;;  %v1062_v20 = vpop.permute.xlu1 %1061 }
 0x1a4   : > { %v1544_v1 = vpop.permute.xlu0 %1543 }
 0x1a5   : > { %v10404_v38 = vsel %vm2098_vm11, %v2055_v39, %v1544_v1  ;;  %1077 = vrot.lane.b32.xlu1 %v10150_v48, %s9104_s18  ;;  %v10409_v12 = vsel %vm633_vm0, %v6846_v33, %v6849_v24  ;;  %v2647_v48 = vrot.slane %v2640_v8, %v9797_v57  ;;  %v13191_v33 = vld [vmem:[#allocation6_spill] sm:$0xff] }
 0x1a6   : > { %13190 = vst [vmem:[#allocation3_spill] sm:$0xff] %v10409_v12  ;;  %v2655_v61 = vrot.slane %v10404_v38, %v9797_v57  ;;  %1159 = vrot.lane.b32.xlu0 %v10339_v15, %s9106_s20  ;;  %v2648_v40 = vcombine.high %v10404_v38, %v10404_v38  ;;  %v6853_v11 = vshll.u32 %v10404_v38, 16  ;;  %v13192_v8 = vld [vmem:[#allocation14_spill] sm:$0xff] }
 0x1a7   : > { %v1229_v60 = vpop.permute.xlu1 %1228 }
 0x1a8   : > { %v10418_v25 = vrot.slane %v2655_v61, %v9797_v57  ;;  %v1142_v9 = vpop.permute.xlu0 %1141  ;;  %v2663_v26 = vcombine.high %v2655_v61, %v2655_v61  ;;  %v1621_v61 = vsel %vm13141_vm5, %v9918_v34, %v13192_v8 }
 0x1a9   : > { %1157 = vrot.lane.b32.xlu1 %v10238_v35, %s9106_s20  ;;  %v3720_v35 = vrot.slane %v8491_v18, %v9797_v57 }
 0x1aa   : > { %1246 = vrot.lane.b32.xlu0 %v9425_v17, %s9105_s19  ;;  %v3699_v6 = vcombine.low %v2647_v48, %v10418_v25  ;;  %v2662_v17 = vrot.slane %v2648_v40, %v9797_v57  ;;  %v2685_v43 = vrot.slane %v2663_v26, %v9797_v57  ;;  %v2693_v52 = vcombine.high %v10418_v25, %v10418_v25 }
 0x1ab   : > { %v1064_v16 = vpop.permute.xlu1 %1063 }
 0x1ac   : > { %v1304_v58 = vpop.permute.xlu0 %1303  ;;  %v3727_v28 = vrot.slane %v3699_v6, %v9797_v57  ;;  %v2664_v54 = vcombine.high %v2662_v17, %v2662_v17  ;;  %v2678_v51 = vrot.slane %v2662_v17, %v9797_v57  ;;  %v2695_v4 = vcombine.high %v2685_v43, %v2685_v43 }
 0x1ad   : > { %1244 = vrot.lane.b32.xlu1 %v13189_v56, %s9105_s19  ;;  %v1692_v56 = vsel %vm1660_vm4, %v1619_v36, %v1062_v20  ;;  %v6855_v20 = vrot.slane %v6853_v11, 1  ;;  %v1694_v18 = vsel %vm1660_vm4, %v1621_v61, %v1064_v16  ;;  %v3745_v13 = vcombine.low %v2685_v43, %v2693_v52 }
 0x1ae   : > { %1321 = vrot.lane.b32.xlu0 %v10360_v21, %s9109_s24  ;;  %v3729_v37 = vcombine.low %v3720_v35, %v3727_v28  ;;  %v1765_v19 = vsel %vm1733_vm6, %v1692_v56, %v1142_v9  ;;  %v2694_v24 = vcombine.high %v2678_v51, %v2678_v51  ;;  %v2692_v62 = vrot.slane %v2664_v54, %v9797_v57 }
 0x1af   : > { %v1144_v44 = vpop.permute.xlu1 %1143  ;;  %v1838_v30 = vsel %vm1806_vm7, %v1765_v19, %v1229_v60  ;;  %v3746_v49 = vcombine.low %v2695_v4, %v2678_v51  ;;  %v6851_v9 = vshrl.u32 %v10404_v38, 16 }
 0x1b0   : > { %v1384_v7 = vpop.permute.xlu0 %1383  ;;  %v3743_v29 = vrot.slane %v3729_v37, %v9797_v57  ;;  %v1911_v46 = vsel %vm1879_vm8, %v1838_v30, %v1304_v58  ;;  %v1767_v40 = vsel %vm1733_vm6, %v1694_v18, %v1144_v44  ;;  %v2696_v38 = vcombine.high %v2692_v62, %v2692_v62 }
 0x1b1   : > { %1319 = vrot.lane.b32.xlu1 %v10241_v5, %s9109_s24  ;;  %v1984_v39 = vsel %vm1952_vm9, %v1911_v46, %v1384_v7  ;;  %v6856_v34 = vor.u32 %v6855_v20, %v6851_v9  ;;  %v3747_v28 = vcombine.low %v2692_v62, %v2694_v24  ;;  %v3762_v44 = vrot.slane %v3746_v49, %v9797_v57 }
 0x1b2   : > { %1401 = vrot.lane.b32.xlu0 %v10448_v63, %s9107_s23  ;;  %v3744_v55 = vcombine.low %v3736_v50, %v3743_v29  ;;  %v3755_v7 = vrot.slane %v3745_v13, %v9797_v57 }
 0x1b3   : > { %v1231_v14 = vpop.permute.xlu1 %1230  ;;  %v3769_v29 = vrot.slane %v3747_v28, %v9797_v57 }
 0x1b4   : > { %v1471_v27 = vpop.permute.xlu0 %1470  ;;  %8716 = vmatmul.mubr.msk.bf16.gmra.mxu0 %vm4363_vm12, %v3744_v55  ;;  %v1840_v58 = vsel %vm1806_vm7, %v1767_v40, %v1231_v14  ;;  %v3777_v51 = vcombine.low %v3755_v7, %v3762_v44  ;;  %v9057_v40 = vld [vmem:[%s9192_s12 + $0x6c] sm:$0xff]  }
 0x1b5   : > { %1399 = vrot.lane.b32.xlu1 %v10345_v0, %s9107_s23  ;;  %8719 = vmatprep.mubr.msk.bf16.mxu0 %vm9112_vm3, %v13182_v3  ;;  %v2057_v60 = vsel %vm2025_vm10, %v1984_v39, %v1471_v27 }
 0x1b6   : > { %1488 = vrot.lane.b32.xlu0 %v13191_v33, %s9111_s10  ;;  %v3785_v46 = vrot.slane %v3777_v51, %v9797_v57 }
 0x1b7   : > { %v1306_v1 = vpop.permute.xlu1 %1305 }
 0x1b8   : > { %v1546_v25 = vpop.permute.xlu0 %1545  ;;  %v1913_v35 = vsel %vm1879_vm8, %v1840_v58, %v1306_v1 }
 0x1b9   : > { %v2130_v48 = vsel %vm2098_vm11, %v2057_v60, %v1546_v25  ;;  %1486 = vrot.lane.b32.xlu1 %v13193_v10, %s9111_s10 }
 0x1ba   : > { %v2703_v6 = vrot.slane %v2130_v48, %v9797_v57  ;;  %v6857_v26 = vshll.u32 %v2130_v48, 16  ;;  %1563 = vrot.lane.b32.xlu0 %v10472_v59, %s9110_s9 }
 0x1bb   : > { %v1473_v16 = vpop.permute.xlu1 %1472 }
 0x1bc   : > { %v2710_v2 = vrot.slane %v2703_v6, %v9797_v57  ;;  %v6859_v17 = vrot.slane %v6857_v26, 1  ;;  %v1386_v37 = vpop.permute.xlu0 %1385  ;;  %v13195_v6 = vld [vmem:[#allocation16_spill] sm:$0xff] }
 0x1bd   : > { %v1986_v36 = vsel %vm1952_vm9, %v1913_v35, %v1386_v37  ;;  %1561 = vrot.lane.b32.xlu1 %v10348_v53, %s9110_s9  ;;  %v1625_v26 = vsel %vm13141_vm5, %v9057_v40, %v13195_v6 }
 0x1be   : > { %v3748_v43 = vcombine.low %v2696_v38, %v2710_v2  ;;  %1083 = vrot.lane.b32.xlu0 %v10360_v21, %s9104_s18  ;;  %v10502_v56 = vsel %vm633_vm0, %v6856_v34, %v6859_v17  ;;  %v2059_v23 = vsel %vm2025_vm10, %v1986_v36, %v1473_v16  ;;  %v10548_v2 = vld [vmem:[%s9192_s12 + $0xb4] sm:$0xff]   ;;  %v10554_v36 = vld [vmem:[%s9192_s12 + $0xbc] ss:$0 sps:$4 sm:$0x33]  }
 0x1bf   : > { %13194 = vst [vmem:[#allocation6_spill] sm:$0xff] %v10502_v56  ;;  %v1068_v50 = vpop.permute.xlu1 %1067  ;;  %v1022_v44 = vrot.slane %v10548_v2, 1 }
 0x1c0   : > { %v3776_v19 = vrot.slane %v3748_v43, %v9797_v57  ;;  %v1548_v54 = vpop.permute.xlu0 %1547  ;;  %v1698_v28 = vsel %vm1660_vm4, %v1625_v26, %v1068_v50  ;;  %v10557_v43 = vrot.slane %v10554_v36, 1 }
 0x1c1   : > { %v10508_v11 = vsel %vm2098_vm11, %v2059_v23, %v1548_v54  ;;  %1081 = vrot.lane.b32.xlu1 %v10241_v5, %s9104_s18 }
 0x1c2   : > { %v3778_v21 = vcombine.low %v3769_v29, %v3776_v19  ;;  %v2711_v14 = vcombine.high %v10508_v11, %v10508_v11  ;;  %v2718_v55 = vrot.slane %v10508_v11, %v9797_v57  ;;  %1163 = vrot.lane.b32.xlu0 %v10448_v63, %s9106_s20  ;;  %v6863_v26 = vshll.u32 %v10508_v11, 16 }
 0x1c3   : > { %v1235_v4 = vpop.permute.xlu1 %1234 }
 0x1c4   : > { %v2725_v27 = vrot.slane %v2711_v14, %v9797_v57  ;;  %v2726_v30 = vcombine.high %v2718_v55, %v2718_v55  ;;  %v1148_v52 = vpop.permute.xlu0 %1147  ;;  %v3792_v24 = vrot.slane %v3778_v21, %v9797_v57  ;;  %v2734_v20 = vrot.slane %v2718_v55, %v9797_v57  ;;  %v13196_v21 = vld [vmem:[#allocation8_spill] sm:$0xff] }
 0x1c5   : > { %1161 = vrot.lane.b32.xlu1 %v10345_v0, %s9106_s20  ;;  %v1771_v16 = vsel %vm1733_vm6, %v1698_v28, %v1148_v52 }
 0x1c6   : > { %v2727_v5 = vcombine.high %v2725_v27, %v2725_v27  ;;  %v2748_v39 = vrot.slane %v2726_v30, %v9797_v57  ;;  %1250 = vrot.lane.b32.xlu0 %v13191_v33, %s9105_s19  ;;  %v3793_v1 = vcombine.low %v3785_v46, %v3792_v24  ;;  %v2741_v8 = vrot.slane %v2725_v27, %v9797_v57 }
 0x1c7   : > { %v1066_v62 = vpop.permute.xlu1 %1065  ;;  %v1844_v23 = vsel %vm1806_vm7, %v1771_v16, %v1235_v4  ;;  %v10570_v30 = vsel %vm976_vm1, %v1022_v44, %v10557_v43 }
 0x1c8   : > { %v2755_v61 = vrot.slane %v2727_v5, %v9797_v57  ;;  %v3794_v49 = vcombine.low %v2734_v20, %v2748_v39  ;;  %v8492_v60 = vcombine.high %v2734_v20, %v2748_v39  ;;  %8720 = vmatmul.mubr.msk.bf16.gmra.mxu0 %vm4363_vm12, %v3793_v1  ;;  %v1310_v25 = vpop.permute.xlu0 %1309  ;;  %v13197_v5 = vld [vmem:[#allocation5_spill] sm:$0xff] }
 0x1c9   : > { %1248 = vrot.lane.b32.xlu1 %v13193_v10, %s9105_s19  ;;  %8723 = vmatprep.mubr.msk.bf16.mxu0 %vm9112_vm3, %v13182_v3  ;;  %v1917_v54 = vsel %vm1879_vm8, %v1844_v23, %v1310_v25 }
 0x1ca   : > { %v3796_v9 = vcombine.low %v2741_v8, %v2755_v61  ;;  %v8493_v33 = vcombine.high %v2741_v8, %v2755_v61  ;;  %v3804_v18 = vrot.slane %v3794_v49, %v9797_v57  ;;  %v3811_v48 = vrot.slane %v8492_v60, %v9797_v57  ;;  %1325 = vrot.lane.b32.xlu0 %v10472_v59, %s9109_s24  ;;  %v9060_v8 = vld [vmem:[%s9192_s12 + $0x68] ss:$0 sps:$4 sm:$0x33]   ;;  %v13198_v61 = vld [vmem:[#allocation13_spill] sm:$0xff] }
 0x1cb   : > { %v1146_v13 = vpop.permute.xlu1 %1145  ;;  %v1623_v49 = vsel %vm13141_vm5, %v9060_v8, %v13198_v61 }
 0x1cc   : > { %v1390_v10 = vpop.permute.xlu0 %1389  ;;  %v3818_v34 = vrot.slane %v3796_v9, %v9797_v57  ;;  %v3825_v58 = vrot.slane %v8493_v33, %v9797_v57  ;;  %v3826_v38 = vcombine.low %v3804_v18, %v3811_v48  ;;  %v1696_v33 = vsel %vm1660_vm4, %v1623_v49, %v1066_v62 }
 0x1cd   : > { %1323 = vrot.lane.b32.xlu1 %v10348_v53, %s9109_s24  ;;  %v4465_v35 = vpop.f32.mrf.mxu0  ;;  %v1990_v55 = vsel %vm1952_vm9, %v1917_v54, %v1390_v10  ;;  %v1769_v10 = vsel %vm1733_vm6, %v1696_v33, %v1146_v13 }
 0x1ce   : > { %1405 = vrot.lane.b32.xlu0 %v10548_v2, %s9107_s23  ;;  %v3827_v17 = vcombine.low %v3818_v34, %v3825_v58  ;;  %v3834_v29 = vrot.slane %v3826_v38, %v9797_v57 }
 0x1cf   : > { %v1233_v37 = vpop.permute.xlu1 %1232  ;;  %v8689_v7 = vpop.f32.mrf.mxu0 }
 0x1d0   : > { %v1477_v50 = vpop.permute.xlu0 %1476  ;;  %v3841_v19 = vrot.slane %v3827_v17, %v9797_v57  ;;  %v1842_v62 = vsel %vm1806_vm7, %v1769_v10, %v1233_v37 }
 0x1d1   : > { %1403 = vrot.lane.b32.xlu1 %v10454_v47, %s9107_s23  ;;  %v4468_v51 = vpop.f32.mrf.mxu0  ;;  %v2063_v4 = vsel %vm2025_vm10, %v1990_v55, %v1477_v50  ;;  %v6865_v50 = vrot.slane %v6863_v26, 1 }
 0x1d2   : > { %1492 = vrot.lane.b32.xlu0 %v13196_v21, %s9111_s10  ;;  %v3842_v14 = vcombine.low %v3834_v29, %v3841_v19 }
 0x1d3   : > { %v1308_v27 = vpop.permute.xlu1 %1307  ;;  %v8690_v52 = vpop.f32.mrf.mxu0 }
 0x1d4   : > { %8724 = vmatmul.mubr.msk.bf16.gmra.mxu0 %vm4363_vm12, %v3842_v14  ;;  %v1552_v46 = vpop.permute.xlu0 %1551  ;;  %v1915_v35 = vsel %vm1879_vm8, %v1842_v62, %v1308_v27  ;;  %v10625_v14 = vld [vmem:[%s13108_s5] ss:$0 sm:$0xff] }
 0x1d5   : > { %v10575_v24 = vsel %vm2098_vm11, %v2063_v4, %v1552_v46  ;;  %1490 = vrot.lane.b32.xlu1 %v13197_v5, %s9111_s10  ;;  %8727 = vmatprep.mubr.msk.bf16.mxu0 %vm9112_vm3, %v13182_v3 }
 0x1d6   : > { %v2774_v20 = vcombine.high %v10575_v24, %v10575_v24  ;;  %v2781_v39 = vrot.slane %v10575_v24, %v9797_v57  ;;  %1567 = vrot.lane.b32.xlu0 %v10570_v30, %s9110_s9 }
 0x1d7   : > { %v1388_v1 = vpop.permute.xlu1 %1387 }
 0x1d8   : > { %v2788_v60 = vrot.slane %v2774_v20, %v9797_v57  ;;  %v2789_v25 = vcombine.high %v2781_v39, %v2781_v39  ;;  %v10591_v9 = vpop.permute.xlu0 %1071  ;;  %v2797_v48 = vrot.slane %v2781_v39, %v9797_v57 }
 0x1d9   : > { %1565 = vrot.lane.b32.xlu1 %v10457_v32, %s9110_s9 }
 0x1da   : > { %v2790_v18 = vcombine.high %v2788_v60, %v2788_v60  ;;  %v2804_v40 = vrot.slane %v2788_v60, %v9797_v57  ;;  %v2811_v6 = vrot.slane %v2789_v25, %v9797_v57  ;;  %1087 = vrot.lane.b32.xlu0 %v10472_v59, %s9104_s18  ;;  %v2819_v17 = vcombine.high %v2797_v48, %v2797_v48 }
 0x1db   : > { %v1475_v34 = vpop.permute.xlu1 %1474  ;;  %v1988_v59 = vsel %vm1952_vm9, %v1915_v35, %v1388_v1  ;;  %v10656_v35 = vld [vmem:[%s9376_s17] sm:$0xff]  }
 0x1dc   : > { %v10605_v58 = vrot.slane %v2790_v18, %v9797_v57  ;;  %v2820_v38 = vcombine.high %v2804_v40, %v2804_v40  ;;  %v2821_v28 = vcombine.high %v2811_v6, %v2811_v6  ;;  %v1152_v16 = vpop.permute.xlu0 %1151  ;;  %v2061_v44 = vsel %vm2025_vm10, %v1988_v59, %v1475_v34  ;;  %v10662_v59 = vld [vmem:[%s9376_s17 + $0x8] ss:$0 sps:$4 sm:$0x33]  }
 0x1dd   : > { %1085 = vrot.lane.b32.xlu1 %v10348_v53, %s9104_s18  ;;  %v6861_v53 = vshrl.u32 %v10508_v11, 16  ;;  %v3844_v51 = vcombine.low %v2811_v6, %v2819_v17  ;;  %v13200_v6 = vld [vmem:[#allocation18_spill] sm:$0xff]  ;;  %v1025_v17 = vrot.slane %v10656_v35, 1 }
 0x1de   : > { %1167 = vrot.lane.b32.xlu0 %v10548_v2, %s9106_s20  ;;  %v3845_v13 = vcombine.low %v2821_v28, %v2804_v40  ;;  %v3846_v37 = vcombine.low %v10605_v58, %v2820_v38 }
 0x1df   : > { %v1550_v7 = vpop.permute.xlu1 %1549  ;;  %v6866_v20 = vor.u32 %v6865_v50, %v6861_v53  ;;  %v3860_v60 = vrot.slane %v3844_v51, %v9797_v57 }
 0x1e0   : > { %v2134_v29 = vsel %vm2098_vm11, %v2061_v44, %v1550_v7  ;;  %v1239_v19 = vpop.permute.xlu0 %1238  ;;  %v3867_v52 = vrot.slane %v3845_v13, %v9797_v57  ;;  %v3874_v46 = vrot.slane %v3846_v37, %v9797_v57  ;;  %v10665_v13 = vrot.slane %v10662_v59, 1 }
 0x1e1   : > { %v2766_v23 = vrot.slane %v2134_v29, %v9797_v57  ;;  %v6867_v54 = vshll.u32 %v2134_v29, 16  ;;  %1165 = vrot.lane.b32.xlu1 %v10454_v47, %s9106_s20 }
 0x1e2   : > { %1254 = vrot.lane.b32.xlu0 %v13196_v21, %s9105_s19  ;;  %v3876_v18 = vcombine.low %v3867_v52, %v3874_v46 }
 0x1e3   : > { %v2773_v55 = vrot.slane %v2766_v23, %v9797_v57  ;;  %v6869_v27 = vrot.slane %v6867_v54, 1  ;;  %v10628_v4 = vpop.permute.xlu1 %1069  ;;  %v4473_v11 = vpop.f32.mrf.mxu0 }
 0x1e4   : > { %v1314_v39 = vpop.permute.xlu0 %1313  ;;  %v10633_v21 = vadd.f32 %v10625_v14, %v4473_v11 }
 0x1e5   : > { %v3843_v1 = vcombine.low %v2773_v55, %v2797_v48  ;;  %1252 = vrot.lane.b32.xlu1 %v13197_v5, %s9105_s19  ;;  %v8693_v8 = vpop.f32.mrf.mxu0  ;;  %v10640_v61 = vsel %vm633_vm0, %v6866_v20, %v6869_v27  ;;  %v9061_v5 = vld [vmem:[%s9192_s12 + $0x78] sm:$0xff]   ;;  %v13201_v55 = vld [vmem:[#allocation10_spill] sm:$0xff]  ;;  %v9114_v27 = vmov 1983009808  }
 0x1e6   : > { %1329 = vrot.lane.b32.xlu0 %v10570_v30, %s9109_s24  ;;  %13199 = vst [vmem:[#allocation14_spill] sm:$0xff] %v10640_v61  ;;  %v4674_v25 = vmin.f32 %v10633_v21, 0.0  ;;  %v1629_v26 = vsel %vm13141_vm5, %v9061_v5, %v13200_v6  ;;  %v4954_v52 = vunpack.c.l.s4 %v9114_v27  ;;  %v9064_v5 = vld [vmem:[%s9192_s12 + $0x74] ss:$0 sps:$4 sm:$0x33]   ;;  %v13203_v6 = vld [vmem:[#allocation15_spill] sm:$0xff] }
 0x1e7   : > { %v3853_v49 = vrot.slane %v3843_v1, %v9797_v57  ;;  %v1150_v33 = vpop.permute.xlu1 %1149  ;;  %v4476_v48 = vpop.f32.mrf.mxu0  ;;  %v1702_v38 = vsel %vm1660_vm4, %v1629_v26, %v10591_v9  ;;  %v3890_v9 = vrot.slane %v3876_v18, %v9797_v57  ;;  %v13202_v1 = vld [vmem:[#allocation7_spill] sm:$0xff]  ;;  %v1627_v26 = vsel %vm13141_vm5, %v9064_v5, %v13203_v6 }
 0x1e8   : > { %v1394_v40 = vpop.permute.xlu0 %1393  ;;  %v4717_v34 = vmul.f32 1.442695, %v4674_v25  ;;  %v10649_v62 = vadd.f32 %v10625_v14, %v4476_v48  ;;  %v1775_v50 = vsel %vm1733_vm6, %v1702_v38, %v1152_v16  ;;  %v10681_v16 = vsel %vm976_vm1, %v1025_v17, %v10665_v13  ;;  %v13204_v38 = vld [vmem:[#allocation33_spill] sm:$0xff]  ;;  %v10951_v61 = vld [vmem:[%s9376_s17 + $0x2c] ss:$0 sps:$4 sm:$0x33]  }
 0x1e9   : > { %v3875_v10 = vcombine.low %v3853_v49, %v3860_v60  ;;  %1327 = vrot.lane.b32.xlu1 %v10457_v32, %s9109_s24  ;;  %v8694_v28 = vpop.f32.mrf.mxu0  ;;  %v1848_v23 = vsel %vm1806_vm7, %v1775_v50, %v1239_v19  ;;  %v4955_v60 = vunpack.c.0.s8 %v4954_v52  ;;  %vm4633_vm13 = vcmp.gt.f32.partialorder %v10633_v21, 0.0 }
 0x1ea   : > { %1409 = vrot.lane.b32.xlu0 %v10656_v35, %s9107_s23  ;;  %8955 = vpow2.f32 %v4717_v34  ;;  %v4675_v37 = vmin.f32 %v10649_v62, 0.0  ;;  %v1921_v51 = vsel %vm1879_vm8, %v1848_v23, %v1314_v39  ;;  %vm4634_vm14 = vcmp.gt.f32.partialorder %v10649_v62, 0.0 }
 0x1eb   : > { %v1237_v44 = vpop.permute.xlu1 %1236  ;;  %v3883_v7 = vrot.slane %v3875_v10, %v9797_v57  ;;  %v1994_v46 = vsel %vm1952_vm9, %v1921_v51, %v1394_v40  ;;  %v1700_v10 = vsel %vm1660_vm4, %v1627_v26, %v10628_v4  ;;  %v10710_v28 = vsub.s32 %v4955_v60, %v13204_v38 }
 0x1ec   : > { %v1481_v29 = vpop.permute.xlu0 %1480  ;;  %v4719_v54 = vmul.f32 1.442695, %v4675_v37  ;;  %v1773_v17 = vsel %vm1733_vm6, %v1700_v10, %v1150_v33  ;;  %v6873_v51 = vshll.u32 %v10575_v24, 16 }
 0x1ed   : > { %1407 = vrot.lane.b32.xlu1 %v10554_v36, %s9107_s23  ;;  %v3891_v53 = vcombine.low %v3883_v7, %v3890_v9  ;;  %v2067_v19 = vsel %vm2025_vm10, %v1994_v46, %v1481_v29  ;;  %v1846_v9 = vsel %vm1806_vm7, %v1773_v17, %v1237_v44  ;;  %v2822_v17 = vcombine.high %v10605_v58, %v10605_v58 }
 0x1ee   : > { %1496 = vrot.lane.b32.xlu0 %v13201_v55, %s9111_s10  ;;  %8957 = vpow2.f32 %v4719_v54 }
 0x1ef   : > { %v1312_v20 = vpop.permute.xlu1 %1311  ;;  %8728 = vmatmul.mubr.msk.bf16.gmra.mxu0 %vm4363_vm12, %v3891_v53 }
 0x1f0   : > { %v1556_v11 = vpop.permute.xlu0 %1555  ;;  %8731 = vmatprep.mubr.msk.bf16.mxu0 %vm9112_vm3, %v13182_v3  ;;  %v1919_v54 = vsel %vm1879_vm8, %v1846_v9, %v1312_v20 }
 0x1f1   : > { %v10687_v39 = vsel %vm2098_vm11, %v2067_v19, %v1556_v11  ;;  %1494 = vrot.lane.b32.xlu1 %v13202_v1, %s9111_s10 }
 0x1f2   : > { %v2837_v8 = vcombine.high %v10687_v39, %v10687_v39  ;;  %v2844_v49 = vrot.slane %v10687_v39, %v9797_v57  ;;  %1571 = vrot.lane.b32.xlu0 %v10681_v16, %s9110_s9 }
 0x1f3   : > { %v1392_v25 = vpop.permute.xlu1 %1391 }
 0x1f4   : > { %v2851_v18 = vrot.slane %v2837_v8, %v9797_v57  ;;  %v2852_v48 = vcombine.high %v2844_v49, %v2844_v49  ;;  %v10698_v40 = vpop.permute.xlu0 %1075  ;;  %v2860_v33 = vrot.slane %v2844_v49, %v9797_v57  ;;  %v1992_v53 = vsel %vm1952_vm9, %v1919_v54, %v1392_v25 }
 0x1f5   : > { %1089 = vrot.lane.b32.xlu1 %v10457_v32, %s9104_s18 }
 0x1f6   : > { %v2853_v34 = vcombine.high %v2851_v18, %v2851_v18  ;;  %1569 = vrot.lane.b32.xlu0 %v10557_v43, %s9110_s9  ;;  %v10715_v50 = vrot.slane %v2851_v18, %v9797_v57  ;;  %v2874_v32 = vrot.slane %v2852_v48, %v9797_v57 }
 0x1f7   : > { %v1479_v37 = vpop.permute.xlu1 %1478  ;;  %v8956_v7 = vpop.eup %8955 }
 0x1f8   : > { %v10719_v4 = vrot.slane %v2853_v34, %v9797_v57  ;;  %v10721_v29 = vpop.permute.xlu0 %1155  ;;  %v8528_v23 = vadd.f32 -1.0, %v8956_v7  ;;  %v2065_v52 = vsel %vm2025_vm10, %v1992_v53, %v1479_v37  ;;  %v8494_v8 = vcombine.high %v2860_v33, %v2874_v32 }
 0x1f9   : > { %1169 = vrot.lane.b32.xlu1 %v10554_v36, %s9106_s20  ;;  %v3893_v6 = vcombine.low %v2860_v33, %v2874_v32 }
 0x1fa   : > { %v3895_v44 = vcombine.low %v10715_v50, %v10719_v4  ;;  %1091 = vrot.lane.b32.xlu0 %v10570_v30, %s9104_s18  ;;  %v4838_v27 = vsel %vm4633_vm13, %v10633_v21, %v8528_v23 }
 0x1fb   : > { %v1554_v46 = vpop.permute.xlu1 %1553  ;;  %v8958_v20 = vpop.eup %8957  ;;  %v4952_v19 = vcombine.high %v4838_v27, %v4838_v27  ;;  %v4959_v11 = vrot.slane %v4838_v27, %v10710_v28  ;;  %v6871_v27 = vshrl.u32 %v10575_v24, 16 }
 0x1fc   : > { %v2138_v49 = vsel %vm2098_vm11, %v2065_v52, %v1554_v46  ;;  %v4481_v60 = vpop.f32.mrf.mxu0  ;;  %v1243_v18 = vpop.permute.xlu0 %1242  ;;  %v8529_v25 = vadd.f32 -1.0, %v8958_v20  ;;  %v3923_v10 = vrot.slane %v3895_v44, %v9797_v57  ;;  %v3909_v46 = vrot.slane %v3893_v6, %v9797_v57 }
 0x1fd   : > { %v2829_v30 = vrot.slane %v2138_v49, %v9797_v57  ;;  %v10741_v48 = vadd.f32 %v10625_v14, %v4481_v60  ;;  %1256 = vrot.lane.b32.xlu1 %v13202_v1, %s9105_s19  ;;  %v4966_v21 = vrot.slane %v4952_v19, %v10710_v28  ;;  %v4967_v5 = vcombine.high %v4959_v11, %v4959_v11 }
 0x1fe   : > { %v8697_v26 = vpop.f32.mrf.mxu0  ;;  %1171 = vrot.lane.b32.xlu0 %v10656_v35, %s9106_s20  ;;  %v10750_v34 = vsel %vm4634_vm14, %v10649_v62, %v8529_v25  ;;  %v6877_v7 = vshll.u32 %v2138_v49, 16  ;;  %v3916_v35 = vrot.slane %v8494_v8, %v9797_v57  ;;  %v6875_v62 = vrot.slane %v6873_v51, 1 }
 0x1ff   : > { %v2836_v37 = vrot.slane %v2829_v30, %v9797_v57  ;;  %v10755_v1 = vpop.permute.xlu1 %1073  ;;  %v5950_v9 = vcombine.low %v4967_v5, %v4966_v21  ;;  %v4968_v23 = vcombine.high %v4966_v21, %v4966_v21  ;;  %v10759_v32 = vrot.slane %v10750_v34, %v10710_v28  ;;  %v9065_v21 = vld [vmem:[%s9192_s12 + $0x84] sm:$0xff]   ;;  %v13205_v5 = vld [vmem:[#allocation20_spill] sm:$0xff] }
 0x200   : > { %v4484_v54 = vpop.f32.mrf.mxu0  ;;  %v1318_v33 = vpop.permute.xlu0 %1317  ;;  %v4676_v53 = vmin.f32 %v10741_v48, 0.0  ;;  %v3925_v51 = vcombine.low %v3916_v35, %v3923_v10  ;;  %v6879_v11 = vrot.slane %v6877_v7, 1  ;;  %v1633_v6 = vsel %vm13141_vm5, %v9065_v21, %v13205_v5  ;;  %v9070_v21 = vld [vmem:[%s9192_s12 + $0x98] ss:$0 sps:$4 sm:$0x33]  }
 0x201   : > { %v3892_v44 = vcombine.low %v2822_v17, %v2836_v37  ;;  %v10764_v58 = vadd.f32 %v10625_v14, %v4484_v54  ;;  %1331 = vrot.lane.b32.xlu1 %v10557_v43, %s9109_s24  ;;  %v5951_v52 = vcombine.low %v4968_v23, %v10759_v32  ;;  %v5958_v25 = vrot.slane %v5950_v9, %v10710_v28  ;;  %v13210_v5 = vld [vmem:[#allocation21_spill] sm:$0xff] }
 0x202   : > { %v8698_v20 = vpop.f32.mrf.mxu0  ;;  %1258 = vrot.lane.b32.xlu0 %v13201_v55, %s9105_s19  ;;  %v4721_v8 = vmul.f32 1.442695, %v4676_v53  ;;  %v6876_v26 = vor.u32 %v6875_v62, %v6871_v27  ;;  %v1706_v10 = vsel %vm1660_vm4, %v1633_v6, %v10698_v40  ;;  %v3939_v23 = vrot.slane %v3925_v51, %v9797_v57  ;;  %v9066_v27 = vld [vmem:[%s9192_s12 + $0x80] ss:$0 sps:$4 sm:$0x33]   ;;  %v10803_v51 = vld [vmem:[%s9376_s17 + $0xc] sm:$0xff]  }
 0x203   : > { %v3902_v19 = vrot.slane %v3892_v44, %v9797_v57  ;;  %v4677_v49 = vmin.f32 %v10764_v58, 0.0  ;;  %v1154_v60 = vpop.permute.xlu1 %1153  ;;  %v5965_v24 = vrot.slane %v5951_v52, %v10710_v28  ;;  %v1779_v54 = vsel %vm1733_vm6, %v1706_v10, %v10721_v29  ;;  %v13207_v44 = vld [vmem:[#allocation9_spill] sm:$0xff]  ;;  %v9071_v6 = vld [vmem:[%s9192_s12 + $0x90] sm:$0xff]  }
 0x204   : > { %v1398_v30 = vpop.permute.xlu0 %1397  ;;  %8959 = vpow2.f32 %v4721_v8  ;;  %v10791_v35 = vsel %vm633_vm0, %v6876_v26, %v6879_v11  ;;  %v1852_v40 = vsel %vm1806_vm7, %v1779_v54, %v1243_v18  ;;  %v13208_v52 = vld [vmem:[#allocation17_spill] sm:$0xff]  ;;  %v10811_v11 = vld [vmem:[%s9376_s17 + $0x14] ss:$0 sps:$4 sm:$0x33]   ;;  %v13211_v26 = vld [vmem:[#allocation22_spill] sm:$0xff]  ;;  %v4969_v54 = vcombine.high %v10750_v34, %v10750_v34 }
 0x205   : > { %v3924_v17 = vcombine.low %v3902_v19, %v3909_v46  ;;  %1411 = vrot.lane.b32.xlu1 %v10662_v59, %s9107_s23  ;;  %v10782_v55 = vcombine.low %v5958_v25, %v5965_v24  ;;  %v4723_v37 = vmul.f32 1.442695, %v4677_v49  ;;  %13206 = vst [vmem:[#allocation4_spill] sm:$0xff] %v10791_v35  ;;  %v1631_v46 = vsel %vm13141_vm5, %v9066_v27, %v13208_v52  ;;  %v10817_v49 = vld [vmem:[%s9376_s17 + $0x18] sm:$0xff]   ;;  %v13209_v25 = vld [vmem:[#allocation19_spill] sm:$0xff]  ;;  %v13213_v52 = vld [vmem:[#allocation12_spill] sm:$0xff] }
 0x206   : > { %1333 = vrot.lane.b32.xlu0 %v10681_v16, %s9109_s24  ;;  %v1925_v20 = vsel %vm1879_vm8, %v1852_v40, %v1318_v33  ;;  %v1028_v19 = vrot.slane %v10803_v51, 1  ;;  %v10814_v8 = vrot.slane %v10811_v11, 1  ;;  %v9069_v33 = vld [vmem:[%s9192_s12 + $0x8c] ss:$0 sps:$4 sm:$0x33]   ;;  %v1704_v40 = vsel %vm1660_vm4, %v1631_v46, %v10755_v1  ;;  %v13214_v1 = vld [vmem:[#allocation24_spill] sm:$0xff] }
 0x207   : > { %v1241_v7 = vpop.permute.xlu1 %1240  ;;  %v3932_v9 = vrot.slane %v3924_v17, %v9797_v57  ;;  %8961 = vpow2.f32 %v4723_v37  ;;  %v1998_v29 = vsel %vm1952_vm9, %v1925_v20, %v1398_v30  ;;  %v10822_v24 = vsel %vm13141_vm5, %v9069_v33, %v13209_v25  ;;  %v13215_v25 = vld [vmem:[#allocation25_spill] sm:$0xff] }
 0x208   : > { %v1485_v62 = vpop.permute.xlu0 %1484  ;;  %v10827_v30 = vsel %vm13141_vm5, %v9070_v21, %v13210_v5  ;;  %v10832_v17 = vsel %vm13141_vm5, %v9071_v6, %v13211_v26  ;;  %v1777_v27 = vsel %vm1733_vm6, %v1704_v40, %v1154_v60  ;;  %v5629_v34 = vadd.s32 16, %v13204_v38  ;;  %v13218_v26 = vld [vmem:[#allocation27_spill] sm:$0xff] }
 0x209   : > { %1498 = vrot.lane.b32.xlu1 %v13207_v44, %s9111_s10  ;;  %v3940_v53 = vcombine.low %v3932_v9, %v3939_v23  ;;  %v2071_v10 = vsel %vm2025_vm10, %v1998_v29, %v1485_v62  ;;  %v13212_v9 = vld [vmem:[#allocation23_spill] sm:$0xff]  ;;  %v10852_v62 = vadd.s32 4294967295, %v13204_v38  ;;  %v10863_v46 = vsel %vm13141_vm5, %v10339_v15, %v13214_v1  ;;  %v13217_v38 = vld [vmem:[#allocation26_spill] sm:$0xff] }
 0x20a   : > { %1413 = vrot.lane.b32.xlu0 %v10803_v51, %s9107_s23  ;;  %v10840_v23 = vsel %vm13141_vm5, %v10345_v0, %v13212_v9  ;;  %v1850_v20 = vsel %vm1806_vm7, %v1777_v27, %v1241_v7  ;;  %v10868_v60 = vsel %vm976_vm1, %v1028_v19, %v10814_v8  ;;  %v1186_v33 = vshll.u32 %v10817_v49, 16 }
 0x20b   : > { %v1316_v18 = vpop.permute.xlu1 %1315  ;;  %8732 = vmatmul.mubr.msk.bf16.gmra.mxu0 %vm4363_vm12, %v3940_v53  ;;  %v10874_v21 = vsel %vm13141_vm5, %v10454_v47, %v13215_v25  ;;  %v10879_v15 = vsel %vm13141_vm5, %v10448_v63, %v13217_v38  ;;  %v10885_v19 = vsel %vm13141_vm5, %v10554_v36, %v13218_v26  ;;  %v4984_v47 = vcombine.high %v10759_v32, %v10759_v32  ;;  %v10894_v63 = vld [vmem:[%s9376_s17 + $0x24] sm:$0xff]   ;;  %v10909_v25 = vld [vmem:[%s9376_s17 + $0x20] ss:$0 sps:$4 sm:$0x33]  }
 0x20c   : > { %v1560_v37 = vpop.permute.xlu0 %1559  ;;  %8735 = vmatprep.mubr.msk.bf16.mxu0 %vm9112_vm3, %v13182_v3  ;;  %13216 = vst [vmem:[#allocation16_spill] sm:$0xff] %v10874_v21  ;;  %v1923_v5 = vsel %vm1879_vm8, %v1850_v20, %v1316_v18  ;;  %13219 = vst [vmem:[#allocation8_spill] sm:$0xff] %v10885_v19  ;;  %vm5687_vm15 = vcmp.ge.s32.totalorder %v10852_v62, 0  ;;  %v1184_v32 = vshrl.u32 %v10817_v49, 16  ;;  %v1188_v38 = vrot.slane %v1186_v33, 1 }
 0x20d   : > { %v10847_v53 = vsel %vm2098_vm11, %v2071_v10, %v1560_v37  ;;  %1573 = vrot.lane.b32.xlu1 %v10665_v13, %s9110_s9  ;;  %v4983_v10 = vrot.slane %v4969_v54, %v10710_v28  ;;  %v10902_v54 = vadd.s32 4294967295, %v5629_v34  ;;  %vm4635_vm13 = vcmp.gt.f32.partialorder %v10741_v48, 0.0 }
 0x20e   : > { %v2907_v0 = vrot.slane %v10847_v53, %v9797_v57  ;;  %1500 = vrot.lane.b32.xlu0 %v13213_v52, %s9111_s10  ;;  %v2900_v36 = vcombine.high %v10847_v53, %v10847_v53  ;;  %v1191_v35 = vshll.u32 %v10909_v25, 16  ;;  %vm4636_vm14 = vcmp.gt.f32.partialorder %v10764_v58, 0.0 }
 0x20f   : > { %v1483_v29 = vpop.permute.xlu1 %1482  ;;  %v4985_v33 = vcombine.high %v4983_v10, %v4983_v10 }
 0x210   : > { %v2915_v7 = vcombine.high %v2907_v0, %v2907_v0  ;;  %v1396_v6 = vpop.permute.xlu0 %1395 }
 0x211   : > { %v1996_v37 = vsel %vm1952_vm9, %v1923_v5, %v1396_v6  ;;  %v4489_v9 = vpop.f32.mrf.mxu0  ;;  %1093 = vrot.lane.b32.xlu1 %v10557_v43, %s9104_s18  ;;  %v8960_v18 = vpop.eup %8959  ;;  %v2923_v5 = vrot.slane %v2907_v0, %v9797_v57  ;;  %v1428_v0 = vshll.u32 %v10894_v63, 16 }
 0x212   : > { %1575 = vrot.lane.b32.xlu0 %v10868_v60, %s9110_s9  ;;  %v8530_v40 = vadd.f32 -1.0, %v8960_v18  ;;  %v10905_v27 = vadd.f32 %v10625_v14, %v4489_v9  ;;  %v2069_v20 = vsel %vm2025_vm10, %v1996_v37, %v1483_v29  ;;  %v2937_v6 = vrot.slane %v2915_v7, %v9797_v57 }
 0x213   : > { %v8701_v43 = vpop.f32.mrf.mxu0  ;;  %v1558_v1 = vpop.permute.xlu1 %1557  ;;  %v5967_v9 = vcombine.low %v4984_v47, %v4983_v10  ;;  %v13220_v47 = vld [vmem:[#allocation28_spill] sm:$0xff]  ;;  %v2945_v22 = vcombine.high %v2923_v5, %v2923_v5 }
 0x214   : > { %v10915_v34 = vsel %vm2098_vm11, %v2069_v20, %v1558_v1  ;;  %v10917_v26 = vpop.permute.xlu0 %1079  ;;  %v10920_v18 = vsel %vm4635_vm13, %v10741_v48, %v8530_v40  ;;  %v4678_v29 = vmin.f32 %v10905_v27, 0.0  ;;  %v10931_v43 = vrot.slane %v2900_v36, %v9797_v57  ;;  %v13222_v40 = vld [vmem:[#allocation29_spill] sm:$0xff]  ;;  %v8962_v56 = vpop.eup %8961 }
 0x215   : > { %v4492_v37 = vpop.f32.mrf.mxu0  ;;  %1260 = vrot.lane.b32.xlu1 %v13207_v44, %s9105_s19  ;;  %v10928_v7 = vrot.slane %v10920_v18, %v10710_v28  ;;  %v2892_v48 = vrot.slane %v10915_v34, %v9797_v57  ;;  %v10940_v44 = vsel %vm13141_vm5, %v10548_v2, %v13220_v47  ;;  %v10945_v10 = vsel %vm13141_vm5, %v10662_v59, %v13222_v40 }
 0x216   : > { %1173 = vrot.lane.b32.xlu0 %v10662_v59, %s9106_s20  ;;  %13221 = vst [vmem:[#allocation5_spill] sm:$0xff] %v10940_v44  ;;  %13223 = vst [vmem:[#allocation13_spill] sm:$0xff] %v10945_v10  ;;  %v4725_v1 = vmul.f32 1.442695, %v4678_v29  ;;  %v2947_v45 = vcombine.high %v2937_v6, %v2937_v6  ;;  %v10956_v47 = vor.u32 %v1188_v38, %v1184_v32  ;;  %v1426_v40 = vshrl.u32 %v10894_v63, 16 }
 0x217   : > { %v8702_v20 = vpop.f32.mrf.mxu0  ;;  %v10947_v36 = vpop.permute.xlu1 %1077  ;;  %v5968_v12 = vcombine.low %v4985_v33, %v10928_v7  ;;  %v8495_v59 = vcombine.high %v10715_v50, %v10719_v4  ;;  %v2899_v29 = vrot.slane %v2892_v48, %v9797_v57  ;;  %v10968_v31 = vrot.slane %v10931_v43, %v9797_v57 }
 0x218   : > { %v10954_v2 = vpop.permute.xlu0 %1159  ;;  %8963 = vpow2.f32 %v4725_v1  ;;  %v5975_v20 = vrot.slane %v5967_v9, %v10710_v28  ;;  %v1430_v50 = vrot.slane %v1428_v0, 1  ;;  %v8531_v4 = vadd.f32 -1.0, %v8962_v56 }
 0x219   : > { %1095 = vrot.lane.b32.xlu1 %v10681_v16, %s9104_s18  ;;  %v5982_v33 = vrot.slane %v5968_v12, %v10710_v28  ;;  %v3942_v32 = vcombine.low %v2899_v29, %v2923_v5  ;;  %v10973_v38 = vadd.f32 %v10625_v14, %v4492_v37  ;;  %v1433_v48 = vshll.u32 %v10951_v61, 16 }
 0x21a   : > { %1335 = vrot.lane.b32.xlu0 %v10665_v13, %s9109_s24  ;;  %v6883_v9 = vshll.u32 %v10687_v39, 16  ;;  %v3943_v1 = vcombine.low %v2937_v6, %v2945_v22  ;;  %v3944_v41 = vcombine.low %v2947_v45, %v10968_v31  ;;  %v6704_v56 = vsel %vm5687_vm15, %v10782_v55, 0.0 }
 0x21b   : > { %v10975_v16 = vpop.permute.xlu1 %1157  ;;  %v5983_v12 = vcombine.low %v5975_v20, %v5982_v33  ;;  %v3951_v5 = vrot.slane %v8495_v59, %v9797_v57  ;;  %v3958_v37 = vrot.slane %v3942_v32, %v9797_v57  ;;  %v4679_v0 = vmin.f32 %v10973_v38, 0.0 }
 0x21c   : > { %v10980_v42 = vpop.permute.xlu0 %1246  ;;  %v6887_v45 = vshll.u32 %v10915_v34, 16  ;;  %v1193_v22 = vrot.slane %v1191_v35, 1  ;;  %v4841_v55 = vsel %vm4636_vm14, %v10764_v58, %v8531_v4  ;;  %v1270_v33 = vrot.slane %v10817_v49, 1 }
 0x21d   : > { %1175 = vrot.lane.b32.xlu1 %v10803_v51, %s9106_s20  ;;  %v10990_v29 = vpack.c.bf16 %v5983_v12, %v6704_v56  ;;  %v3973_v6 = vcombine.low %v3951_v5, %v3958_v37  ;;  %v4727_v59 = vmul.f32 1.442695, %v4679_v0  ;;  %v6885_v32 = vrot.slane %v6883_v9, 1  ;;  %v13225_v37 = vld [vmem:[#allocation11_spill] sm:$0xff] }
 0x21e   : > { %1415 = vrot.lane.b32.xlu0 %v10811_v11, %s9107_s23  ;;  %v4986_v51 = vcombine.high %v10920_v18, %v10920_v18  ;;  %v3965_v56 = vrot.slane %v3943_v1, %v9797_v57  ;;  %v3972_v34 = vrot.slane %v3944_v41, %v9797_v57  ;;  %v6881_v10 = vshrl.u32 %v10687_v39, 16 }
 0x21f   : > { %13224 = vst [vmem:[#allocation18_spill] sm:$0xff] %v10990_v29  ;;  %v10997_v20 = vpop.permute.xlu1 %1244  ;;  %v11008_v58 = vrot.slane %v10909_v25, 1  ;;  %v1431_v35 = vor.u32 %v1430_v50, %v1426_v40  ;;  %v1435_v4 = vrot.slane %v1433_v48, 1  ;;  %v5003_v5 = vcombine.high %v4841_v55, %v4841_v55 }
 0x220   : > { %v1322_v12 = vpop.permute.xlu0 %1321  ;;  %v6889_v9 = vrot.slane %v6887_v45, 1  ;;  %v3974_v18 = vcombine.low %v3965_v56, %v3972_v34  ;;  %v3981_v1 = vrot.slane %v3973_v6, %v9797_v57  ;;  %v5010_v41 = vrot.slane %v4841_v55, %v10710_v28 }
 0x221   : > { %1262 = vrot.lane.b32.xlu1 %v13213_v52, %s9105_s19  ;;  %8965 = vpow2.f32 %v4727_v59  ;;  %v1512_v52 = vrot.slane %v10894_v63, 1  ;;  %v6886_v19 = vor.u32 %v6885_v32, %v6881_v10  ;;  %v5000_v40 = vrot.slane %v4986_v51, %v10710_v28 }
 0x222   : > { %1502 = vrot.lane.b32.xlu0 %v13225_v37, %s9111_s10  ;;  %v3988_v50 = vrot.slane %v3974_v18, %v9797_v57  ;;  %vm5746_vm13 = vcmp.lt.s32.totalorder %v10902_v54, 16  ;;  %v1195_v45 = vshrl.u32 %v10909_v25, 16  ;;  %v11026_v55 = vsel %vm633_vm0, %v10956_v47, %v1193_v22 }
 0x223   : > { %v11014_v39 = vpop.permute.xlu1 %1319  ;;  %v11030_v6 = vsel %vm976_vm1, %v1270_v33, %v11008_v58  ;;  %v1437_v10 = vshrl.u32 %v10951_v61, 16  ;;  %v5017_v32 = vrot.slane %v5003_v5, %v10710_v28  ;;  %v6893_v51 = vshll.u32 %v10847_v53, 16 }
 0x224   : > { %v1402_v48 = vpop.permute.xlu0 %1401  ;;  %v3989_v56 = vcombine.low %v3981_v1, %v3988_v50  ;;  %v11038_v34 = vsel %vm633_vm0, %v6886_v19, %v6889_v9  ;;  %v5001_v47 = vcombine.high %v10928_v7, %v10928_v7  ;;  %v5018_v18 = vcombine.high %v5010_v41, %v5010_v41 }
 0x225   : > { %1337 = vrot.lane.b32.xlu1 %v10868_v60, %s9109_s24  ;;  %v8964_v59 = vpop.eup %8963  ;;  %13226 = vst [vmem:[#allocation10_spill] sm:$0xff] %v11038_v34  ;;  %v1710_v33 = vsel %vm1660_vm4, %v10832_v17, %v10917_v26  ;;  %v11048_v5 = vsel %vm633_vm0, %v1431_v35, %v1435_v4  ;;  %v5002_v1 = vcombine.high %v5000_v40, %v5000_v40  ;;  %v13227_v9 = vrot.slane %v10951_v61, 1 }
 0x226   : > { %1577 = vrot.lane.b32.xlu0 %v10814_v8, %s9110_s9  ;;  %v1783_v50 = vsel %vm1733_vm6, %v1710_v33, %v10954_v2  ;;  %8736 = vmatmul.mubr.msk.bf16.gmra.mxu0 %vm4363_vm12, %v3989_v56  ;;  %v11058_v34 = vor.u32 %v1195_v45, %v1193_v22  ;;  %v8532_v17 = vadd.f32 -1.0, %v8964_v59  ;;  %v11066_v2 = vor.u32 %v1437_v10, %v1435_v4 }
 0x227   : > { %v11045_v0 = vpop.permute.xlu1 %1399  ;;  %v11056_v7 = vsel %vm976_vm1, %v1512_v52, %v13227_v9  ;;  %v1856_v26 = vsel %vm1806_vm7, %v1783_v50, %v10980_v42  ;;  %8739 = vmatprep.mubr.msk.bf16.mxu0 %vm9112_vm3, %v13182_v3  ;;  %v9115_v35 = vmov 0   ;;  %v5019_v33 = vcombine.high %v5017_v32, %v5017_v32 }
 0x228   : > { %v1489_v19 = vpop.permute.xlu0 %1488  ;;  %v11068_v56 = vrot.slane %v9115_v35, 1  ;;  %v6895_v52 = vrot.slane %v6893_v51, 1  ;;  %v1929_v22 = vsel %vm1879_vm8, %v1856_v26, %v1322_v12  ;;  %v5990_v42 = vrot.slane %v5001_v47, %v10710_v28 }
 0x229   : > { %1504 = vrot.lane.b32.xlu1 %v11026_v55, %s9111_s10  ;;  %v4497_v45 = vpop.f32.mrf.mxu0  ;;  %v5992_v59 = vcombine.low %v5010_v41, %v5018_v18  ;;  %v2002_v50 = vsel %vm1952_vm9, %v1929_v22, %v1402_v48  ;;  %v5991_v10 = vcombine.low %v5000_v40, %v5002_v1  ;;  %v6891_v35 = vshrl.u32 %v10847_v53, 16 }
 0x22a   : > { %13228 = vst [vmem:[#allocation7_spill] sm:$0xff] %v11068_v56  ;;  %1417 = vrot.lane.b32.xlu0 %v10817_v49, %s9107_s23  ;;  %v11076_v9 = vadd.f32 %v10625_v14, %v4497_v45  ;;  %vm4637_vm14 = vcmp.gt.f32.partialorder %v10905_v27, 0.0  ;;  %v2075_v12 = vsel %vm2025_vm10, %v2002_v50, %v1489_v19  ;;  %v2916_v47 = vcombine.high %v10931_v43, %v10931_v43 }
 0x22b   : > { %v11078_v4 = vpop.permute.xlu1 %1486  ;;  %v8705_v51 = vpop.f32.mrf.mxu0  ;;  %v4842_v41 = vsel %vm4637_vm14, %v10905_v27, %v8532_v17  ;;  %v11092_v53 = vcombine.low %v5017_v32, %v5019_v33  ;;  %v2946_v40 = vcombine.high %v10968_v31, %v10968_v31  ;;  %v11096_v1 = vor.u32 %v6895_v52, %v6891_v35 }
 0x22c   : > { %v1564_v26 = vpop.permute.xlu0 %1563  ;;  %v4680_v48 = vmin.f32 %v11076_v9, 0.0  ;;  %v13138_v27 = vmov 0.0|0.0   ;;  %v6006_v17 = vrot.slane %v5992_v59, %v10710_v28  ;;  %v6706_v31 = vsel %vm5746_vm13, %v5990_v42, 0.0 }
 0x22d   : > { %v11088_v18 = vsel %vm2098_vm11, %v2075_v12, %v1564_v26  ;;  %1099 = vrot.lane.b32.xlu1 %v10868_v60, %s9104_s18  ;;  %v4500_v19 = vpop.f32.mrf.mxu0  ;;  %v11101_v43 = vrot.slane %v13138_v27, 1  ;;  %v5999_v52 = vrot.slane %v5991_v10, %v10710_v28  ;;  %v5027_v45 = vrot.slane %v4842_v41, %v10710_v28 }
 0x22e   : > { %1579 = vrot.lane.b32.xlu0 %v11030_v6, %s9110_s9  ;;  %v4729_v22 = vmul.f32 1.442695, %v4680_v48  ;;  %v2970_v60 = vrot.slane %v11088_v18, %v9797_v57  ;;  %v8966_v33 = vpop.eup %8965  ;;  %vm4638_vm14 = vcmp.gt.f32.partialorder %v10973_v38, 0.0  ;;  %v1708_v50 = vsel %vm1660_vm4, %v10822_v24, %v10947_v36 }
 0x22f   : > { %13229 = vst [vmem:[#allocation15_spill] sm:$0xff] %v11101_v43  ;;  %v1562_v32 = vpop.permute.xlu1 %1561  ;;  %v8706_v59 = vpop.f32.mrf.mxu0  ;;  %v2944_v51 = vrot.slane %v2916_v47, %v9797_v57  ;;  %v7205_v42 = vshll.u32 %v10990_v29, 16  ;;  %v1781_v26 = vsel %vm1733_vm6, %v1708_v50, %v10975_v16  ;;  %v11125_v24 = vadd.f32 %v10625_v14, %v4500_v19 }
 0x230   : > { %v11114_v35 = vpop.permute.xlu0 %1083  ;;  %8967 = vpow2.f32 %v4729_v22  ;;  %v2978_v12 = vcombine.high %v2970_v60, %v2970_v60  ;;  %v6758_v36 = vpack.c.bf16 %v6706_v31, %v6706_v31  ;;  %v6007_v48 = vcombine.low %v5999_v52, %v6006_v17 }
 0x231   : > { %1266 = vrot.lane.b32.xlu1 %v11026_v55, %s9105_s19  ;;  %v8533_v47 = vadd.f32 -1.0, %v8966_v33  ;;  %v1854_v55 = vsel %vm1806_vm7, %v1781_v26, %v10997_v20  ;;  %v5020_v27 = vcombine.high %v4842_v41, %v4842_v41  ;;  %v5035_v10 = vcombine.high %v5027_v45, %v5027_v45 }
 0x232   : > { %1179 = vrot.lane.b32.xlu0 %v10817_v49, %s9106_s20  ;;  %v3000_v22 = vrot.slane %v2978_v12, %v9797_v57  ;;  %v7203_v16 = vshrl.u32 %v10990_v29, 16  ;;  %v7449_v19 = vrot.slane %v10990_v29, 1  ;;  %v1927_v49 = vsel %vm1879_vm8, %v1854_v55, %v11014_v39 }
 0x233   : > { %v11132_v59 = vpop.permute.xlu1 %1081  ;;  %v2986_v17 = vrot.slane %v2970_v60, %v9797_v57  ;;  %v2948_v31 = vcombine.high %v2944_v51, %v2944_v51  ;;  %v7207_v20 = vrot.slane %v7205_v42, 1  ;;  %v2000_v41 = vsel %vm1952_vm9, %v1927_v49, %v11045_v0 }
 0x234   : > { %v11134_v44 = vpop.permute.xlu0 %1163  ;;  %v2963_v33 = vcombine.high %v11088_v18, %v11088_v18  ;;  %v4681_v52 = vmin.f32 %v11125_v24, 0.0  ;;  %v7210_v50 = vshll.u32 %v6758_v36, 16  ;;  %v4843_v39 = vsel %vm4638_vm14, %v10973_v38, %v8533_v47 }
 0x235   : > { %1097 = vrot.lane.b32.xlu1 %v10665_v13, %s9104_s18  ;;  %v2073_v13 = vsel %vm2025_vm10, %v2000_v41, %v11078_v4  ;;  %v3992_v60 = vcombine.low %v2986_v17, %v3000_v22  ;;  %v8496_v12 = vcombine.high %v2986_v17, %v3000_v22  ;;  %v11158_v0 = vrot.slane %v5020_v27, %v10710_v28 }
 0x236   : > { %1341 = vrot.lane.b32.xlu0 %v11030_v6, %s9109_s24  ;;  %v6009_v26 = vcombine.low %v5027_v45, %v5035_v10  ;;  %v4731_v55 = vmul.f32 1.442695, %v4681_v52  ;;  %v2146_v49 = vsel %vm2098_vm11, %v2073_v13, %v1562_v32  ;;  %v3990_v29 = vcombine.low %v2944_v51, %v2946_v40 }
 0x237   : > { %v11155_v42 = vpop.permute.xlu1 %1161  ;;  %v2955_v21 = vrot.slane %v2146_v49, %v9797_v57  ;;  %v6897_v38 = vshll.u32 %v2146_v49, 16  ;;  %v7450_v4 = vrot.slane %v6758_v36, 1  ;;  %v5037_v47 = vcombine.high %v4843_v39, %v4843_v39 }
 0x238   : > { %v11161_v6 = vpop.permute.xlu0 %1250  ;;  %v2977_v22 = vrot.slane %v2963_v33, %v9797_v57  ;;  %8969 = vpow2.f32 %v4731_v55  ;;  %v7208_v27 = vor.u32 %v7207_v20, %v7203_v16  ;;  %v5044_v32 = vrot.slane %v4843_v39, %v10710_v28 }
 0x239   : > { %1177 = vrot.lane.b32.xlu1 %v10811_v11, %s9106_s20  ;;  %v4014_v45 = vrot.slane %v3992_v60, %v9797_v57  ;;  %v4021_v10 = vrot.slane %v8496_v12, %v9797_v57  ;;  %v2962_v40 = vrot.slane %v2955_v21, %v9797_v57  ;;  %v6023_v11 = vrot.slane %v6009_v26, %v10710_v28 }
 0x23a   : > { %1421 = vrot.lane.b32.xlu0 %v10894_v63, %s9107_s23  ;;  %v5036_v36 = vcombine.high %v11158_v0, %v11158_v0  ;;  %v6899_v17 = vrot.slane %v6897_v38, 1  ;;  %v7212_v33 = vrot.slane %v7210_v50, 1  ;;  %v6707_v63 = vsel %vm5687_vm15, %v6007_v48, 0.0 }
 0x23b   : > { %v11173_v51 = vpop.permute.xlu1 %1248  ;;  %v3991_v16 = vcombine.low %v2948_v31, %v2962_v40  ;;  %v4000_v20 = vrot.slane %v3990_v29, %v9797_v57  ;;  %v11184_v21 = vsel %vm976_vm1, %v7449_v19, %v7450_v4  ;;  %v11187_v39 = vrot.slane %v5037_v47, %v10710_v28 }
 0x23c   : > { %v1326_v41 = vpop.permute.xlu0 %1325  ;;  %v2979_v13 = vcombine.high %v2977_v22, %v2977_v22  ;;  %v6903_v60 = vshll.u32 %v11088_v18, 16  ;;  %v11193_v48 = vsel %vm633_vm0, %v7208_v27, %v7212_v33  ;;  %v5052_v29 = vcombine.high %v5044_v32, %v5044_v32 }
 0x23d   : > { %1264 = vrot.lane.b32.xlu1 %v13225_v37, %s9105_s19  ;;  %v8968_v52 = vpop.eup %8967  ;;  %v4007_v37 = vrot.slane %v3991_v16, %v9797_v57  ;;  %v4023_v19 = vcombine.low %v4014_v45, %v4021_v10  ;;  %v13230_v12 = vrot.slane %v11092_v53, %v10710_v28  ;;  %v11201_v55 = vcombine.low %v5036_v36, %v5044_v32 }
 0x23e   : > { %1508 = vrot.lane.b32.xlu0 %v11048_v5, %s9111_s10  ;;  %v8534_v31 = vadd.f32 -1.0, %v8968_v52  ;;  %vm4639_vm14 = vcmp.gt.f32.partialorder %v11076_v9, 0.0  ;;  %v11206_v5 = vsel %vm633_vm0, %v11096_v1, %v6899_v17  ;;  %v6031_v38 = vrot.slane %v11158_v0, %v10710_v28 }
 0x23f   : > { %v11196_v50 = vpop.permute.xlu1 %1323  ;;  %v6024_v26 = vcombine.low %v13230_v12, %v6023_v11  ;;  %v11211_v4 = vrot.slane %v2977_v22, %v9797_v57  ;;  %v6901_v47 = vshrl.u32 %v11088_v18, 16  ;;  %v4022_v27 = vcombine.low %v4000_v20, %v4007_v37 }
 0x240   : > { %v1406_v49 = vpop.permute.xlu0 %1405  ;;  %v4844_v53 = vsel %vm4639_vm14, %v11076_v9, %v8534_v31  ;;  %v11218_v32 = vrot.slane %v2979_v13, %v9797_v57  ;;  %v11220_v45 = vrot.slane %v6903_v60, 1  ;;  %vm4640_vm5 = vcmp.gt.f32.partialorder %v11125_v24, 0.0 }
 0x241   : > { %1339 = vrot.lane.b32.xlu1 %v10814_v8, %s9109_s24  ;;  %v11226_v1 = vcombine.low %v5052_v29, %v11187_v39  ;;  %v1714_v0 = vsel %vm1660_vm4, %v10863_v46, %v11114_v35  ;;  %v4030_v22 = vrot.slane %v4022_v27, %v9797_v57  ;;  %v4037_v9 = vrot.slane %v4023_v19, %v9797_v57  ;;  %v4505_v10 = vpop.f32.mrf.mxu0 }
 0x242   : > { %1583 = vrot.lane.b32.xlu0 %v11056_v7, %s9110_s9  ;;  %v11233_v11 = vpack.c.bf16 %v6024_v26, %v6707_v63  ;;  %v6040_v36 = vrot.slane %v11201_v55, %v10710_v28  ;;  %v1787_v7 = vsel %vm1733_vm6, %v1714_v0, %v11134_v44  ;;  %v11240_v17 = vadd.f32 %v10625_v14, %v4505_v10 }
 0x243   : > { %v1404_v40 = vpop.permute.xlu1 %1403  ;;  %v5054_v16 = vcombine.high %v4844_v53, %v4844_v53  ;;  %v5061_v46 = vrot.slane %v4844_v53, %v10710_v28  ;;  %v1860_v35 = vsel %vm1806_vm7, %v1787_v7, %v11161_v6  ;;  %v4038_v20 = vcombine.low %v4030_v22, %v4037_v9  ;;  %v8709_v52 = vpop.f32.mrf.mxu0 }
 0x244   : > { %v1493_v33 = vpop.permute.xlu0 %1492  ;;  %v5053_v63 = vcombine.high %v11187_v39, %v11187_v39  ;;  %v4039_v44 = vcombine.low %v11211_v4, %v11218_v32  ;;  %v8497_v13 = vcombine.high %v11211_v4, %v11218_v32  ;;  %v1933_v60 = vsel %vm1879_vm8, %v1860_v35, %v1326_v41 }
 0x245   : > { %1506 = vrot.lane.b32.xlu1 %v11058_v34, %s9111_s10  ;;  %v8970_v6 = vpop.eup %8969  ;;  %v6047_v29 = vrot.slane %v11226_v1, %v10710_v28  ;;  %v1712_v31 = vsel %vm1660_vm4, %v10827_v30, %v11132_v59  ;;  %8740 = vmatmul.mubr.msk.bf16.gmra.mxu0 %vm4363_vm12, %v4038_v20  ;;  %v2006_v39 = vsel %vm1952_vm9, %v1933_v60, %v1406_v49  ;;  %v4682_v37 = vmin.f32 %v11240_v17, 0.0  ;;  %v4508_v19 = vpop.f32.mrf.mxu0 }
 0x246   : > { %1419 = vrot.lane.b32.xlu0 %v10909_v25, %s9107_s23  ;;  %v8535_v41 = vadd.f32 -1.0, %v8970_v6  ;;  %v1785_v26 = vsel %vm1733_vm6, %v1712_v31, %v11155_v42  ;;  %v2079_v4 = vsel %vm2025_vm10, %v2006_v39, %v1493_v33  ;;  %v11268_v27 = vadd.f32 %v10625_v14, %v4508_v19  ;;  %8743 = vmatprep.mubr.msk.bf16.mxu0 %vm9112_vm3, %v13182_v3 }
 0x247   : > { %v1491_v12 = vpop.permute.xlu1 %1490  ;;  %v11273_v30 = vrot.slane %v5054_v16, %v10710_v28  ;;  %v5069_v59 = vcombine.high %v5061_v46, %v5061_v46  ;;  %v4733_v49 = vmul.f32 1.442695, %v4682_v37  ;;  %v8710_v32 = vpop.f32.mrf.mxu0  ;;  %v1858_v42 = vsel %vm1806_vm7, %v1785_v26, %v11173_v51 }
 0x248   : > { %v1568_v53 = vpop.permute.xlu0 %1567  ;;  %v4845_v14 = vsel %vm4640_vm5, %v11125_v24, %v8535_v41  ;;  %v4683_v0 = vmin.f32 %v11268_v27, 0.0  ;;  %v6709_v22 = vsel %vm5746_vm13, %v6031_v38, 0.0  ;;  %v1931_v9 = vsel %vm1879_vm8, %v1858_v42, %v11196_v50 }
 0x249   : > { %v11276_v1 = vsel %vm2098_vm11, %v2079_v4, %v1568_v53  ;;  %1101 = vrot.lane.b32.xlu1 %v10814_v8, %s9104_s18  ;;  %8971 = vpow2.f32 %v4733_v49  ;;  %v4049_v10 = vrot.slane %v4039_v44, %v9797_v57  ;;  %v7217_v24 = vshll.u32 %v11233_v11, 16 }
 0x24a   : > { %1581 = vrot.lane.b32.xlu0 %v11008_v58, %s9110_s9  ;;  %v5071_v7 = vcombine.high %v4845_v14, %v4845_v14  ;;  %v2004_v51 = vsel %vm1952_vm9, %v1931_v9, %v1404_v40  ;;  %v4735_v33 = vmul.f32 1.442695, %v4683_v0  ;;  %v3033_v16 = vrot.slane %v11276_v1, %v9797_v57 }
 0x24b   : > { %v1566_v8 = vpop.permute.xlu1 %1565  ;;  %v6050_v38 = vcombine.low %v5069_v59, %v11273_v30  ;;  %v2077_v20 = vsel %vm2025_vm10, %v2004_v51, %v1491_v12  ;;  %v4056_v50 = vrot.slane %v8497_v13, %v9797_v57  ;;  %v6760_v52 = vpack.c.bf16 %v6709_v22, %v6709_v22 }
 0x24c   : > { %v11297_v35 = vpop.permute.xlu0 %1087  ;;  %8973 = vpow2.f32 %v4735_v33  ;;  %v3041_v44 = vcombine.high %v3033_v16, %v3033_v16  ;;  %v3049_v40 = vrot.slane %v3033_v16, %v9797_v57  ;;  %v11306_v60 = vsel %vm2098_vm11, %v2077_v20, %v1566_v8 }
 0x24d   : > { %1268 = vrot.lane.b32.xlu1 %v11058_v34, %s9105_s19  ;;  %v6049_v6 = vcombine.low %v5053_v63, %v5061_v46  ;;  %v5078_v31 = vrot.slane %v4845_v14, %v10710_v28  ;;  %v3026_v39 = vcombine.high %v11276_v1, %v11276_v1  ;;  %v7219_v13 = vrot.slane %v7217_v24, 1 }
 0x24e   : > { %1181 = vrot.lane.b32.xlu0 %v10909_v25, %s9106_s20  ;;  %v5085_v37 = vrot.slane %v5071_v7, %v10710_v28  ;;  %v11317_v19 = vrot.slane %v3041_v44, %v9797_v57  ;;  %v3071_v12 = vcombine.high %v3049_v40, %v3049_v40  ;;  %v3018_v41 = vrot.slane %v11306_v60, %v9797_v57  ;;  %s9117_s20 = smov 40  }
 0x24f   : > { %v11313_v34 = vpop.permute.xlu1 %1085  ;;  %v6048_v25 = vcombine.low %v6040_v36, %v6047_v29  ;;  %v11329_v46 = vor.u32 %v11220_v45, %v6901_v47  ;;  %v7215_v63 = vshrl.u32 %v11233_v11, 16  ;;  %v7222_v4 = vshll.u32 %v6760_v52, 16 }
 0x250   : > { %v11321_v26 = vpop.permute.xlu0 %1167  ;;  %v6064_v53 = vrot.slane %v6050_v38, %v10710_v28  ;;  %v4042_v59 = vcombine.low %v11317_v19, %v3071_v12  ;;  %v3025_v49 = vrot.slane %v3018_v41, %v9797_v57  ;;  %v4071_v55 = vcombine.low %v4049_v10, %v4056_v50 }
 0x251   : > { %1423 = vrot.lane.b32.xlu1 %v10951_v61, %s9107_s23  ;;  %v6057_v18 = vrot.slane %v6049_v6, %v10710_v28  ;;  %v5086_v47 = vcombine.high %v5078_v31, %v5078_v31  ;;  %v7220_v36 = vor.u32 %v7219_v13, %v7215_v63  ;;  %v7452_v29 = vrot.slane %v11233_v11, 1 }
 0x252   : > { %1343 = vrot.lane.b32.xlu0 %v11008_v58, %s9109_s24  ;;  %v5087_v32 = vcombine.high %v5085_v37, %v5085_v37  ;;  %v11344_v14 = vrot.slane %v3026_v39, %v9797_v57  ;;  %v6913_v42 = vshll.u32 %v11276_v1, 16  ;;  %v4041_v0 = vcombine.low %v3025_v49, %v3049_v40  ;;  %s9118_s24 = smov 48  }
 0x253   : > { %v11340_v45 = vpop.permute.xlu1 %1165  ;;  %v6710_v58 = vsel %vm5687_vm15, %v6048_v25, 0.0  ;;  %v5070_v9 = vcombine.high %v11273_v30, %v11273_v30  ;;  %v13231_v8 = vrot.slane %v10951_v61, 1  ;;  %v7224_v10 = vrot.slane %v7222_v4, 1 }
 0x254   : > { %v11347_v22 = vpop.permute.xlu0 %1254  ;;  %v7453_v24 = vrot.slane %v6760_v52, 1  ;;  %v6065_v7 = vcombine.low %v6057_v18, %v6064_v53  ;;  %v4063_v51 = vrot.slane %v4041_v0, %v9797_v57  ;;  %v4070_v33 = vrot.slane %v4042_v59, %v9797_v57 }
 0x255   : > { %1585 = vrot.lane.b32.xlu1 %v13231_v8, %s9110_s9  ;;  %v4079_v16 = vrot.slane %v4071_v55, %v9797_v57  ;;  %v6073_v38 = vcombine.low %v5078_v31, %v5086_v47  ;;  %vm4641_vm5 = vcmp.gt.f32.partialorder %v11240_v17, 0.0  ;;  %v11365_v61 = vsel %vm633_vm0, %v7220_v36, %v7224_v10 }
 0x256   : > { %1510 = vrot.lane.b32.xlu0 %v11066_v2, %s9111_s10  ;;  %v11368_v20 = vsel %vm976_vm1, %v7452_v29, %v7453_v24  ;;  %v8972_v50 = vpop.eup %8971  ;;  %v6074_v52 = vcombine.low %v5085_v37, %v5087_v32  ;;  %v11372_v44 = vrot.slane %v11344_v14, %v9797_v57  ;;  %v6915_v2 = vrot.slane %v6913_v42, 1 }
 0x257   : > { %v11362_v30 = vpop.permute.xlu1 %1252  ;;  %v4072_v40 = vcombine.low %v4063_v51, %v4070_v33  ;;  %v6072_v31 = vrot.slane %v5070_v9, %v10710_v28  ;;  %v8536_v39 = vadd.f32 -1.0, %v8972_v50  ;;  %vm4642_vm14 = vcmp.gt.f32.partialorder %v11268_v27, 0.0 }
 0x258   : > { %v1330_v6 = vpop.permute.xlu0 %1329  ;;  %v6907_v13 = vshll.u32 %v11306_v60, 16  ;;  %v11379_v12 = vpack.c.bf16 %v6065_v7, %v6710_v58  ;;  %v3073_v37 = vcombine.high %v11317_v19, %v11317_v19  ;;  %v6911_v41 = vshrl.u32 %v11276_v1, 16  ;;  %v11396_v1 = vld [vmem:[%s13108_s5] ss:$0 sm:$0xff] }
 0x259   : > { %7384 = vrot.lane.b32.xlu1 %v11193_v48, %s9104_s18  ;;  %v4513_v25 = vpop.f32.mrf.mxu0  ;;  %v4086_v63 = vrot.slane %v4072_v40, %v9797_v57  ;;  %v8974_v4 = vpop.eup %8973  ;;  %v6081_v53 = vrot.slane %v6073_v38, %v10710_v28  ;;  %v4846_v60 = vsel %vm4641_vm5, %v11240_v17, %v8536_v39  ;;  %v3042_v59 = vcombine.high %v11344_v14, %v11344_v14 }
 0x25a   : > { %7382 = vrot.lane.b32.xlu0 %v11068_v56, %s9104_s18  ;;  %v11399_v19 = vadd.f32 %v11396_v1, %v4513_v25  ;;  %v6088_v55 = vrot.slane %v6074_v52, %v10710_v28  ;;  %v5088_v18 = vcombine.high %v4846_v60, %v4846_v60  ;;  %v3072_v47 = vcombine.high %v11372_v44, %v11372_v44 }
 0x25b   : > { %v1328_v49 = vpop.permute.xlu1 %1327  ;;  %v11404_v36 = vor.u32 %v6915_v2, %v6911_v41  ;;  %v8713_v17 = vpop.f32.mrf.mxu0  ;;  %v8537_v32 = vadd.f32 -1.0, %v8974_v4  ;;  %v6909_v14 = vrot.slane %v6907_v13, 1  ;;  %v4087_v0 = vcombine.low %v4079_v16, %v4086_v63 }
 0x25c   : > { %v1410_v29 = vpop.permute.xlu0 %1409  ;;  %v4684_v42 = vmin.f32 %v11399_v19, 0.0  ;;  %v5102_v58 = vrot.slane %v5088_v18, %v10710_v28  ;;  %v11411_v9 = vcombine.low %v3073_v37, %v11372_v44  ;;  %v1718_v8 = vsel %vm1660_vm4, %v10879_v15, %v11297_v35 }
 0x25d   : > { %7496 = vrot.lane.b32.xlu1 %v11184_v21, %s9105_s19  ;;  %v1716_v10 = vsel %vm1660_vm4, %v10840_v23, %v11313_v34  ;;  %v4516_v24 = vpop.f32.mrf.mxu0  ;;  %v5095_v7 = vrot.slane %v4846_v60, %v10710_v28  ;;  %8744 = vmatmul.mubr.msk.bf16.gmra.mxu0 %vm4363_vm12, %v4087_v0  ;;  %v11427_v38 = vrot.slane %v3042_v59, %v9797_v57  ;;  %v6712_v52 = vsel %vm5746_vm13, %v6072_v31, 0.0  ;;  %v13232_v31 = vld [vmem:[#allocation18_spill] sm:$0xff] }
 0x25e   : > { %7494 = vrot.lane.b32.xlu0 %v11101_v43, %s9105_s19  ;;  %v4737_v51 = vmul.f32 1.442695, %v4684_v42  ;;  %v11424_v33 = vadd.f32 %v11396_v1, %v4516_v24  ;;  %v6089_v15 = vcombine.low %v6081_v53, %v6088_v55  ;;  %v1791_v23 = vsel %vm1733_vm6, %v1718_v8, %v11321_v26  ;;  %8747 = vmatprep.mubr.msk.bf16.mxu0 %vm9112_vm3, %v13182_v3 }
 0x25f   : > { %v1408_v16 = vpop.permute.xlu1 %1407  ;;  %v1789_v35 = vsel %vm1733_vm6, %v1716_v10, %v11340_v45  ;;  %v8714_v34 = vpop.f32.mrf.mxu0  ;;  %v5104_v44 = vcombine.high %v5102_v58, %v5102_v58  ;;  %v4847_v2 = vsel %vm4642_vm14, %v11268_v27, %v8537_v32  ;;  %v1864_v40 = vsel %vm1806_vm7, %v1791_v23, %v11347_v22 }
 0x260   : > { %v1497_v50 = vpop.permute.xlu0 %1496  ;;  %8975 = vpow2.f32 %v4737_v51  ;;  %v1937_v26 = vsel %vm1879_vm8, %v1864_v40, %v1330_v6  ;;  %v4685_v45 = vmin.f32 %v11424_v33, 0.0  ;;  %v7227_v39 = vshrl.u32 %v11379_v12, 16 }
 0x261   : > { %7529 = vrot.lane.b32.xlu1 %v11233_v11, %s9107_s23  ;;  %v7229_v13 = vshll.u32 %v11379_v12, 16  ;;  %v5103_v37 = vcombine.high %v5095_v7, %v5095_v7  ;;  %v2010_v27 = vsel %vm1952_vm9, %v1937_v26, %v1410_v29  ;;  %v4089_v22 = vcombine.low %v11427_v38, %v3072_v47 }
 0x262   : > { %7527 = vrot.lane.b32.xlu0 %v13232_v31, %s9107_s23  ;;  %v11452_v25 = vpack.c.bf16 %v6712_v52, %v6712_v52  ;;  %v5105_v63 = vcombine.high %v4847_v2, %v4847_v2  ;;  %v1862_v6 = vsel %vm1806_vm7, %v1789_v35, %v11362_v30  ;;  %v4739_v4 = vmul.f32 1.442695, %v4685_v45 }
 0x263   : > { %v1495_v41 = vpop.permute.xlu1 %1494  ;;  %v2083_v53 = vsel %vm2025_vm10, %v2010_v27, %v1497_v50  ;;  %v6091_v59 = vcombine.low %v5102_v58, %v5104_v44  ;;  %v5112_v55 = vrot.slane %v4847_v2, %v10710_v28  ;;  %v11465_v47 = vsel %vm633_vm0, %v11329_v46, %v6909_v14 }
 0x264   : > { %v1572_v60 = vpop.permute.xlu0 %1571  ;;  %v6713_v30 = vsel %vm5687_vm15, %v6089_v15, 0.0  ;;  %v1935_v17 = vsel %vm1879_vm8, %v1862_v6, %v1328_v49  ;;  %8977 = vpow2.f32 %v4739_v4  ;;  %v6090_v32 = vcombine.low %v5095_v7, %v5103_v37 }
 0x265   : > { %v11459_v18 = vsel %vm2098_vm11, %v2083_v53, %v1572_v60  ;;  %7573 = vrot.lane.b32.xlu1 %v11365_v61, %s9110_s9  ;;  %v2008_v42 = vsel %vm1952_vm9, %v1935_v17, %v1408_v16  ;;  %v7231_v58 = vrot.slane %v7229_v13, 1  ;;  %v4098_v46 = vrot.slane %v11411_v9, %v9797_v57  ;;  %v8947_v9 = vld [vmem:[%s13106_s3 + $0x10] ss:$0 sps:$4 sm:$0x33]  }
 0x266   : > { %v3096_v29 = vrot.slane %v11459_v18, %v9797_v57  ;;  %7571 = vrot.lane.b32.xlu0 %v11193_v48, %s9110_s9  ;;  %v2081_v14 = vsel %vm2025_vm10, %v2008_v42, %v1495_v41  ;;  %v7234_v10 = vshll.u32 %v11452_v25, 16  ;;  %v4105_v24 = vrot.slane %v4089_v22, %v9797_v57  ;;  %8857 = vmatprep.subr.msk.bf16.mxu1 %vm13142_vm2, %v8947_v9 }
 0x267   : > { %v11475_v0 = vpop.permute.xlu1 %1089  ;;  %v6105_v51 = vrot.slane %v6091_v59, %v10710_v28  ;;  %v11484_v48 = vrot.slane %v5105_v63, %v10710_v28  ;;  %v6113_v7 = vrot.slane %v5112_v55, %v10710_v28  ;;  %v5120_v15 = vcombine.high %v5112_v55, %v5112_v55 }
 0x268   : > { %v3104_v8 = vcombine.high %v3096_v29, %v3096_v29  ;;  %v1570_v49 = vpop.permute.xlu0 %1569  ;;  %v3089_v23 = vcombine.high %v11459_v18, %v11459_v18  ;;  %v6098_v50 = vrot.slane %v6090_v32, %v10710_v28  ;;  %v11503_v52 = vrot.slane %v3096_v29, %v9797_v57 }
 0x269   : > { %v2154_v16 = vsel %vm2098_vm11, %v2081_v14, %v1570_v49  ;;  %7609 = vrot.lane.b32.xlu1 %v11368_v20, %s9117_s20  ;;  %v7232_v40 = vor.u32 %v7231_v58, %v7227_v39  ;;  %v3074_v26 = vcombine.high %v11427_v38, %v11427_v38  ;;  %v11513_v37 = vcombine.low %v4098_v46, %v4105_v24 }
 0x26a   : > { %v11496_v35 = vrot.slane %v3104_v8, %v9797_v57  ;;  %v3081_v34 = vrot.slane %v2154_v16, %v9797_v57  ;;  %7607 = vrot.lane.b32.xlu0 %v11184_v21, %s9117_s20  ;;  %v6917_v44 = vshll.u32 %v2154_v16, 16  ;;  %v7455_v21 = vrot.slane %v11379_v12, 1 }
 0x26b   : > { %v11505_v2 = vpop.permute.xlu1 %1169  ;;  %v6106_v27 = vcombine.low %v6098_v50, %v6105_v51  ;;  %v6715_v41 = vsel %vm5746_vm13, %v6113_v7, 0.0  ;;  %v7236_v38 = vrot.slane %v7234_v10, 1  ;;  %v11523_v63 = vcombine.low %v5120_v15, %v11484_v48 }
 0x26c   : > { %v3088_v45 = vrot.slane %v3081_v34, %v9797_v57  ;;  %v11511_v13 = vpop.permute.xlu0 %1091  ;;  %v4091_v39 = vcombine.low %v11503_v52, %v11496_v35  ;;  %vm4643_vm5 = vcmp.gt.f32.partialorder %v11399_v19, 0.0  ;;  %v3103_v6 = vrot.slane %v3089_v23, %v9797_v57 }
 0x26d   : > { %7642 = vrot.lane.b32.xlu1 %v11379_v12, %s9118_s24  ;;  %v8976_v22 = vpop.eup %8975  ;;  %v7456_v4 = vrot.slane %v11452_v25, 1  ;;  %v6919_v59 = vrot.slane %v6917_v44, 1  ;;  %v11533_v17 = vsel %vm633_vm0, %v7232_v40, %v7236_v38  ;;  %v11535_v29 = vpack.c.bf16 %v6715_v41, %v6715_v41 }
 0x26e   : > { %7640 = vrot.lane.b32.xlu0 %v11233_v11, %s9118_s24  ;;  %v8538_v53 = vadd.f32 -1.0, %v8976_v22  ;;  %v4090_v60 = vcombine.low %v3074_v26, %v3088_v45  ;;  %v5121_v32 = vcombine.high %v11484_v48, %v11484_v48  ;;  %vm4644_vm14 = vcmp.gt.f32.partialorder %v11424_v33, 0.0 }
 0x26f   : > { %v11530_v55 = vpop.permute.xlu1 %1256  ;;  %v4128_v25 = vrot.slane %v11513_v37, %v9797_v57  ;;  %v11544_v58 = vpack.c.bf16 %v6106_v27, %v6713_v30  ;;  %v4119_v14 = vrot.slane %v4091_v39, %v9797_v57  ;;  %v6122_v49 = vrot.slane %v11523_v63, %v10710_v28 }
 0x270   : > { %v11540_v42 = vpop.permute.xlu0 %1171  ;;  %v4848_v46 = vsel %vm4643_vm5, %v11399_v19, %v8538_v53  ;;  %v4112_v8 = vrot.slane %v4090_v60, %v9797_v57  ;;  %v3105_v51 = vcombine.high %v3103_v6, %v3103_v6  ;;  %v6923_v19 = vshll.u32 %v11459_v18, 16 }
 0x271   : > { %7686 = vrot.lane.b32.xlu1 %v11533_v17, %s9119_s25  ;;  %v5122_v10 = vcombine.high %v4848_v46, %v4848_v46  ;;  %v5129_v24 = vrot.slane %v4848_v46, %v10710_v28  ;;  %v8978_v30 = vpop.eup %8977  ;;  %v11558_v16 = vsel %vm976_vm1, %v7455_v21, %v7456_v4  ;;  %v11562_v9 = vsel %vm633_vm0, %v11404_v36, %v6919_v59  ;;  %v13233_v59 = vld [vmem:[#allocation16_spill] sm:$0xff] }
 0x272   : > { %7684 = vrot.lane.b32.xlu0 %v11365_v61, %s9119_s25  ;;  %v4121_v48 = vcombine.low %v4112_v8, %v4119_v14  ;;  %v8539_v50 = vadd.f32 -1.0, %v8978_v30  ;;  %v6921_v40 = vshrl.u32 %v11459_v18, 16  ;;  %v7241_v37 = vshll.u32 %v11544_v58, 16 }
 0x273   : > { %v1332_v7 = vpop.permute.xlu1 %1331  ;;  %v5136_v15 = vrot.slane %v5122_v10, %v10710_v28  ;;  %v5137_v23 = vcombine.high %v5129_v24, %v5129_v24  ;;  %v6115_v34 = vcombine.low %v5121_v32, %v5129_v24  ;;  %v7246_v36 = vshll.u32 %v11535_v29, 16 }
 0x274   : > { %v11565_v44 = vpop.permute.xlu0 %1258  ;;  %v4521_v26 = vpop.f32.mrf.mxu0  ;;  %v4135_v45 = vrot.slane %v4121_v48, %v9797_v57  ;;  %v4849_v27 = vsel %vm4644_vm14, %v11424_v33, %v8539_v50  ;;  %v11578_v39 = vrot.slane %v3105_v51, %v9797_v57  ;;  %v11587_v60 = vrot.slane %v3103_v6, %v9797_v57 }
 0x275   : > { %7386 = vrot.lane.b32.xlu1 %v11365_v61, %s9104_s18  ;;  %v6129_v21 = vrot.slane %v6115_v34, %v10710_v28  ;;  %v5138_v41 = vcombine.high %v5136_v15, %v5136_v15  ;;  %v6131_v61 = vcombine.low %v5137_v23, %v5136_v15  ;;  %v5146_v38 = vrot.slane %v4849_v27, %v10710_v28 }
 0x276   : > { %7720 = vrot.lane.b32.xlu0 %v11368_v20, %s9120_s26  ;;  %v11584_v22 = vadd.f32 %v11396_v1, %v4521_v26  ;;  %v8717_v63 = vpop.f32.mrf.mxu0  ;;  %v4136_v53 = vcombine.low %v4128_v25, %v4135_v45  ;;  %v6925_v33 = vrot.slane %v6923_v19, 1  ;;  %v1720_v32 = vsel %vm1660_vm4, %v13233_v59, %v11475_v0 }
 0x277   : > { %v1412_v4 = vpop.permute.xlu1 %1411  ;;  %v7239_v14 = vshrl.u32 %v11544_v58, 16  ;;  %v5154_v8 = vcombine.high %v5146_v38, %v5146_v38  ;;  %v6132_v10 = vcombine.low %v5138_v41, %v5146_v38  ;;  %v8498_v24 = vcombine.high %v11503_v52, %v11496_v35 }
 0x278   : > { %v1334_v46 = vpop.permute.xlu0 %1333  ;;  %v4524_v51 = vpop.f32.mrf.mxu0  ;;  %8748 = vmatmul.mubr.msk.bf16.gmra.mxu0 %vm4363_vm12, %v4136_v53  ;;  %v7243_v6 = vrot.slane %v7241_v37, 1  ;;  %v5139_v25 = vcombine.high %v4849_v27, %v4849_v27  ;;  %v1793_v30 = vsel %vm1733_vm6, %v1720_v32, %v11505_v2  ;;  %v4686_v0 = vmin.f32 %v11584_v22, 0.0 }
 0x279   : > { %7388 = vrot.lane.b32.xlu1 %v11533_v17, %s9104_s18  ;;  %v11602_v19 = vadd.f32 %v11396_v1, %v4524_v51  ;;  %8751 = vmatprep.mubr.msk.bf16.mxu0 %vm9112_vm3, %v13182_v3  ;;  %v6130_v35 = vcombine.low %v6122_v49, %v6129_v21  ;;  %v6139_v52 = vrot.slane %v6131_v61, %v10710_v28  ;;  %v13234_v49 = vld [vmem:[#allocation5_spill] sm:$0xff]  ;;  %vm13237_vm5 = vcmask 31744  }
 0x27a   : > { %7722 = vrot.lane.b32.xlu0 %v11558_v16, %s9120_s26  ;;  %v6146_v48 = vrot.slane %v6132_v10, %v10710_v28  ;;  %v4138_v15 = vcombine.low %v11587_v60, %v11578_v39  ;;  %v8718_v2 = vpop.f32.mrf.mxu0  ;;  %v6154_v34 = vrot.slane %v5154_v8, %v10710_v28  ;;  %v1866_v50 = vsel %vm1806_vm7, %v1793_v30, %v11530_v55  ;;  %vm13239_vm14 = vmmov %vm13237_vm5 }
 0x27b   : > { %v1499_v23 = vpop.permute.xlu1 %1498  ;;  %v4741_v26 = vmul.f32 1.442695, %v4686_v0  ;;  %v4687_v45 = vmin.f32 %v11602_v19, 0.0  ;;  %v1722_v21 = vsel %vm1660_vm4, %v13234_v49, %v11511_v13  ;;  %v1939_v41 = vsel %vm1879_vm8, %v1866_v50, %v1332_v7  ;;  %v13236_v50 = vld [vmem:[#allocation30_spill] sm:$0xff]  ;;  %vm13241_vm2 = vmmov %vm13237_vm5 }
 0x27c   : > { %v1414_v37 = vpop.permute.xlu0 %1413  ;;  %v6147_v27 = vcombine.low %v6139_v52, %v6146_v48  ;;  %v7244_v61 = vor.u32 %v7243_v6, %v7239_v14  ;;  %v5153_v38 = vrot.slane %v5139_v25, %v10710_v28  ;;  %v2012_v55 = vsel %vm1952_vm9, %v1939_v41, %v1412_v4  ;;  %v13240_v41 = vld [vmem:[#allocation32_spill] sm:$0xff] }
 0x27d   : > { %7500 = vrot.lane.b32.xlu1 %v11558_v16, %s9105_s19  ;;  %8979 = vpow2.f32 %v4741_v26  ;;  %v4743_v63 = vmul.f32 1.442695, %v4687_v45  ;;  %v6716_v53 = vsel %vm5687_vm15, %v6130_v35, 0.0  ;;  %v1795_v13 = vsel %vm1733_vm6, %v1722_v21, %v11540_v42  ;;  %v9074_v45 = vld [vmem:[%s9376_s17 + $0x14] ss:$0 sps:$4 sm:$0x33]  }
 0x27e   : > { %7498 = vrot.lane.b32.xlu0 %v11368_v20, %s9105_s19  ;;  %v2085_v7 = vsel %vm2025_vm10, %v2012_v55, %v1499_v23  ;;  %v4154_v32 = vrot.slane %v4138_v15, %v9797_v57  ;;  %v11632_v14 = vpack.c.bf16 %v6147_v27, %v6716_v53  ;;  %v6718_v20 = vsel %vm5746_vm13, %v6154_v34, 0.0  ;;  %v9073_v34 = vld [vmem:[%s9376_s17] sm:$0xff]  }
 0x27f   : > { %v1574_v59 = vpop.permute.xlu1 %1573  ;;  %8981 = vpow2.f32 %v4743_v63  ;;  %v6926_v10 = vor.u32 %v6925_v33, %v6921_v40  ;;  %v1868_v42 = vsel %vm1806_vm7, %v1795_v13, %v11565_v44  ;;  %v7248_v6 = vrot.slane %v7246_v36, 1 }
 0x280   : > { %13235 = vst [vmem:[#allocation33_spill] sm:$0xff] %v11632_v14  ;;  %v2158_v4 = vsel %vm2098_vm11, %v2085_v7, %v1574_v59  ;;  %v1501_v8 = vpop.permute.xlu0 %1500  ;;  %v5155_v25 = vcombine.high %v5153_v38, %v5153_v38  ;;  %v8499_v30 = vcombine.high %v11587_v60, %v11578_v39  ;;  %v4147_v0 = vrot.slane %v8498_v24, %v9797_v57 }
 0x281   : > { %v6927_v51 = vshll.u32 %v2158_v4, 16  ;;  %7533 = vrot.lane.b32.xlu1 %v11544_v58, %s9107_s23  ;;  %v1941_v35 = vsel %vm1879_vm8, %v1868_v42, %v1334_v46  ;;  %v7458_v33 = vrot.slane %v11544_v58, 1  ;;  %v6766_v36 = vpack.c.bf16 %v6718_v20, %v6718_v20 }
 0x282   : > { %7531 = vrot.lane.b32.xlu0 %v11379_v12, %s9107_s23  ;;  %v2014_v18 = vsel %vm1952_vm9, %v1941_v35, %v1414_v37  ;;  %v11655_v39 = vsel %vm633_vm0, %v7244_v61, %v7248_v6  ;;  %v7253_v60 = vshll.u32 %v11632_v14, 16  ;;  %v4169_v46 = vcombine.low %v4147_v0, %v4154_v32  ;;  %v13238_v37 = vld [vmem:[#allocation31_spill] sm:$0xff] }
 0x283   : > { %v6929_v44 = vrot.slane %v6927_v51, 1  ;;  %v1094_v40 = vpop.permute.xlu1 %1093  ;;  %v2087_v52 = vsel %vm2025_vm10, %v2014_v18, %v1501_v8  ;;  %v3144_v24 = vrot.slane %v2158_v4, %v9797_v57  ;;  %v7459_v2 = vrot.slane %v11535_v29, 1  ;;  %v9075_v29 = vld [vmem:[%s9376_s17 + $0xc] sm:$0xff]  }
 0x284   : > { %v1576_v48 = vpop.permute.xlu0 %1575  ;;  %v11671_v26 = vsel %vm13237_vm5, %v9073_v34, %v13236_v50  ;;  %v11676_v27 = vsel %vm13239_vm14, %v9074_v45, %v13238_v37  ;;  %v11678_v49 = vcombine.low %v5153_v38, %v5155_v25  ;;  %v11689_v61 = vsel %vm13241_vm2, %v9075_v29, %v13240_v41 }
 0x285   : > { %v11660_v15 = vsel %vm2098_vm11, %v2087_v52, %v1576_v48  ;;  %7577 = vrot.lane.b32.xlu1 %v11655_v39, %s9110_s9  ;;  %v11666_v23 = vsel %vm633_vm0, %v6926_v10, %v6929_v44  ;;  %v11694_v63 = vsel %vm976_vm1, %v7458_v33, %v7459_v2  ;;  %v7258_v53 = vshll.u32 %v6766_v36, 16  ;;  %v13242_v52 = vld [vmem:[#allocation8_spill] sm:$0xff] }
 0x286   : > { %v11682_v21 = vrot.slane %v11660_v15, %v9797_v57  ;;  %7575 = vrot.lane.b32.xlu0 %v11533_v17, %s9110_s9  ;;  %v11697_v38 = vrot.slane %v8499_v30, %v9797_v57  ;;  %v3152_v13 = vcombine.high %v11660_v15, %v11660_v15  ;;  %v7255_v32 = vrot.slane %v7253_v60, 1 }
 0x287   : > { %v11691_v55 = vpop.permute.xlu1 %1260  ;;  %v11706_v4 = vrot.slane %v4169_v46, %v9797_v57  ;;  %v3151_v8 = vrot.slane %v3144_v24, %v9797_v57  ;;  %v7461_v10 = vrot.slane %v11632_v14, 1  ;;  %v7462_v42 = vrot.slane %v6766_v36, 1 }
 0x288   : > { %v11703_v17 = vrot.slane %v11682_v21, %v9797_v57  ;;  %v4529_v7 = vpop.f32.mrf.mxu0  ;;  %v1174_v59 = vpop.permute.xlu0 %1173  ;;  %v6163_v51 = vrot.slane %v11678_v49, %v10710_v28  ;;  %vm4645_vm2 = vcmp.gt.f32.partialorder %v11584_v22, 0.0  ;;  %vm4646_vm5 = vcmp.gt.f32.partialorder %v11602_v19, 0.0 }
 0x289   : > { %v11710_v20 = vadd.f32 %v11396_v1, %v4529_v7  ;;  %7613 = vrot.lane.b32.xlu1 %v11694_v63, %s9117_s20  ;;  %v7251_v25 = vshrl.u32 %v11632_v14, 16  ;;  %v6933_v35 = vshll.u32 %v11660_v15, 16  ;;  %v7260_v33 = vrot.slane %v7258_v53, 1 }
 0x28a   : > { %v8721_v6 = vpop.f32.mrf.mxu0  ;;  %7611 = vrot.lane.b32.xlu0 %v11558_v16, %s9117_s20  ;;  %v8980_v30 = vpop.eup %8979  ;;  %v4140_v0 = vcombine.low %v3151_v8, %v11703_v17  ;;  %v1724_v48 = vsel %vm1660_vm4, %v13242_v52, %v1094_v40  ;;  %v11730_v60 = vrot.slane %v3152_v13, %v9797_v57  ;;  %v6931_v34 = vshrl.u32 %v11660_v15, 16 }
 0x28b   : > { %v4688_v18 = vmin.f32 %v11710_v20, 0.0  ;;  %v11725_v44 = vpop.permute.xlu1 %1095  ;;  %v8540_v36 = vadd.f32 -1.0, %v8980_v30  ;;  %v7256_v24 = vor.u32 %v7255_v32, %v7251_v25  ;;  %v11739_v37 = vsel %vm976_vm1, %v7461_v10, %v7462_v42 }
 0x28c   : > { %v4532_v16 = vpop.f32.mrf.mxu0  ;;  %v1336_v46 = vpop.permute.xlu0 %1335  ;;  %v3167_v41 = vcombine.high %v11682_v21, %v11682_v21  ;;  %v4168_v15 = vrot.slane %v4140_v0, %v9797_v57  ;;  %v6935_v32 = vrot.slane %v6933_v35, 1  ;;  %v11755_v10 = vrot.slane %v11730_v60, %v9797_v57 }
 0x28d   : > { %v8982_v2 = vpop.eup %8981  ;;  %v4745_v50 = vmul.f32 1.442695, %v4688_v18  ;;  %v11734_v45 = vadd.f32 %v11396_v1, %v4532_v16  ;;  %7646 = vrot.lane.b32.xlu1 %v11632_v14, %s9118_s24  ;;  %v4850_v40 = vsel %vm4645_vm2, %v11584_v22, %v8540_v36  ;;  %v11759_v6 = vsel %vm633_vm0, %v7256_v24, %v7260_v33 }
 0x28e   : > { %v8541_v29 = vadd.f32 -1.0, %v8982_v2  ;;  %v8722_v53 = vpop.f32.mrf.mxu0  ;;  %7644 = vrot.lane.b32.xlu0 %v11544_v58, %s9118_s24  ;;  %v5156_v13 = vcombine.high %v4850_v40, %v4850_v40  ;;  %v5163_v7 = vrot.slane %v4850_v40, %v10710_v28  ;;  %v1797_v18 = vsel %vm1733_vm6, %v1724_v48, %v1174_v59 }
 0x28f   : > { %8983 = vpow2.f32 %v4745_v50  ;;  %v1176_v8 = vpop.permute.xlu1 %1175  ;;  %v4689_v21 = vmin.f32 %v11734_v45, 0.0  ;;  %v4170_v33 = vcombine.low %v11697_v38, %v4168_v15  ;;  %v3189_v2 = vrot.slane %v3167_v41, %v9797_v57 }
 0x290   : > { %v4851_v22 = vsel %vm4646_vm5, %v11602_v19, %v8541_v29  ;;  %v1416_v42 = vpop.permute.xlu0 %1415  ;;  %v5170_v25 = vrot.slane %v5156_v13, %v10710_v28  ;;  %v5171_v30 = vcombine.high %v5163_v7, %v5163_v7  ;;  %v3168_v19 = vcombine.high %v11730_v60, %v11730_v60 }
 0x291   : > { %v5173_v0 = vcombine.high %v4851_v22, %v4851_v22  ;;  %v5180_v35 = vrot.slane %v4851_v22, %v10710_v28  ;;  %7690 = vrot.lane.b32.xlu1 %v11759_v6, %s9119_s25  ;;  %v4747_v36 = vmul.f32 1.442695, %v4689_v21  ;;  %v3197_v60 = vcombine.high %v11703_v17, %v11703_v17 }
 0x292   : > { %7688 = vrot.lane.b32.xlu0 %v11655_v39, %s9119_s25  ;;  %v5172_v52 = vcombine.high %v5170_v25, %v5170_v25  ;;  %v6156_v16 = vcombine.low %v5163_v7, %v5171_v30  ;;  %v4184_v48 = vrot.slane %v4170_v33, %v9797_v57  ;;  %v3198_v38 = vcombine.high %v11755_v10, %v11755_v10 }
 0x293   : > { %v5188_v24 = vcombine.high %v5180_v35, %v5180_v35  ;;  %v1263_v50 = vpop.permute.xlu1 %1262  ;;  %v11773_v40 = vrot.slane %v5173_v0, %v10710_v28  ;;  %8985 = vpow2.f32 %v4747_v36  ;;  %v11780_v15 = vor.u32 %v6935_v32, %v6931_v34 }
 0x294   : > { %v4537_v59 = vpop.f32.mrf.mxu0  ;;  %v1503_v29 = vpop.permute.xlu0 %1502  ;;  %v6172_v53 = vcombine.low %v5170_v25, %v5172_v52  ;;  %v6170_v41 = vrot.slane %v6156_v16, %v10710_v28  ;;  %v1870_v17 = vsel %vm1806_vm7, %v1797_v18, %v11691_v55  ;;  %v4185_v22 = vcombine.low %v11706_v4, %v4184_v48 }
 0x295   : > { %v6173_v13 = vcombine.low %v5180_v35, %v5188_v24  ;;  %7390 = vrot.lane.b32.xlu1 %v11655_v39, %s9104_s18  ;;  %v11788_v7 = vadd.f32 %v11396_v1, %v4537_v59  ;;  %v3199_v32 = vcombine.high %v3189_v2, %v3189_v2  ;;  %v1726_v39 = vsel %vm1660_vm4, %v11671_v26, %v11725_v44 }
 0x296   : > { %v8725_v21 = vpop.f32.mrf.mxu0  ;;  %7724 = vrot.lane.b32.xlu0 %v11694_v63, %s9120_s26  ;;  %v1943_v25 = vsel %vm1879_vm8, %v1870_v17, %v1336_v46  ;;  %v6195_v55 = vrot.slane %v11773_v40, %v10710_v28  ;;  %v1799_v0 = vsel %vm1733_vm6, %v1726_v39, %v1176_v8  ;;  %8752 = vmatmul.mubr.msk.bf16.gmra.mxu0 %vm4363_vm12, %v4185_v22  ;;  %vm4647_vm14 = vcmp.gt.f32.partialorder %v11710_v20, 0.0 }
 0x297   : > { %v6187_v34 = vrot.slane %v6173_v13, %v10710_v28  ;;  %v1338_v30 = vpop.permute.xlu1 %1337  ;;  %v2016_v4 = vsel %vm1952_vm9, %v1943_v25, %v1416_v42  ;;  %v4690_v35 = vmin.f32 %v11788_v7, 0.0  ;;  %v6180_v33 = vrot.slane %v6172_v53, %v10710_v28  ;;  %8755 = vmatprep.mubr.msk.bf16.mxu0 %vm9112_vm3, %v13182_v3 }
 0x298   : > { %v4540_v18 = vpop.f32.mrf.mxu0  ;;  %v1578_v36 = vpop.permute.xlu0 %1577  ;;  %v2089_v26 = vsel %vm2025_vm10, %v2016_v4, %v1503_v29  ;;  %v6171_v46 = vcombine.low %v6163_v51, %v6170_v41  ;;  %v3196_v42 = vrot.slane %v3168_v19, %v9797_v57  ;;  %v1872_v59 = vsel %vm1806_vm7, %v1799_v0, %v1263_v50 }
 0x299   : > { %v11807_v44 = vadd.f32 %v11396_v1, %v4540_v18  ;;  %7392 = vrot.lane.b32.xlu1 %v11759_v6, %s9104_s18  ;;  %v4749_v8 = vmul.f32 1.442695, %v4690_v35  ;;  %v11818_v52 = vsel %vm2098_vm11, %v2089_v26, %v1578_v36  ;;  %v6188_v24 = vcombine.low %v6180_v33, %v6187_v34 }
 0x29a   : > { %v8726_v16 = vpop.f32.mrf.mxu0  ;;  %7726 = vrot.lane.b32.xlu0 %v11739_v37, %s9120_s26  ;;  %v3207_v29 = vrot.slane %v11818_v52, %v9797_v57  ;;  %v11826_v53 = vcombine.low %v3189_v2, %v3197_v60  ;;  %v1945_v19 = vsel %vm1879_vm8, %v1872_v59, %v1338_v30  ;;  %v6721_v50 = vsel %vm5746_vm13, %v6195_v55, 0.0 }
 0x29b   : > { %v4691_v48 = vmin.f32 %v11807_v44, 0.0  ;;  %v1505_v49 = vpop.permute.xlu1 %1504  ;;  %8987 = vpow2.f32 %v4749_v8  ;;  %v6719_v2 = vsel %vm5687_vm15, %v6171_v46, 0.0  ;;  %v4187_v60 = vcombine.low %v3199_v32, %v11755_v10 }
 0x29c   : > { %v8984_v51 = vpop.eup %8983  ;;  %v1418_v13 = vpop.permute.xlu0 %1417  ;;  %v3200_v21 = vcombine.high %v3196_v42, %v3196_v42  ;;  %v3214_v34 = vrot.slane %v3207_v29, %v9797_v57  ;;  %v11841_v39 = vpack.c.bf16 %v6188_v24, %v6719_v2  ;;  %v4188_v30 = vcombine.low %v3196_v42, %v3198_v38 }
 0x29d   : > { %v8542_v41 = vadd.f32 -1.0, %v8984_v51  ;;  %v4751_v17 = vmul.f32 1.442695, %v4691_v48  ;;  %v2018_v22 = vsel %vm1952_vm9, %v1945_v19, %v1418_v13  ;;  %7504 = vrot.lane.b32.xlu1 %v11739_v37, %s9105_s19  ;;  %v11846_v10 = vpack.c.bf16 %v6721_v50, %v6721_v50 }
 0x29e   : > { %7502 = vrot.lane.b32.xlu0 %v11694_v63, %s9105_s19  ;;  %13243 = vst [vmem:[#allocation20_spill] sm:$0xff] %v11841_v39  ;;  %v2091_v35 = vsel %vm2025_vm10, %v2018_v22, %v1505_v49  ;;  %v5189_v36 = vcombine.high %v11773_v40, %v11773_v40  ;;  %vm4648_vm2 = vcmp.gt.f32.partialorder %v11734_v45, 0.0  ;;  %v6937_v63 = vshll.u32 %v11818_v52, 16 }
 0x29f   : > { %v4852_v25 = vsel %vm4647_vm14, %v11710_v20, %v8542_v41  ;;  %8989 = vpow2.f32 %v4751_v17  ;;  %v1100_v0 = vpop.permute.xlu1 %1099  ;;  %v4189_v46 = vcombine.low %v3200_v21, %v3214_v34  ;;  %vm4649_vm5 = vcmp.gt.f32.partialorder %v11788_v7, 0.0 }
 0x2a0   : > { %v5190_v4 = vcombine.high %v4852_v25, %v4852_v25  ;;  %v5197_v55 = vrot.slane %v4852_v25, %v10710_v28  ;;  %v1580_v18 = vpop.permute.xlu0 %1579  ;;  %v8986_v32 = vpop.eup %8985  ;;  %v4210_v40 = vrot.slane %v4188_v30, %v9797_v57  ;;  %v4196_v16 = vrot.slane %v11826_v53, %v9797_v57 }
 0x2a1   : > { %v11853_v20 = vsel %vm2098_vm11, %v2091_v35, %v1580_v18  ;;  %7537 = vrot.lane.b32.xlu1 %v11841_v39, %s9107_s23  ;;  %v8543_v26 = vadd.f32 -1.0, %v8986_v32  ;;  %v7270_v49 = vshll.u32 %v11846_v10, 16  ;;  %v7265_v13 = vshll.u32 %v11841_v39, 16 }
 0x2a2   : > { %v5204_v38 = vrot.slane %v5190_v4, %v10710_v28  ;;  %v5205_v33 = vcombine.high %v5197_v55, %v5197_v55  ;;  %7535 = vrot.lane.b32.xlu0 %v11632_v14, %s9107_s23  ;;  %v3215_v8 = vcombine.high %v11853_v20, %v11853_v20  ;;  %v3222_v42 = vrot.slane %v11853_v20, %v9797_v57 }
 0x2a3   : > { %v11866_v52 = vpop.permute.xlu1 %1266  ;;  %v4853_v59 = vsel %vm4648_vm2, %v11734_v45, %v8543_v26  ;;  %v4203_v41 = vrot.slane %v4187_v60, %v9797_v57  ;;  %v6196_v17 = vcombine.low %v5189_v36, %v5197_v55  ;;  %vm4650_vm14 = vcmp.gt.f32.partialorder %v11807_v44, 0.0 }
 0x2a4   : > { %v6197_v24 = vcombine.low %v5205_v33, %v5204_v38  ;;  %v5206_v48 = vcombine.high %v5204_v38, %v5204_v38  ;;  %v1180_v29 = vpop.permute.xlu0 %1179  ;;  %v5207_v51 = vcombine.high %v4853_v59, %v4853_v59  ;;  %v5214_v19 = vrot.slane %v4853_v59, %v10710_v28 }
 0x2a5   : > { %v4217_v53 = vrot.slane %v4189_v46, %v9797_v57  ;;  %v11879_v22 = vrot.slane %v6937_v63, 1  ;;  %v3229_v45 = vrot.slane %v3215_v8, %v9797_v57  ;;  %v3230_v21 = vcombine.high %v3222_v42, %v3222_v42 }
 0x2a6   : > { %7579 = vrot.lane.b32.xlu0 %v11759_v6, %s9110_s9  ;;  %v5221_v50 = vrot.slane %v5207_v51, %v10710_v28  ;;  %v5222_v2 = vcombine.high %v5214_v19, %v5214_v19  ;;  %v7263_v34 = vshrl.u32 %v11841_v39, 16  ;;  %v6211_v60 = vrot.slane %v6197_v24, %v10710_v28 }
 0x2a7   : > { %v11886_v25 = vpop.permute.xlu1 %1097  ;;  %v6213_v30 = vcombine.low %v5206_v48, %v5214_v19  ;;  %v1730_v4 = vsel %vm1660_vm4, %v11689_v61, %v1100_v0  ;;  %v7272_v55 = vrot.slane %v7270_v49, 1  ;;  %v7267_v6 = vrot.slane %v7265_v13, 1 }
 0x2a8   : > { %v11891_v35 = vpop.permute.xlu0 %1341  ;;  %v8988_v18 = vpop.eup %8987  ;;  %v6214_v32 = vcombine.low %v5222_v2, %v5221_v50  ;;  %v4218_v36 = vcombine.low %v4196_v16, %v4203_v41  ;;  %v7464_v63 = vrot.slane %v11841_v39, 1  ;;  %v6204_v38 = vrot.slane %v6196_v17, %v10710_v28 }
 0x2a9   : > { %v8544_v33 = vadd.f32 -1.0, %v8988_v18  ;;  %v4219_v26 = vcombine.low %v4210_v40, %v4217_v53  ;;  %v3231_v46 = vcombine.high %v3229_v45, %v3229_v45  ;;  %v3238_v8 = vrot.slane %v3222_v42, %v9797_v57 }
 0x2aa   : > { %7615 = vrot.lane.b32.xlu0 %v11739_v37, %s9117_s20  ;;  %v3252_v61 = vrot.slane %v3230_v21, %v9797_v57  ;;  %v6943_v0 = vshll.u32 %v11853_v20, 16  ;;  %v1803_v24 = vsel %vm1733_vm6, %v1730_v4, %v1180_v29  ;;  %v6212_v48 = vcombine.low %v6204_v38, %v6211_v60 }
 0x2ab   : > { %v1178_v59 = vpop.permute.xlu1 %1177  ;;  %v5223_v49 = vcombine.high %v5221_v50, %v5221_v50  ;;  %v6221_v51 = vrot.slane %v6213_v30, %v10710_v28  ;;  %v4854_v40 = vsel %vm4649_vm5, %v11788_v7, %v8544_v33  ;;  %v6228_v37 = vrot.slane %v6214_v32, %v10710_v28 }
 0x2ac   : > { %v8990_v16 = vpop.eup %8989  ;;  %v1422_v19 = vpop.permute.xlu0 %1421  ;;  %v5224_v42 = vcombine.high %v4854_v40, %v4854_v40  ;;  %v5231_v13 = vrot.slane %v4854_v40, %v10710_v28  ;;  %v3259_v17 = vrot.slane %v3231_v46, %v9797_v57  ;;  %v7268_v29 = vor.u32 %v7267_v6, %v7263_v34 }
 0x2ad   : > { %v8545_v41 = vadd.f32 -1.0, %v8990_v16  ;;  %v4226_v53 = vrot.slane %v4218_v36, %v9797_v57  ;;  %v4233_v50 = vrot.slane %v4219_v26, %v9797_v57  ;;  %v4235_v60 = vcombine.low %v3238_v8, %v3252_v61 }
 0x2ae   : > { %7648 = vrot.lane.b32.xlu0 %v11841_v39, %s9118_s24  ;;  %v5238_v2 = vrot.slane %v5224_v42, %v10710_v28  ;;  %v5239_v7 = vcombine.high %v5231_v13, %v5231_v13  ;;  %v8500_v32 = vcombine.high %v3238_v8, %v3252_v61  ;;  %v11917_v34 = vsel %vm633_vm0, %v7268_v29, %v7272_v55 }
 0x2af   : > { %v4855_v21 = vsel %vm4650_vm14, %v11807_v44, %v8545_v41  ;;  %v1265_v30 = vpop.permute.xlu1 %1264  ;;  %v4545_v4 = vpop.f32.mrf.mxu0  ;;  %v4234_v6 = vcombine.low %v4226_v53, %v4233_v50  ;;  %v6229_v38 = vcombine.low %v6221_v51, %v6228_v37  ;;  %v3245_v26 = vrot.slane %v3229_v45, %v9797_v57  ;;  %7581 = vrot.lane.b32.xlu1 %v11917_v34, %s9110_s9  ;;  %v13245_v53 = vld [vmem:[#allocation13_spill] sm:$0xff] }
 0x2b0   : > { %v5241_v18 = vcombine.high %v4855_v21, %v4855_v21  ;;  %v1509_v36 = vpop.permute.xlu0 %1508  ;;  %v5248_v33 = vrot.slane %v4855_v21, %v10710_v28  ;;  %v11921_v46 = vrot.slane %v6943_v0, 1  ;;  %v6722_v16 = vsel %vm5687_vm15, %v6212_v48, 0.0 }
 0x2b1   : > { %v8729_v44 = vpop.f32.mrf.mxu0  ;;  %v6236_v8 = vrot.slane %v5223_v49, %v10710_v28  ;;  %v5240_v55 = vcombine.high %v5238_v2, %v5238_v2  ;;  %8756 = vmatmul.mubr.msk.bf16.gmra.mxu0 %vm4363_vm12, %v4234_v6  ;;  %v7465_v61 = vrot.slane %v11846_v10, 1  ;;  %v11930_v51 = vcombine.low %v5231_v13, %v5239_v7 }
 0x2b2   : > { %v5255_v45 = vrot.slane %v5241_v18, %v10710_v28  ;;  %v4237_v0 = vcombine.low %v3245_v26, %v3259_v17  ;;  %v8501_v40 = vcombine.high %v3245_v26, %v3259_v17  ;;  %7692 = vrot.lane.b32.xlu0 %v11917_v34, %s9119_s25  ;;  %v4245_v48 = vrot.slane %v4235_v60, %v9797_v57 }
 0x2b3   : > { %v1340_v37 = vpop.permute.xlu1 %1339  ;;  %v4548_v42 = vpop.f32.mrf.mxu0  ;;  %v4252_v49 = vrot.slane %v8500_v32, %v9797_v57  ;;  %v11938_v41 = vsel %vm976_vm1, %v7464_v63, %v7465_v61  ;;  %v11941_v10 = vadd.f32 %v11396_v1, %v4545_v4  ;;  %8759 = vmatprep.mubr.msk.bf16.mxu0 %vm9112_vm3, %v13182_v3  ;;  %v11945_v17 = vpack.c.bf16 %v6229_v38, %v6722_v16 }
 0x2b4   : > { %v1584_v13 = vpop.permute.xlu0 %1583  ;;  %v5256_v29 = vcombine.high %v5248_v33, %v5248_v33  ;;  %v1728_v50 = vsel %vm1660_vm4, %v13245_v53, %v11886_v25  ;;  %v1876_v7 = vsel %vm1806_vm7, %v1803_v24, %v11866_v52  ;;  %7617 = vrot.lane.b32.xlu1 %v11938_v41, %s9117_s20  ;;  %v11954_v21 = vcombine.low %v5238_v2, %v5240_v55 }
 0x2b5   : > { %13244 = vst [vmem:[#allocation9_spill] sm:$0xff] %v11945_v17  ;;  %v8730_v63 = vpop.f32.mrf.mxu0  ;;  %v1949_v60 = vsel %vm1879_vm8, %v1876_v7, %v11891_v35  ;;  %v1801_v4 = vsel %vm1733_vm6, %v1728_v50, %v1178_v59  ;;  %v4692_v18 = vmin.f32 %v11941_v10, 0.0  ;;  %v6245_v32 = vrot.slane %v11930_v51, %v10710_v28 }
 0x2b6   : > { %v5257_v25 = vcombine.high %v5255_v45, %v5255_v45  ;;  %v2022_v6 = vsel %vm1952_vm9, %v1949_v60, %v1422_v19  ;;  %v4259_v52 = vrot.slane %v4237_v0, %v9797_v57  ;;  %7728 = vrot.lane.b32.xlu0 %v11938_v41, %s9120_s26  ;;  %v4266_v35 = vrot.slane %v8501_v40, %v9797_v57 }
 0x2b7   : > { %v1507_v24 = vpop.permute.xlu1 %1506  ;;  %v4753_v2 = vmul.f32 1.442695, %v4692_v18  ;;  %v2095_v38 = vsel %vm2025_vm10, %v2022_v6, %v1509_v36  ;;  %v4267_v59 = vcombine.low %v4245_v48, %v4252_v49  ;;  %v11968_v44 = vcombine.low %v5248_v33, %v5256_v29 }
 0x2b8   : > { %v1420_v26 = vpop.permute.xlu0 %1419  ;;  %7650 = vrot.lane.b32.xlu1 %v11945_v17, %s9118_s24  ;;  %v11973_v19 = vadd.f32 %v11396_v1, %v4548_v42  ;;  %v2168_v16 = vsel %vm2098_vm11, %v2095_v38, %v1584_v13  ;;  %v6724_v55 = vsel %vm5746_vm13, %v6236_v8, 0.0  ;;  %v6252_v36 = vrot.slane %v11954_v21, %v10710_v28 }
 0x2b9   : > { %v1874_v61 = vsel %vm1806_vm7, %v1801_v4, %v1265_v30  ;;  %8991 = vpow2.f32 %v4753_v2  ;;  %v4268_v0 = vcombine.low %v4259_v52, %v4266_v35  ;;  %v3278_v40 = vcombine.high %v2168_v16, %v2168_v16 }
 0x2ba   : > { %v1947_v33 = vsel %vm1879_vm8, %v1874_v61, %v1340_v37  ;;  %v3285_v48 = vrot.slane %v2168_v16, %v9797_v57  ;;  %v6770_v49 = vpack.c.bf16 %v6724_v55, %v6724_v55  ;;  %v6255_v42 = vcombine.low %v5255_v45, %v5257_v25 }
 0x2bb   : > { %v1102_v1 = vpop.permute.xlu1 %1101  ;;  %v4275_v13 = vrot.slane %v4267_v59, %v9797_v57  ;;  %v4282_v29 = vrot.slane %v4268_v0, %v9797_v57  ;;  %v7277_v8 = vshll.u32 %v11945_v17, 16  ;;  %v4693_v50 = vmin.f32 %v11973_v19, 0.0 }
 0x2bc   : > { %v1582_v53 = vpop.permute.xlu0 %1581  ;;  %v3292_v30 = vrot.slane %v3278_v40, %v9797_v57  ;;  %v3293_v7 = vcombine.high %v3285_v48, %v3285_v48  ;;  %v7282_v63 = vshll.u32 %v6770_v49, 16  ;;  %v11989_v21 = vrot.slane %v3285_v48, %v9797_v57 }
 0x2bd   : > { %v4283_v37 = vcombine.low %v4275_v13, %v4282_v29  ;;  %v7275_v60 = vshrl.u32 %v11945_v17, 16  ;;  %v7279_v45 = vrot.slane %v7277_v8, 1  ;;  %v7467_v6 = vrot.slane %v11945_v17, 1 }
 0x2be   : > { %v3294_v4 = vcombine.high %v3292_v30, %v3292_v30  ;;  %v3308_v18 = vrot.slane %v3292_v30, %v9797_v57  ;;  %v3315_v25 = vrot.slane %v3293_v7, %v9797_v57  ;;  %v7284_v38 = vrot.slane %v7282_v63, 1 }
 0x2bf   : > { %v1269_v52 = vpop.permute.xlu1 %1268  ;;  %8760 = vmatmul.mubr.msk.bf16.gmra.mxu0 %vm4363_vm12, %v4283_v37  ;;  %v7280_v2 = vor.u32 %v7279_v45, %v7275_v60  ;;  %v2020_v35 = vsel %vm1952_vm9, %v1947_v33, %v1420_v26  ;;  %v7468_v59 = vrot.slane %v6770_v49, 1  ;;  %v1732_v40 = vsel %vm1660_vm4, %v11676_v27, %v1102_v1 }
 0x2c0   : > { %v1182_v16 = vpop.permute.xlu0 %1181  ;;  %v11998_v55 = vrot.slane %v3294_v4, %v9797_v57  ;;  %v3324_v61 = vcombine.high %v3308_v18, %v3308_v18  ;;  %v3325_v0 = vcombine.high %v3315_v25, %v3315_v25  ;;  %v6269_v48 = vrot.slane %v6255_v42, %v10710_v28 }
 0x2c1   : > { %v4755_v13 = vmul.f32 1.442695, %v4693_v50  ;;  %v12004_v29 = vsel %vm633_vm0, %v7280_v2, %v7284_v38  ;;  %v1805_v8 = vsel %vm1733_vm6, %v1732_v40, %v1182_v16  ;;  %v3323_v26 = vcombine.high %v11989_v21, %v11989_v21 }
 0x2c2   : > { %v4286_v33 = vcombine.low %v3325_v0, %v3308_v18  ;;  %7694 = vrot.lane.b32.xlu1 %v12004_v29, %s9119_s25  ;;  %v12012_v49 = vsel %vm976_vm1, %v7467_v6, %v7468_v59  ;;  %v2093_v27 = vsel %vm2025_vm10, %v2020_v35, %v1507_v24  ;;  %v6262_v42 = vrot.slane %v11968_v44, %v10710_v28 }
 0x2c3   : > { %v1424_v1 = vpop.permute.xlu1 %1423  ;;  %v6941_v50 = vshrl.u32 %v11853_v20, 16  ;;  %v4287_v30 = vcombine.low %v11998_v55, %v3324_v61  ;;  %7730 = vrot.lane.b32.xlu0 %v12012_v49, %s9120_s26  ;;  %v2166_v7 = vsel %vm2098_vm11, %v2093_v27, %v1582_v53  ;;  %v6253_v37 = vcombine.low %v6245_v32, %v6252_v36 }
 0x2c4   : > { %v1344_v63 = vpop.permute.xlu0 %1343  ;;  %v3270_v24 = vrot.slane %v2166_v7, %v9797_v57  ;;  %v6947_v60 = vshll.u32 %v2166_v7, 16  ;;  %v1878_v45 = vsel %vm1806_vm7, %v1805_v8, %v1269_v52  ;;  %v6270_v44 = vcombine.low %v6262_v42, %v6269_v48 }
 0x2c5   : > { %v6946_v20 = vor.u32 %v11921_v46, %v6941_v50  ;;  %8993 = vpow2.f32 %v4755_v13  ;;  %v1951_v4 = vsel %vm1879_vm8, %v1878_v45, %v1344_v63  ;;  %v4285_v6 = vcombine.low %v3315_v25, %v3323_v26  ;;  %v12079_v50 = vld [vmem:[%s13108_s5] ss:$0 sm:$0xff] }
 0x2c6   : > { %v8992_v18 = vpop.eup %8991  ;;  %v4308_v53 = vrot.slane %v4286_v33, %v9797_v57  ;;  %7394 = vrot.lane.b32.xlu1 %v11917_v34, %s9104_s18  ;;  %v3277_v51 = vrot.slane %v3270_v24, %v9797_v57  ;;  %v6949_v32 = vrot.slane %v6947_v60, 1  ;;  %v4315_v52 = vrot.slane %v4287_v30, %v9797_v57 }
 0x2c7   : > { %v1586_v36 = vpop.permute.xlu1 %1585  ;;  %v8546_v2 = vadd.f32 -1.0, %v8992_v18  ;;  %7506 = vrot.lane.b32.xlu0 %v11938_v41, %s9105_s19  ;;  %v2024_v46 = vsel %vm1952_vm9, %v1951_v4, %v1424_v1  ;;  %v12040_v25 = vsel %vm633_vm0, %v11780_v15, %v11879_v22  ;;  %v6725_v34 = vsel %vm5687_vm15, %v6253_v37, 0.0 }
 0x2c8   : > { %v1511_v38 = vpop.permute.xlu0 %1510  ;;  %vm4651_vm6 = vcmp.gt.f32.partialorder %v11941_v10, 0.0  ;;  %v4284_v35 = vcombine.low %v3277_v51, %v11989_v21  ;;  %v12047_v16 = vpack.c.bf16 %v6270_v44, %v6725_v34  ;;  %v12054_v0 = vsel %vm633_vm0, %v6946_v20, %v6949_v32 }
 0x2c9   : > { %v2097_v59 = vsel %vm2025_vm10, %v2024_v46, %v1511_v38  ;;  %v12050_v41 = vsel %vm4651_vm6, %v11941_v10, %v8546_v2  ;;  %v4301_v22 = vrot.slane %v4285_v6, %v9797_v57  ;;  %v4317_v13 = vcombine.low %v4308_v53, %v4315_v52  ;;  %v9077_v53 = vld [vmem:[%s13106_s3 + $0x10] ss:$0 sps:$4 sm:$0x33]  }
 0x2ca   : > { %13246 = vst [vmem:[#allocation17_spill] sm:$0xff] %v12047_v16  ;;  %v2170_v61 = vsel %vm2098_vm11, %v2097_v59, %v1586_v36  ;;  %v12058_v15 = vrot.slane %v12050_v41, %v10710_v28  ;;  %v4294_v21 = vrot.slane %v4284_v35, %v9797_v57  ;;  %7396 = vrot.lane.b32.xlu1 %v12004_v29, %s9104_s18  ;;  %v7289_v7 = vshll.u32 %v12047_v16, 16 }
 0x2cb   : > { %v12064_v40 = vpop.permute.xlu1 %7384  ;;  %v4553_v10 = vpop.f32.mrf.mxu0  ;;  %7539 = vrot.lane.b32.xlu0 %v11945_v17, %s9107_s23  ;;  %v3333_v48 = vrot.slane %v2170_v61, %v9797_v57  ;;  %v3326_v1 = vcombine.high %v11998_v55, %v11998_v55  ;;  %v4331_v44 = vrot.slane %v4317_v13, %v9797_v57  ;;  %vm13247_vm8 = vcmask 1041408  }
 0x2cc   : > { %v12069_v8 = vpop.permute.xlu0 %7382  ;;  %v6277_v26 = vrot.slane %v12058_v15, %v10710_v28  ;;  %v4316_v33 = vcombine.low %v4294_v21, %v4301_v22  ;;  %v12082_v30 = vadd.f32 %v12079_v50, %v4553_v10  ;;  %v7027_v51 = vsel %vm13247_vm8, %v9077_v53, 0 }
 0x2cd   : > { %v8733_v27 = vpop.f32.mrf.mxu0  ;;  %v3340_v42 = vrot.slane %v3333_v48, %v9797_v57  ;;  %v7291_v32 = vrot.slane %v7289_v7, 1  ;;  %v7287_v38 = vshrl.u32 %v12047_v16, 16  ;;  %v5258_v61 = vcombine.high %v12050_v41, %v12050_v41  ;;  %v8949_v48 = vld [vmem:[%s13106_s3] sm:$0xff]  }
 0x2ce   : > { %v6727_v63 = vsel %vm5746_vm13, %v6277_v26, 0.0  ;;  %7508 = vrot.lane.b32.xlu1 %v12012_v49, %s9105_s19  ;;  %v4324_v55 = vrot.slane %v4316_v33, %v9797_v57  ;;  %v4694_v4 = vmin.f32 %v12082_v30, 0.0  ;;  %v7470_v7 = vrot.slane %v12047_v16, 1 }
 0x2cf   : > { %v12090_v37 = vpop.permute.xlu1 %7496  ;;  %v4556_v24 = vpop.f32.mrf.mxu0  ;;  %v6772_v60 = vpack.c.bf16 %v6727_v63, %v6727_v63  ;;  %7583 = vrot.lane.b32.xlu0 %v12004_v29, %s9110_s9  ;;  %v4333_v45 = vcombine.low %v3326_v1, %v3340_v42  ;;  %v8948_v29 = vld [vmem:[%s13106_s3 + $0x8] sm:$0xff]   ;;  %v7292_v21 = vor.u32 %v7291_v32, %v7287_v38  ;;  %v5272_v27 = vrot.slane %v5258_v61, %v10710_v28 }
 0x2d0   : > { %v12095_v20 = vpop.permute.xlu0 %7494  ;;  %v4332_v6 = vcombine.low %v4324_v55, %v4331_v44  ;;  %v4757_v2 = vmul.f32 1.442695, %v4694_v4  ;;  %v12108_v52 = vadd.f32 %v12079_v50, %v4556_v24  ;;  %vm8088_vm10 = vcmask 1043456  }
 0x2d1   : > { %v8734_v18 = vpop.f32.mrf.mxu0  ;;  %v7294_v34 = vshll.u32 %v6772_v60, 16  ;;  %v4340_v59 = vrot.slane %v4333_v45, %v9797_v57  ;;  %v7471_v26 = vrot.slane %v6772_v60, 1  ;;  %v13248_v45 = vld [vmem:[#allocation34_spill] sm:$0xff]  ;;  %v5273_v4 = vcombine.high %v12058_v15, %v12058_v15  ;;  %v8951_v15 = vld [vmem:[%s13107_s4 + $0x18] sm:$0xff]  }
 0x2d2   : > { %v8994_v36 = vpop.eup %8993  ;;  %7541 = vrot.lane.b32.xlu1 %v12047_v16, %s9107_s23  ;;  %8764 = vmatmul.mubr.msk.bf16.vlgmr.msra.gmra.mxu1 %vm4363_vm12, %v4332_v6  ;;  %8995 = vpow2.f32 %v4757_v2  ;;  %vm4653_vm2 = vcmp.gt.f32.partialorder %v12082_v30, 0.0  ;;  %vm4654_vm5 = vcmp.gt.f32.partialorder %v12108_v52, 0.0  ;;  %vm7880_vm8 = vcmask 326656  }
 0x2d3   : > { %v12110_v46 = vpop.permute.xlu1 %7529  ;;  %7619 = vrot.lane.b32.xlu0 %v12012_v49, %s9117_s20  ;;  %8772 = vmatpush3.bf16.msra.mxu1 %v7027_v51  ;;  %v8547_v22 = vadd.f32 -1.0, %v8994_v36  ;;  %v4695_v49 = vmin.f32 %v12108_v52, 0.0  ;;  %v7296_v10 = vrot.slane %v7294_v34, 1  ;;  %v12152_v55 = vsel %vm976_vm1, %v7470_v7, %v7471_v26  ;;  %v8952_v26 = vld [vmem:[%s13107_s4 + $0x10] sm:$0xff]  }
 0x2d4   : > { %v12116_v35 = vpop.permute.xlu0 %7527  ;;  %8767 = vmatprep.mubr.msk.bf16.mxu1 %vm9112_vm3, %v13182_v3  ;;  %8773 = vmatprep.subr.bf16.mxu1 %v8948_v29  ;;  %v4347_v3 = vrot.slane %v4340_v59, %v9797_v57  ;;  %vm4652_vm3 = vcmp.gt.f32.partialorder %v11973_v19, 0.0  ;;  %v8950_v57 = vld [vmem:[%s13107_s4 + $0x20] ss:$0 sps:$4 sm:$0xff]   ;;  %v6278_v2 = vcombine.low %v5273_v4, %v5272_v27  ;;  %v13249_v59 = vld [vmem:[#allocation35_spill] sm:$0xff] }
 0x2d5   : > { %v12132_v41 = vsel %vm633_vm0, %v7292_v21, %v7296_v10  ;;  %v4857_v1 = vsel %vm4652_vm3, %v11973_v19, %v8547_v22  ;;  %v4759_v42 = vmul.f32 1.442695, %v4695_v49  ;;  %v5274_v19 = vcombine.high %v5272_v27, %v5272_v27  ;;  %v13250_v21 = vld [vmem:[#allocation36_spill] sm:$0xff] }
 0x2d6   : > { %7585 = vrot.lane.b32.xlu1 %v12132_v41, %s9110_s9  ;;  %v5282_v60 = vrot.slane %v4857_v1, %v10710_v28  ;;  %v5275_v44 = vcombine.high %v4857_v1, %v4857_v1  ;;  %v8090_v36 = vsel %vm8088_vm10, %v8950_v57, 0  ;;  %v6286_v27 = vrot.slane %v6278_v2, %v10710_v28 }
 0x2d7   : > { %v12127_v13 = vpop.permute.xlu1 %7573  ;;  %7652 = vrot.lane.b32.xlu0 %v12047_v16, %s9118_s24  ;;  %8774 = vmatpush3.bf16.msra.mxu1 %v8948_v29  ;;  %8997 = vpow2.f32 %v4759_v42  ;;  %vm7913_vm3 = vcmask 392192  }
 0x2d8   : > { %v12135_v33 = vpop.permute.xlu0 %7571  ;;  %8775 = vmatprep.subr.bf16.mxu1 %v8949_v48  ;;  %v6279_v53 = vcombine.low %v5274_v19, %v5282_v60  ;;  %v5289_v32 = vrot.slane %v5275_v44, %v10710_v28  ;;  %v5290_v29 = vcombine.high %v5282_v60, %v5282_v60 }
 0x2da   : > { %8768 = vmatmul.mubr.msk.bf16.gmra.mxu1 %vm4363_vm12, %v4347_v3  ;;  %7621 = vrot.lane.b32.xlu1 %v12152_v55, %s9117_s20  ;;  %v6293_v22 = vrot.slane %v6279_v53, %v10710_v28  ;;  %v6295_v10 = vcombine.low %v5290_v29, %v5289_v32 }
 0x2db   : > { %v12143_v63 = vpop.permute.xlu1 %7609  ;;  %7696 = vrot.lane.b32.xlu0 %v12132_v41, %s9119_s25  ;;  %8777 = vmatprep.mubr.msk.bf16.mxu1 %vm4363_vm12, %v13248_v45 }
 0x2dc   : > { %v12154_v24 = vpop.permute.xlu0 %7607  ;;  %8776 = vmatpush3.bf16.msra.mxu1 %v8949_v48  ;;  %v5291_v48 = vcombine.high %v5289_v32, %v5289_v32  ;;  %v6294_v19 = vcombine.low %v6286_v27, %v6293_v22  ;;  %v6303_v45 = vrot.slane %v6295_v10, %v10710_v28  ;;  %v13252_v10 = vld [vmem:[#allocation2_spill] sm:$0xff] }
 0x2dd   : > { %8858 = vmatprep.subr.msk.bf16.mxu1 %vm8088_vm10, %v8950_v57  ;;  %vm7946_vm10 = vcmask 457728  }
 0x2de   : > { %v6728_v22 = vsel %vm5687_vm15, %v6294_v19, 0.0 }
 0x2df   : > { %v12163_v18 = vpop.permute.xlu1 %7642  ;;  %7732 = vrot.lane.b32.xlu0 %v12152_v55, %s9120_s26  ;;  %v8996_v51 = vpop.eup %8995 }
 0x2e0   : > { %v12168_v6 = vpop.permute.xlu0 %7640  ;;  %v8548_v38 = vadd.f32 -1.0, %v8996_v51  ;;  %v8953_v51 = vld [vmem:[%s13107_s4 + $0x8] sm:$0xff]  }
 0x2e2   : > { %8778 = vmatmul.mubr.msk.bf16.vlgmr.msra.gmra.mxu1 %vm4363_vm12, %v13249_v59  ;;  %v12184_v49 = vsel %vm4653_vm2, %v12082_v30, %v8548_v38  ;;  %v13251_v38 = vld [vmem:[#allocation37_spill] sm:$0xff]  ;;  %vm7979_vm2 = vcmask 523264  }
 0x2e3   : > { %v12175_v34 = vpop.permute.xlu1 %7686  ;;  %8781 = vmatprep.mubr.msk.bf16.mxu1 %vm4363_vm12, %v13250_v21  ;;  %8810 = vmatpush3.bf16.msra.mxu1 %v8090_v36  ;;  %v5299_v3 = vrot.slane %v12184_v49, %v10710_v28 }
 0x2e4   : > { %v12180_v61 = vpop.permute.xlu0 %7684  ;;  %8811 = vmatprep.subr.bf16.mxu1 %v8951_v15  ;;  %v8998_v32 = vpop.eup %8997 }
 0x2e5   : > { %v5307_v30 = vcombine.high %v5299_v3, %v5299_v3  ;;  %v6296_v42 = vcombine.low %v5291_v48, %v5299_v3  ;;  %v8549_v3 = vadd.f32 -1.0, %v8998_v32 }
 0x2e6   : > { %v4561_v7 = vpop.f32.mrf.mxu0 }
 0x2e7   : > { %v12194_v1 = vpop.permute.xlu1 %7386  ;;  %v12199_v60 = vadd.f32 %v12079_v50, %v4561_v7  ;;  %8812 = vmatpush3.bf16.msra.mxu1 %v8951_v15  ;;  %v6310_v44 = vrot.slane %v6296_v42, %v10710_v28  ;;  %v6318_v4 = vrot.slane %v5307_v30, %v10710_v28  ;;  %v8954_v42 = vld [vmem:[%s13107_s4] sm:$0xff]  }
 0x2e8   : > { %v12196_v57 = vpop.permute.xlu0 %7720  ;;  %v8737_v53 = vpop.f32.mrf.mxu0  ;;  %8813 = vmatprep.subr.bf16.mxu1 %v8952_v26 }
 0x2e9   : > { %v4696_v29 = vmin.f32 %v12199_v60, 0.0  ;;  %v6311_v2 = vcombine.low %v6303_v45, %v6310_v44  ;;  %v6730_v30 = vsel %vm5746_vm13, %v6318_v4, 0.0  ;;  %v4859_v4 = vsel %vm4654_vm5, %v12108_v52, %v8549_v3 }
 0x2ea   : > { %8782 = vmatmul.mubr.msk.bf16.gmra.mxu1 %vm4363_vm12, %v13251_v38  ;;  %v4564_v15 = vpop.f32.mrf.mxu0  ;;  %vm4655_vm14 = vcmp.gt.f32.partialorder %v12199_v60, 0.0  ;;  %vm8055_vm5 = vcmask 588800  }
 0x2eb   : > { %v12208_v36 = vpop.permute.xlu1 %7388  ;;  %v4761_v21 = vmul.f32 1.442695, %v4696_v29  ;;  %8785 = vmatprep.mubr.msk.bf16.mxu1 %vm4363_vm12, %v13252_v10  ;;  %8814 = vmatpush3.bf16.msra.mxu1 %v8952_v26  ;;  %v12218_v48 = vpack.c.bf16 %v6311_v2, %v6728_v22  ;;  %v6774_v26 = vpack.c.bf16 %v6730_v30, %v6730_v30  ;;  %v12234_v44 = vadd.f32 %v12079_v50, %v4564_v15  ;;  %v13254_v22 = vld [vmem:[#allocation3_spill] sm:$0xff] }
 0x2ec   : > { %v12212_v59 = vpop.permute.xlu0 %7722  ;;  %v8738_v27 = vpop.f32.mrf.mxu0  ;;  %8815 = vmatprep.subr.bf16.mxu1 %v8953_v51  ;;  %v5292_v2 = vcombine.high %v12184_v49, %v12184_v49  ;;  %v5316_v10 = vrot.slane %v4859_v4, %v10710_v28  ;;  %v5309_v49 = vcombine.high %v4859_v4, %v4859_v4 }
 0x2ed   : > { %13253 = vst [vmem:[#allocation19_spill] sm:$0xff] %v12218_v48  ;;  %8999 = vpow2.f32 %v4761_v21  ;;  %7654 = vrot.lane.b32.xlu1 %v12218_v48, %s9118_s24  ;;  %v7473_v45 = vrot.slane %v12218_v48, 1  ;;  %v7474_v53 = vrot.slane %v6774_v26, 1  ;;  %v7301_v32 = vshll.u32 %v12218_v48, 16  ;;  %v13255_v27 = vld [vmem:[#allocation6_spill] sm:$0xff] }
 0x2ee   : > { %v7306_v29 = vshll.u32 %v6774_v26, 16  ;;  %v4697_v3 = vmin.f32 %v12234_v44, 0.0  ;;  %v5324_v43 = vcombine.high %v5316_v10, %v5316_v10  ;;  %v5323_v4 = vrot.slane %v5309_v49, %v10710_v28 }
 0x2ef   : > { %v12225_v7 = vpop.permute.xlu1 %7500  ;;  %8816 = vmatpush3.bf16.msra.mxu1 %v8953_v51  ;;  %v7475_v21 = vsel %vm976_vm1, %v7473_v45, %v7474_v53  ;;  %v7299_v51 = vshrl.u32 %v12218_v48, 16  ;;  %v7303_v52 = vrot.slane %v7301_v32, 1  ;;  %v5306_v45 = vrot.slane %v5292_v2, %v10710_v28 }
 0x2f0   : > { %v12229_v19 = vpop.permute.xlu0 %7498  ;;  %8817 = vmatprep.subr.bf16.mxu1 %v8954_v42  ;;  %7734 = vrot.lane.b32.xlu0 %v7475_v21, %s9120_s26  ;;  %v7308_v26 = vrot.slane %v7306_v29, 1  ;;  %v4763_v56 = vmul.f32 1.442695, %v4697_v3  ;;  %vm4656_vm6 = vcmp.gt.f32.partialorder %v12234_v44, 0.0 }
 0x2f1   : > { %v7304_v30 = vor.u32 %v7303_v52, %v7299_v51  ;;  %v5308_v51 = vcombine.high %v5306_v45, %v5306_v45  ;;  %v6320_v52 = vcombine.low %v5316_v10, %v5324_v43 }
 0x2f2   : > { %8786 = vmatmul.mubr.msk.bf16.gmra.mxu1 %vm4363_vm12, %v13254_v22  ;;  %9001 = vpow2.f32 %v4763_v56 }
 0x2f3   : > { %v12240_v38 = vpop.permute.xlu1 %7533  ;;  %8789 = vmatprep.mubr.msk.bf16.mxu1 %vm4363_vm12, %v13255_v27  ;;  %8818 = vmatpush3.bf16.msra.mxu1 %v8954_v42  ;;  %v7309_v22 = vsel %vm633_vm0, %v7304_v30, %v7308_v26  ;;  %v13256_v42 = vld [vmem:[#allocation14_spill] sm:$0xff]  ;;  %v13257_v30 = vld [vmem:[#allocation4_spill] sm:$0xff]  ;;  %v6319_v49 = vcombine.low %v5306_v45, %v5308_v51 }
 0x2f4   : > { %v12245_v15 = vpop.permute.xlu0 %7531  ;;  %7698 = vrot.lane.b32.xlu1 %v7309_v22, %s9119_s25  ;;  %7510 = vrot.lane.b32.xlu0 %v12152_v55, %s9105_s19  ;;  %v5325_v55 = vcombine.high %v5323_v4, %v5323_v4 }
 0x2f5   : > { %v6327_v45 = vrot.slane %v6319_v49, %v10710_v28 }
 0x2f7   : > { %v12254_v53 = vpop.permute.xlu1 %7577 }
 0x2f8   : > { %v12257_v32 = vpop.permute.xlu0 %7575  ;;  %7398 = vrot.lane.b32.xlu1 %v12132_v41, %s9104_s18  ;;  %7543 = vrot.lane.b32.xlu0 %v12218_v48, %s9107_s23  ;;  %v6336_v41 = vcombine.low %v5323_v4, %v5325_v55 }
 0x2fa   : > { %v9000_v29 = vpop.eup %8999  ;;  %8790 = vmatmul.mubr.msk.bf16.gmra.mxu1 %vm4363_vm12, %v13256_v42 }
 0x2fb   : > { %v8550_v27 = vadd.f32 -1.0, %v9000_v29  ;;  %8793 = vmatprep.mubr.msk.bf16.mxu1 %vm4363_vm12, %v13257_v30  ;;  %v12271_v3 = vpop.permute.xlu1 %7613  ;;  %v6334_v29 = vrot.slane %v6320_v52, %v10710_v28 }
 0x2fc   : > { %v12265_v2 = vpop.permute.xlu0 %7611  ;;  %7400 = vrot.lane.b32.xlu1 %v7309_v22, %s9104_s18  ;;  %7587 = vrot.lane.b32.xlu0 %v7309_v22, %s9110_s9  ;;  %v6344_v22 = vrot.slane %v6336_v41, %v10710_v28 }
 0x2fd   : > { %v4860_v26 = vsel %vm4655_vm14, %v12199_v60, %v8550_v27  ;;  %v6335_v4 = vcombine.low %v6327_v45, %v6334_v29 }
 0x2fe   : > { %v5326_v43 = vcombine.high %v4860_v26, %v4860_v26  ;;  %v5333_v56 = vrot.slane %v4860_v26, %v10710_v28  ;;  %v13258_v26 = vld [vmem:[#allocation10_spill] sm:$0xff] }
 0x2ff   : > { %v12287_v51 = vpop.permute.xlu1 %7646 }
 0x300   : > { %v12278_v10 = vpop.permute.xlu0 %7644  ;;  %v12283_v42 = vrot.slane %v5326_v43, %v10710_v28  ;;  %v5341_v30 = vcombine.high %v5333_v56, %v5333_v56  ;;  %7512 = vrot.lane.b32.xlu1 %v7475_v21, %s9105_s19  ;;  %7623 = vrot.lane.b32.xlu0 %v7475_v21, %s9117_s20 }
 0x302   : > { %v6337_v60 = vcombine.low %v5333_v56, %v5341_v30  ;;  %v6359_v27 = vrot.slane %v12283_v42, %v10710_v28  ;;  %8794 = vmatmul.mubr.msk.bf16.gmra.mxu1 %vm4363_vm12, %v13258_v26 }
 0x303   : > { %8797 = vmatprep.mubr.msk.bf16.mxu1 %vm4363_vm12, %v11206_v5  ;;  %v6731_v5 = vsel %vm5687_vm15, %v6335_v4, 0.0  ;;  %v12310_v26 = vpop.permute.xlu1 %7690 }
 0x304   : > { %v12293_v52 = vpop.permute.xlu0 %7688  ;;  %v6351_v55 = vrot.slane %v6337_v60, %v10710_v28  ;;  %v6733_v49 = vsel %vm5746_vm13, %v6359_v27, 0.0  ;;  %v9002_v60 = vpop.eup %9001 }
 0x305   : > { %v4569_v43 = vpop.f32.mrf.mxu0  ;;  %v6776_v41 = vpack.c.bf16 %v6733_v49, %v6733_v49 }
 0x306   : > { %v6352_v56 = vcombine.low %v6344_v22, %v6351_v55  ;;  %v12304_v30 = vadd.f32 %v12079_v50, %v4569_v43  ;;  %v8551_v55 = vadd.f32 -1.0, %v9002_v60  ;;  %v7753_v60 = vsel %vm1660_vm4, 0.0|0.0, %v12069_v8 }
 0x307   : > { %v8741_v45 = vpop.f32.mrf.mxu0 }
 0x308   : > { %v12306_v29 = vpop.permute.xlu0 %7724  ;;  %v12312_v48 = vpack.c.bf16 %v6352_v56, %v6731_v5  ;;  %v4698_v21 = vmin.f32 %v12304_v30, 0.0  ;;  %v7318_v56 = vshll.u32 %v6776_v41, 16  ;;  %vm4657_vm14 = vcmp.gt.f32.partialorder %v12304_v30, 0.0 }
 0x309   : > { %v4572_v27 = vpop.f32.mrf.mxu0 }
 0x30a   : > { %v4765_v16 = vmul.f32 1.442695, %v4698_v21  ;;  %v12316_v22 = vadd.f32 %v12079_v50, %v4572_v27  ;;  %8798 = vmatmul.mubr.msk.bf16.gmra.mxu1 %vm4363_vm12, %v11465_v47  ;;  %7545 = vrot.lane.b32.xlu1 %v12312_v48, %s9107_s23  ;;  %v7313_v43 = vshll.u32 %v12312_v48, 16  ;;  %v12330_v47 = vpop.permute.xlu1 %7390  ;;  %v7311_v45 = vshrl.u32 %v12312_v48, 16 }
 0x30b   : > { %v8742_v49 = vpop.f32.mrf.mxu0  ;;  %8801 = vmatprep.mubr.msk.bf16.mxu1 %vm4363_vm12, %v11562_v9  ;;  %7656 = vrot.lane.b32.xlu0 %v12312_v48, %s9118_s24  ;;  %v7320_v39 = vrot.slane %v7318_v56, 1 }
 0x30c   : > { %v12322_v4 = vpop.permute.xlu0 %7726  ;;  %9003 = vpow2.f32 %v4765_v16  ;;  %v4699_v5 = vmin.f32 %v12316_v22, 0.0  ;;  %v7315_v21 = vrot.slane %v7313_v43, 1  ;;  %v4861_v49 = vsel %vm4656_vm6, %v12234_v44, %v8551_v55 }
 0x30d   : > { %13259 = vst [vmem:[#allocation21_spill] sm:$0xff] %v12322_v4  ;;  %v7785_v16 = vsel %vm1806_vm7, %v7753_v60, %v12095_v20  ;;  %v7476_v43 = vrot.slane %v12312_v48, 1  ;;  %v5343_v4 = vcombine.high %v4861_v49, %v4861_v49  ;;  %v5350_v8 = vrot.slane %v4861_v49, %v10710_v28 }
 0x30e   : > { %v4767_v9 = vmul.f32 1.442695, %v4699_v5  ;;  %v7316_v17 = vor.u32 %v7315_v21, %v7311_v45  ;;  %v7755_v20 = vsel %vm1660_vm4, %v13232_v31, %v12064_v40  ;;  %v7817_v55 = vsel %vm1952_vm9, %v7785_v16, %v12116_v35 }
 0x30f   : > { %v7849_v40 = vsel %vm2098_vm11, %v7817_v55, %v12135_v33  ;;  %v5357_v35 = vrot.slane %v5343_v4, %v10710_v28  ;;  %v5358_v56 = vcombine.high %v5350_v8, %v5350_v8  ;;  %v5342_v4 = vcombine.high %v12283_v42, %v12283_v42 }
 0x310   : > { %v12336_v27 = vpop.permute.xlu0 %7502  ;;  %9005 = vpow2.f32 %v4767_v9  ;;  %v12342_v14 = vsel %vm633_vm0, %v7316_v17, %v7320_v39  ;;  %v12355_v39 = vpop.permute.xlu1 %7392  ;;  %v7477_v17 = vrot.slane %v6776_v41, 1 }
 0x311   : > { %7589 = vrot.lane.b32.xlu1 %v12342_v14, %s9110_s9  ;;  %7700 = vrot.lane.b32.xlu0 %v12342_v14, %s9119_s25  ;;  %v6361_v60 = vcombine.low %v5358_v56, %v5357_v35 }
 0x312   : > { %8802 = vmatmul.mubr.msk.bf16.gmra.mxu1 %vm4363_vm12, %v11666_v23  ;;  %v7787_v23 = vsel %vm1806_vm7, %v7755_v20, %v12090_v37  ;;  %v7882_v37 = vsel %vm7880_vm8, %v7849_v40, %v12154_v24 }
 0x313   : > { %8805 = vmatprep.mubr.msk.bf16.mxu1 %vm4363_vm12, %v12040_v25  ;;  %v7819_v31 = vsel %vm1952_vm9, %v7787_v23, %v12110_v46  ;;  %v12370_v25 = vsel %vm976_vm1, %v7476_v43, %v7477_v17  ;;  %v7915_v5 = vsel %vm7913_vm3, %v7882_v37, %v12168_v6  ;;  %v7757_v6 = vsel %vm1660_vm4, %v11233_v11, %v12194_v1 }
 0x314   : > { %v12350_v44 = vpop.permute.xlu0 %7535  ;;  %v7851_v41 = vsel %vm2098_vm11, %v7819_v31, %v12127_v13  ;;  %v7948_v24 = vsel %vm7946_vm10, %v7915_v5, %v12180_v61  ;;  %v12403_v61 = vpop.permute.xlu1 %7504  ;;  %v6375_v20 = vrot.slane %v6361_v60, %v10710_v28 }
 0x315   : > { %7625 = vrot.lane.b32.xlu1 %v12370_v25, %s9117_s20  ;;  %v7884_v33 = vsel %vm7880_vm8, %v7851_v41, %v12143_v63  ;;  %7736 = vrot.lane.b32.xlu0 %v12370_v25, %s9120_s26  ;;  %v7981_v21 = vsel %vm7979_vm2, %v7948_v24, %v12196_v57 }
 0x316   : > { %v7917_v13 = vsel %vm7913_vm3, %v7884_v33, %v12163_v18  ;;  %v7759_v18 = vsel %vm1660_vm4, %v11379_v12, %v12208_v36  ;;  %v6360_v36 = vcombine.low %v5342_v4, %v5350_v8 }
 0x317   : > { %v7950_v63 = vsel %vm7946_vm10, %v7917_v13, %v12175_v34  ;;  %v7791_v42 = vsel %vm1806_vm7, %v7759_v18, %v12225_v7  ;;  %v7789_v34 = vsel %vm1806_vm7, %v7757_v6, %v12229_v19 }
 0x318   : > { %v12379_v46 = vpop.permute.xlu0 %7579  ;;  %v7983_v1 = vsel %vm7979_vm2, %v7950_v63, %v12212_v59  ;;  %v7823_v12 = vsel %vm1952_vm9, %v7791_v42, %v12240_v38  ;;  %v7821_v57 = vsel %vm1952_vm9, %v7789_v34, %v12245_v15  ;;  %v5359_v38 = vcombine.high %v5357_v35, %v5357_v35  ;;  %v12438_v31 = vpop.permute.xlu1 %7537 }
 0x319   : > { %v9004_v45 = vpop.eup %9003  ;;  %v7855_v7 = vsel %vm2098_vm11, %v7823_v12, %v12254_v53  ;;  %v6368_v41 = vrot.slane %v6360_v36, %v10710_v28 }
 0x31a   : > { %v8552_v9 = vadd.f32 -1.0, %v9004_v45  ;;  %8806 = vmatmul.mubr.msk.bf16.gmra.mxu1 %vm4363_vm12, %v12054_v0  ;;  %v7853_v0 = vsel %vm2098_vm11, %v7821_v57, %v12257_v32  ;;  %v7888_v59 = vsel %vm7880_vm8, %v7855_v7, %v12271_v3  ;;  %vm4658_vm12 = vcmp.gt.f32.partialorder %v12316_v22, 0.0 }
 0x31b   : > { %8819 = vmatprep.mubr.msk.bf16.mxu1 %vm8055_vm5, %v7981_v21  ;;  %v7886_v8 = vsel %vm7880_vm8, %v7853_v0, %v12265_v2  ;;  %v7921_v53 = vsel %vm7913_vm3, %v7888_v59, %v12287_v51  ;;  %v7761_v51 = vsel %vm1660_vm4, %v11544_v58, %v12330_v47  ;;  %v6376_v13 = vcombine.low %v6368_v41, %v6375_v20  ;;  %v13260_v59 = vld [vmem:[#allocation21_spill] sm:$0xff] }
 0x31c   : > { %v7616_v11 = vpop.permute.xlu0 %7615  ;;  %v4862_v19 = vsel %vm4657_vm14, %v12304_v30, %v8552_v9  ;;  %v7919_v55 = vsel %vm7913_vm3, %v7886_v8, %v12278_v10  ;;  %v7793_v24 = vsel %vm1806_vm7, %v7761_v51, %v12336_v27  ;;  %v7954_v36 = vsel %vm7946_vm10, %v7921_v53, %v12310_v26 }
 0x31d   : > { %v5360_v49 = vcombine.high %v4862_v19, %v4862_v19  ;;  %v5367_v15 = vrot.slane %v4862_v19, %v10710_v28  ;;  %v4577_v16 = vpop.f32.mrf.mxu0  ;;  %v9006_v43 = vpop.eup %9005  ;;  %v7952_v2 = vsel %vm7946_vm10, %v7919_v55, %v12293_v52  ;;  %v6734_v9 = vsel %vm5687_vm15, %v6376_v13, 0.0 }
 0x31e   : > { %v12433_v32 = vadd.f32 %v12079_v50, %v4577_v16  ;;  %v8553_v33 = vadd.f32 -1.0, %v9006_v43  ;;  %v7985_v10 = vsel %vm7979_vm2, %v7952_v2, %v12306_v29  ;;  %v7825_v29 = vsel %vm1952_vm9, %v7793_v24, %v12350_v44 }
 0x31f   : > { %v5374_v3 = vrot.slane %v5360_v49, %v10710_v28  ;;  %v5375_v17 = vcombine.high %v5367_v15, %v5367_v15  ;;  %v6377_v23 = vcombine.low %v5359_v38, %v5367_v15  ;;  %v8745_v40 = vpop.f32.mrf.mxu0  ;;  %v7857_v27 = vsel %vm2098_vm11, %v7825_v29, %v12379_v46 }
 0x320   : > { %v7649_v30 = vpop.permute.xlu0 %7648  ;;  %v4700_v37 = vmin.f32 %v12433_v32, 0.0  ;;  %v4863_v60 = vsel %vm4658_vm12, %v12316_v22, %v8553_v33  ;;  %v7890_v34 = vsel %vm7880_vm8, %v7857_v27, %v7616_v11  ;;  %v7987_v38 = vsel %vm7979_vm2, %v7954_v36, %v13260_v59 }
 0x321   : > { %v5376_v35 = vcombine.high %v5374_v3, %v5374_v3  ;;  %v6378_v56 = vcombine.low %v5375_v17, %v5374_v3  ;;  %v4580_v5 = vpop.f32.mrf.mxu0  ;;  %v6385_v58 = vrot.slane %v6377_v23, %v10710_v28  ;;  %v7582_v42 = vpop.permute.xlu1 %7581  ;;  %v7923_v12 = vsel %vm7913_vm3, %v7890_v34, %v7649_v30  ;;  %v13261_v23 = vld [vmem:[#allocation33_spill] sm:$0xff] }
 0x322   : > { %v4769_v4 = vmul.f32 1.442695, %v4700_v37  ;;  %8820 = vmatmul.mubr.msk.bf16.vlgmr.msra.gmra.mxu1 %vm8055_vm5, %v7983_v1  ;;  %v12453_v52 = vadd.f32 %v12079_v50, %v4580_v5  ;;  %v5377_v0 = vcombine.high %v4863_v60, %v4863_v60  ;;  %v5384_v17 = vrot.slane %v4863_v60, %v10710_v28 }
 0x323   : > { %v6392_v47 = vrot.slane %v6378_v56, %v10710_v28  ;;  %v6400_v45 = vrot.slane %v5376_v35, %v10710_v28  ;;  %8823 = vmatprep.mubr.msk.bf16.mxu1 %vm8055_vm5, %v7985_v10  ;;  %v8746_v63 = vpop.f32.mrf.mxu0  ;;  %v7763_v55 = vsel %vm1660_vm4, %v13261_v23, %v12355_v39  ;;  %vm4659_vm6 = vcmp.gt.f32.partialorder %v12433_v32, 0.0 }
 0x324   : > { %v7693_v6 = vpop.permute.xlu0 %7692  ;;  %9007 = vpow2.f32 %v4769_v4  ;;  %v4701_v21 = vmin.f32 %v12453_v52, 0.0  ;;  %v5391_v53 = vrot.slane %v5377_v0, %v10710_v28  ;;  %v7795_v40 = vsel %vm1806_vm7, %v7763_v55, %v12403_v61 }
 0x325   : > { %v6393_v18 = vcombine.low %v6385_v58, %v6392_v47  ;;  %v6736_v44 = vsel %vm5746_vm13, %v6400_v45, 0.0  ;;  %v7956_v22 = vsel %vm7946_vm10, %v7923_v12, %v7693_v6  ;;  %v7827_v37 = vsel %vm1952_vm9, %v7795_v40, %v12438_v31 }
 0x326   : > { %v4771_v1 = vmul.f32 1.442695, %v4701_v21  ;;  %v6778_v57 = vpack.c.bf16 %v6736_v44, %v6736_v44  ;;  %v7618_v16 = vpop.permute.xlu1 %7617  ;;  %v5393_v51 = vcombine.high %v5391_v53, %v5391_v53  ;;  %v7859_v56 = vsel %vm2098_vm11, %v7827_v37, %v7582_v42 }
 0x327   : > { %v12472_v46 = vpack.c.bf16 %v6393_v18, %v6734_v9  ;;  %v5392_v33 = vcombine.high %v5384_v17, %v5384_v17  ;;  %v7892_v39 = vsel %vm7880_vm8, %v7859_v56, %v7618_v16  ;;  %vm4660_vm14 = vcmp.gt.f32.partialorder %v12453_v52, 0.0 }
 0x328   : > { %v7729_v7 = vpop.permute.xlu0 %7728  ;;  %9009 = vpow2.f32 %v4771_v1  ;;  %v7480_v11 = vrot.slane %v6778_v57, 1  ;;  %v7330_v26 = vshll.u32 %v6778_v57, 16  ;;  %v6402_v13 = vcombine.low %v5391_v53, %v5393_v51 }
 0x329   : > { %v7989_v19 = vsel %vm7979_vm2, %v7956_v22, %v7729_v7  ;;  %7658 = vrot.lane.b32.xlu1 %v12472_v46, %s9118_s24  ;;  %v7479_v49 = vrot.slane %v12472_v46, 1  ;;  %v7325_v15 = vshll.u32 %v12472_v46, 16  ;;  %v7323_v20 = vshrl.u32 %v12472_v46, 16 }
 0x32a   : > { %8824 = vmatmul.mubr.msk.bf16.gmra.mxu1 %vm8055_vm5, %v7987_v38  ;;  %v7332_v3 = vrot.slane %v7330_v26, 1  ;;  %v7651_v41 = vpop.permute.xlu1 %7650  ;;  %v6401_v29 = vcombine.low %v5384_v17, %v5392_v33  ;;  %v13262_v33 = vld [vmem:[#allocation20_spill] sm:$0xff] }
 0x32b   : > { %v7481_v43 = vsel %vm976_vm1, %v7479_v49, %v7480_v11  ;;  %8827 = vmatprep.mubr.msk.bf16.mxu1 %vm8055_vm5, %v7989_v19  ;;  %v7327_v8 = vrot.slane %v7325_v15, 1  ;;  %v7925_v61 = vsel %vm7913_vm3, %v7892_v39, %v7651_v41 }
 0x32c   : > { %7738 = vrot.lane.b32.xlu0 %v7481_v43, %s9120_s26  ;;  %v6409_v1 = vrot.slane %v6401_v29, %v10710_v28 }
 0x32d   : > { %v7328_v30 = vor.u32 %v7327_v8, %v7323_v20 }
 0x32f   : > { %v7333_v2 = vsel %vm633_vm0, %v7328_v30, %v7332_v3 }
 0x330   : > { %7702 = vrot.lane.b32.xlu1 %v7333_v2, %s9119_s25  ;;  %7514 = vrot.lane.b32.xlu0 %v12370_v25, %s9105_s19 }
 0x331   : > { %v9008_v35 = vpop.eup %9007 }
 0x332   : > { %v8554_v10 = vadd.f32 -1.0, %v9008_v35 }
 0x334   : > { %v7695_v5 = vpop.permute.xlu1 %7694  ;;  %v4864_v31 = vsel %vm4659_vm6, %v12433_v32, %v8554_v10  ;;  %7402 = vrot.lane.b32.xlu1 %v12342_v14, %s9104_s18  ;;  %7547 = vrot.lane.b32.xlu0 %v12472_v46, %s9107_s23  ;;  %v6416_v14 = vrot.slane %v6402_v13, %v10710_v28 }
 0x335   : > { %v7958_v24 = vsel %vm7946_vm10, %v7925_v61, %v7695_v5  ;;  %v7731_v4 = vpop.permute.xlu0 %7730  ;;  %v9010_v25 = vpop.eup %9009  ;;  %v5394_v58 = vcombine.high %v4864_v31, %v4864_v31  ;;  %v5401_v47 = vrot.slane %v4864_v31, %v10710_v28 }
 0x336   : > { %v7991_v45 = vsel %vm7979_vm2, %v7958_v24, %v7731_v4  ;;  %v8555_v63 = vadd.f32 -1.0, %v9010_v25  ;;  %v6417_v22 = vcombine.low %v6409_v1, %v6416_v14 }
 0x337   : > { %8828 = vmatmul.mubr.msk.bf16.gmra.mxu1 %vm8055_vm5, %v7991_v45  ;;  %v5408_v32 = vrot.slane %v5394_v58, %v10710_v28  ;;  %v5409_v6 = vcombine.high %v5401_v47, %v5401_v47 }
 0x338   : > { %v4585_v27 = vpop.f32.mrf.mxu0  ;;  %v4865_v21 = vsel %vm4660_vm14, %v12453_v52, %v8555_v63  ;;  %7404 = vrot.lane.b32.xlu1 %v7333_v2, %s9104_s18  ;;  %7591 = vrot.lane.b32.xlu0 %v7333_v2, %s9110_s9  ;;  %v7395_v23 = vpop.permute.xlu1 %7394 }
 0x339   : > { %v7507_v18 = vpop.permute.xlu0 %7506  ;;  %v4586_v60 = vadd.f32 %v12079_v50, %v4585_v27  ;;  %v5410_v42 = vcombine.high %v5408_v32, %v5408_v32  ;;  %v6418_v34 = vcombine.low %v5401_v47, %v5409_v6  ;;  %v12523_v44 = vrot.slane %v4865_v21, %v10710_v28 }
 0x33a   : > { %v8749_v9 = vpop.f32.mrf.mxu0  ;;  %v5411_v41 = vcombine.high %v4865_v21, %v4865_v21  ;;  %v7765_v39 = vsel %vm1660_vm4, %v13262_v33, %v7395_v23 }
 0x33b   : > { %v4702_v12 = vmin.f32 %v4586_v60, 0.0  ;;  %v6419_v57 = vcombine.low %v5408_v32, %v5410_v42  ;;  %v6441_v52 = vrot.slane %v12523_v44, %v10710_v28  ;;  %v6426_v19 = vrot.slane %v6418_v34, %v10710_v28 }
 0x33c   : > { %v4588_v36 = vpop.f32.mrf.mxu0  ;;  %7516 = vrot.lane.b32.xlu1 %v7481_v43, %s9105_s19  ;;  %7627 = vrot.lane.b32.xlu0 %v7481_v43, %s9117_s20  ;;  %v6737_v43 = vsel %vm5687_vm15, %v6417_v22, 0.0  ;;  %v5425_v61 = vrot.slane %v5411_v41, %v10710_v28  ;;  %v7797_v5 = vsel %vm1806_vm7, %v7765_v39, %v7507_v18  ;;  %v12560_v13 = vpop.permute.xlu1 %7396  ;;  %v5426_v24 = vcombine.high %v12523_v44, %v12523_v44 }
 0x33d   : > { %v7540_v7 = vpop.permute.xlu0 %7539  ;;  %v4773_v0 = vmul.f32 1.442695, %v4702_v12  ;;  %v12531_v11 = vadd.f32 %v12079_v50, %v4588_v36  ;;  %v6433_v59 = vrot.slane %v6419_v57, %v10710_v28  ;;  %v6739_v49 = vsel %vm5746_vm13, %v6441_v52, 0.0 }
 0x33e   : > { %v8750_v38 = vpop.f32.mrf.mxu0  ;;  %v6780_v16 = vpack.c.bf16 %v6739_v49, %v6739_v49  ;;  %v7829_v4 = vsel %vm1952_vm9, %v7797_v5, %v7540_v7  ;;  %vm4661_vm12 = vcmp.gt.f32.partialorder %v4586_v60, 0.0  ;;  %v5427_v6 = vcombine.high %v5425_v61, %v5425_v61 }
 0x33f   : > { %9011 = vpow2.f32 %v4773_v0  ;;  %v4703_v15 = vmin.f32 %v12531_v11, 0.0  ;;  %v6434_v26 = vcombine.low %v6426_v19, %v6433_v59  ;;  %v6442_v18 = vcombine.low %v5426_v24, %v5425_v61 }
 0x340   : > { %v7342_v3 = vshll.u32 %v6780_v16, 16  ;;  %v7483_v31 = vrot.slane %v6780_v16, 1  ;;  %vm4662_vm6 = vcmp.gt.f32.partialorder %v12531_v11, 0.0  ;;  %v7509_v44 = vpop.permute.xlu1 %7508 }
 0x341   : > { %v7584_v20 = vpop.permute.xlu0 %7583  ;;  %v4775_v8 = vmul.f32 1.442695, %v4703_v15  ;;  %v12540_v53 = vpack.c.bf16 %v6434_v26, %v6737_v43  ;;  %v6450_v19 = vrot.slane %v6442_v18, %v10710_v28 }
 0x342   : > { %v7344_v51 = vrot.slane %v7342_v3, 1  ;;  %v7861_v47 = vsel %vm2098_vm11, %v7829_v4, %v7584_v20 }
 0x343   : > { %9013 = vpow2.f32 %v4775_v8  ;;  %7549 = vrot.lane.b32.xlu1 %v12540_v53, %s9107_s23  ;;  %7660 = vrot.lane.b32.xlu0 %v12540_v53, %s9118_s24  ;;  %v7337_v30 = vshll.u32 %v12540_v53, 16  ;;  %v7335_v55 = vshrl.u32 %v12540_v53, 16  ;;  %v7482_v56 = vrot.slane %v12540_v53, 1 }
 0x344   : > { %v7542_v26 = vpop.permute.xlu1 %7541 }
 0x345   : > { %v7620_v17 = vpop.permute.xlu0 %7619  ;;  %v7339_v40 = vrot.slane %v7337_v30, 1  ;;  %v12567_v45 = vsel %vm976_vm1, %v7482_v56, %v7483_v31 }
 0x346   : > { %v7894_v63 = vsel %vm7880_vm8, %v7861_v47, %v7620_v17 }
 0x347   : > { %v7340_v2 = vor.u32 %v7339_v40, %v7335_v55 }
 0x348   : > { %v7586_v40 = vpop.permute.xlu1 %7585 }
 0x349   : > { %v7653_v37 = vpop.permute.xlu0 %7652  ;;  %v12549_v35 = vsel %vm633_vm0, %v7340_v2, %v7344_v51 }
 0x34a   : > { %7593 = vrot.lane.b32.xlu1 %v12549_v35, %s9110_s9  ;;  %7704 = vrot.lane.b32.xlu0 %v12549_v35, %s9119_s25  ;;  %v7927_v21 = vsel %vm7913_vm3, %v7894_v63, %v7653_v37 }
 0x34c   : > { %v9012_v10 = vpop.eup %9011 }
 0x34d   : > { %v8556_v25 = vadd.f32 -1.0, %v9012_v10  ;;  %v7697_v58 = vpop.permute.xlu0 %7696 }
 0x34e   : > { %7629 = vrot.lane.b32.xlu1 %v12567_v45, %s9117_s20  ;;  %7740 = vrot.lane.b32.xlu0 %v12567_v45, %s9120_s26 }
 0x34f   : > { %v4866_v29 = vsel %vm4661_vm12, %v4586_v60, %v8556_v25  ;;  %v7960_v60 = vsel %vm7946_vm10, %v7927_v21, %v7697_v58  ;;  %v7622_v25 = vpop.permute.xlu1 %7621 }
 0x350   : > { %v9014_v32 = vpop.eup %9013  ;;  %v5428_v27 = vcombine.high %v4866_v29, %v4866_v29  ;;  %v5435_v14 = vrot.slane %v4866_v29, %v10710_v28  ;;  %v13263_v29 = vld [vmem:[#allocation9_spill] sm:$0xff] }
 0x351   : > { %v8557_v42 = vadd.f32 -1.0, %v9014_v32  ;;  %v7733_v34 = vpop.permute.xlu0 %7732  ;;  %v7767_v63 = vsel %vm1660_vm4, %v13263_v29, %v12560_v13 }
 0x352   : > { %v5442_v9 = vrot.slane %v5428_v27, %v10710_v28  ;;  %v5443_v1 = vcombine.high %v5435_v14, %v5435_v14  ;;  %v6443_v12 = vcombine.low %v5427_v6, %v5435_v14  ;;  %v7993_v57 = vsel %vm7979_vm2, %v7960_v60, %v7733_v34 }
 0x353   : > { %v4867_v36 = vsel %vm4662_vm6, %v12531_v11, %v8557_v42  ;;  %8831 = vmatprep.mubr.msk.bf16.mxu1 %vm8055_vm5, %v7993_v57  ;;  %v7799_v6 = vsel %vm1806_vm7, %v7767_v63, %v7509_v44 }
 0x354   : > { %v6457_v22 = vrot.slane %v6443_v12, %v10710_v28  ;;  %v5444_v52 = vcombine.high %v5442_v9, %v5442_v9  ;;  %v6459_v7 = vcombine.low %v5443_v1, %v5442_v9  ;;  %v5452_v0 = vrot.slane %v4867_v36, %v10710_v28 }
 0x355   : > { %v5445_v27 = vcombine.high %v4867_v36, %v4867_v36  ;;  %v7831_v18 = vsel %vm1952_vm9, %v7799_v6, %v7542_v26  ;;  %v12632_v26 = vld [vmem:[%s13108_s5] ss:$0 sm:$0xff] }
 0x356   : > { %v5460_v59 = vcombine.high %v5452_v0, %v5452_v0  ;;  %v6460_v38 = vcombine.low %v5444_v52, %v5452_v0  ;;  %v4593_v49 = vpop.f32.mrf.mxu0  ;;  %v6458_v15 = vcombine.low %v6450_v19, %v6457_v22  ;;  %v6467_v43 = vrot.slane %v6459_v7, %v10710_v28 }
 0x357   : > { %v4594_v16 = vadd.f32 %v12079_v50, %v4593_v49  ;;  %v7863_v42 = vsel %vm2098_vm11, %v7831_v18, %v7586_v40  ;;  %v5459_v13 = vrot.slane %v5445_v27, %v10710_v28  ;;  %v13264_v27 = vld [vmem:[#allocation17_spill] sm:$0xff] }
 0x358   : > { %v6474_v11 = vrot.slane %v6460_v38, %v10710_v28  ;;  %v6482_v20 = vrot.slane %v5460_v59, %v10710_v28  ;;  %v8753_v8 = vpop.f32.mrf.mxu0  ;;  %v6740_v55 = vsel %vm5687_vm15, %v6458_v15, 0.0  ;;  %v7896_v60 = vsel %vm7880_vm8, %v7863_v42, %v7622_v25 }
 0x359   : > { %v4704_v30 = vmin.f32 %v4594_v16, 0.0  ;;  %vm4663_vm14 = vcmp.gt.f32.partialorder %v4594_v16, 0.0  ;;  %v5461_v36 = vcombine.high %v5459_v13, %v5459_v13 }
 0x35a   : > { %v6475_v3 = vcombine.low %v6467_v43, %v6474_v11  ;;  %v4596_v17 = vpop.f32.mrf.mxu0  ;;  %v6742_v23 = vsel %vm5746_vm13, %v6482_v20, 0.0 }
 0x35b   : > { %v4777_v41 = vmul.f32 1.442695, %v4704_v30  ;;  %v4597_v2 = vadd.f32 %v12079_v50, %v4596_v17  ;;  %v6782_v51 = vpack.c.bf16 %v6742_v23, %v6742_v23  ;;  %v6483_v49 = vcombine.low %v5459_v13, %v5461_v36 }
 0x35c   : > { %v12594_v37 = vpack.c.bf16 %v6475_v3, %v6740_v55  ;;  %v8754_v56 = vpop.f32.mrf.mxu0 }
 0x35d   : > { %9015 = vpow2.f32 %v4777_v41  ;;  %v4705_v33 = vmin.f32 %v4597_v2, 0.0  ;;  %v7486_v39 = vrot.slane %v6782_v51, 1  ;;  %v7354_v5 = vshll.u32 %v6782_v51, 16 }
 0x35e   : > { %7662 = vrot.lane.b32.xlu1 %v12594_v37, %s9118_s24  ;;  %v7485_v10 = vrot.slane %v12594_v37, 1  ;;  %v7349_v61 = vshll.u32 %v12594_v37, 16  ;;  %v7347_v50 = vshrl.u32 %v12594_v37, 16  ;;  %vm4664_vm12 = vcmp.gt.f32.partialorder %v4597_v2, 0.0 }
 0x35f   : > { %v4779_v31 = vmul.f32 1.442695, %v4705_v33  ;;  %v7356_v47 = vrot.slane %v7354_v5, 1  ;;  %v7655_v14 = vpop.permute.xlu1 %7654  ;;  %v6491_v51 = vrot.slane %v6483_v49, %v10710_v28 }
 0x360   : > { %v7487_v24 = vsel %vm976_vm1, %v7485_v10, %v7486_v39  ;;  %v7351_v4 = vrot.slane %v7349_v61, 1  ;;  %v7929_v34 = vsel %vm7913_vm3, %v7896_v60, %v7655_v14 }
 0x361   : > { %9017 = vpow2.f32 %v4779_v31  ;;  %7742 = vrot.lane.b32.xlu0 %v7487_v24, %s9120_s26 }
 0x362   : > { %v7352_v58 = vor.u32 %v7351_v4, %v7347_v50  ;;  %v7735_v21 = vpop.permute.xlu0 %7734 }
 0x364   : > { %v7357_v32 = vsel %vm633_vm0, %v7352_v58, %v7356_v47 }
 0x365   : > { %7706 = vrot.lane.b32.xlu1 %v7357_v32, %s9119_s25  ;;  %7518 = vrot.lane.b32.xlu0 %v12567_v45, %s9105_s19 }
 0x366   : > { %v7699_v9 = vpop.permute.xlu1 %7698  ;;  %v12621_v12 = vpop.permute.xlu0 %7510 }
 0x367   : > { %v7962_v45 = vsel %vm7946_vm10, %v7929_v34, %v7699_v9 }
 0x368   : > { %v7995_v57 = vsel %vm7979_vm2, %v7962_v45, %v7735_v21 }
 0x369   : > { %7406 = vrot.lane.b32.xlu1 %v12549_v35, %s9104_s18  ;;  %7551 = vrot.lane.b32.xlu0 %v12594_v37, %s9107_s23 }
 0x36a   : > { %v9016_v44 = vpop.eup %9015  ;;  %8832 = vmatmul.mubr.msk.bf16.gmra.mxu1 %vm8055_vm5, %v7995_v57  ;;  %v7544_v43 = vpop.permute.xlu0 %7543 }
 0x36b   : > { %v8558_v1 = vadd.f32 -1.0, %v9016_v44  ;;  %v7399_v29 = vpop.permute.xlu1 %7398 }
 0x36c   : > { %v7769_v14 = vsel %vm1660_vm4, %v13264_v27, %v7399_v29 }
 0x36d   : > { %v4868_v22 = vsel %vm4663_vm14, %v4594_v16, %v8558_v1  ;;  %7408 = vrot.lane.b32.xlu1 %v7357_v32, %s9104_s18  ;;  %7595 = vrot.lane.b32.xlu0 %v7357_v32, %s9110_s9  ;;  %v7801_v34 = vsel %vm1806_vm7, %v7769_v14, %v12621_v12 }
 0x36e   : > { %v9018_v35 = vpop.eup %9017  ;;  %v5462_v52 = vcombine.high %v4868_v22, %v4868_v22  ;;  %v5469_v7 = vrot.slane %v4868_v22, %v10710_v28 }
 0x36f   : > { %v8559_v0 = vadd.f32 -1.0, %v9018_v35 }
 0x370   : > { %v5476_v19 = vrot.slane %v5462_v52, %v10710_v28  ;;  %v5477_v59 = vcombine.high %v5469_v7, %v5469_v7  ;;  %v7833_v52 = vsel %vm1952_vm9, %v7801_v34, %v7544_v43 }
 0x371   : > { %v4601_v38 = vpop.f32.mrf.mxu0  ;;  %v4869_v15 = vsel %vm4664_vm12, %v4597_v2, %v8559_v0  ;;  %7520 = vrot.lane.b32.xlu1 %v7487_v24, %s9105_s19  ;;  %7631 = vrot.lane.b32.xlu0 %v7487_v24, %s9117_s20  ;;  %v7588_v24 = vpop.permute.xlu0 %7587 }
 0x372   : > { %v12635_v16 = vadd.f32 %v12632_v26, %v4601_v38  ;;  %v5478_v11 = vcombine.high %v5476_v19, %v5476_v19  ;;  %v6484_v20 = vcombine.low %v5469_v7, %v5477_v59  ;;  %v5479_v8 = vcombine.high %v4869_v15, %v4869_v15 }
 0x373   : > { %v5486_v30 = vrot.slane %v4869_v15, %v10710_v28  ;;  %v8757_v3 = vpop.f32.mrf.mxu0  ;;  %v12682_v15 = vpop.permute.xlu1 %7400  ;;  %v7865_v43 = vsel %vm2098_vm11, %v7833_v52, %v7588_v24 }
 0x374   : > { %v4706_v17 = vmin.f32 %v12635_v16, 0.0  ;;  %v6498_v23 = vrot.slane %v6484_v20, %v10710_v28  ;;  %v6500_v55 = vcombine.low %v5476_v19, %v5478_v11  ;;  %v12643_v40 = vrot.slane %v5479_v8, %v10710_v28 }
 0x375   : > { %v5494_v41 = vcombine.high %v5486_v30, %v5486_v30  ;;  %v4604_v2 = vpop.f32.mrf.mxu0  ;;  %v7624_v21 = vpop.permute.xlu0 %7623  ;;  %vm4665_vm6 = vcmp.gt.f32.partialorder %v12635_v16, 0.0 }
 0x376   : > { %v4781_v56 = vmul.f32 1.442695, %v4706_v17  ;;  %v12647_v33 = vadd.f32 %v12632_v26, %v4604_v2  ;;  %v6523_v10 = vrot.slane %v12643_v40, %v10710_v28  ;;  %v6499_v5 = vcombine.low %v6491_v51, %v6498_v23 }
 0x377   : > { %v6501_v39 = vcombine.low %v5486_v30, %v5494_v41  ;;  %v8758_v61 = vpop.f32.mrf.mxu0  ;;  %v6508_v50 = vrot.slane %v6500_v55, %v10710_v28  ;;  %v7898_v3 = vsel %vm7880_vm8, %v7865_v43, %v7624_v21  ;;  %v12709_v24 = vpop.permute.xlu1 %7512 }
 0x378   : > { %9019 = vpow2.f32 %v4781_v56  ;;  %v4707_v31 = vmin.f32 %v12647_v33, 0.0  ;;  %v6745_v58 = vsel %vm5746_vm13, %v6523_v10, 0.0  ;;  %v6743_v32 = vsel %vm5687_vm15, %v6499_v5, 0.0 }
 0x379   : > { %v6515_v4 = vrot.slane %v6501_v39, %v10710_v28  ;;  %v6784_v63 = vpack.c.bf16 %v6745_v58, %v6745_v58  ;;  %v5495_v56 = vcombine.high %v12643_v40, %v12643_v40  ;;  %vm4666_vm14 = vcmp.gt.f32.partialorder %v12647_v33, 0.0 }
 0x37a   : > { %v4783_v25 = vmul.f32 1.442695, %v4707_v31 }
 0x37b   : > { %v6516_v47 = vcombine.low %v6508_v50, %v6515_v4  ;;  %v7366_v60 = vshll.u32 %v6784_v63, 16  ;;  %v7489_v8 = vrot.slane %v6784_v63, 1 }
 0x37c   : > { %9021 = vpow2.f32 %v4783_v25  ;;  %v7546_v14 = vpop.permute.xlu1 %7545 }
 0x37d   : > { %v12658_v6 = vpack.c.bf16 %v6516_v47, %v6743_v32  ;;  %v7657_v57 = vpop.permute.xlu0 %7656  ;;  %v7368_v35 = vrot.slane %v7366_v60, 1 }
 0x37e   : > { %v7931_v2 = vsel %vm7913_vm3, %v7898_v3, %v7657_v57 }
 0x37f   : > { %v4609_v18 = vpop.f32.mrf.mxu0  ;;  %7553 = vrot.lane.b32.xlu1 %v12658_v6, %s9107_s23  ;;  %7664 = vrot.lane.b32.xlu0 %v12658_v6, %s9118_s24  ;;  %v7361_v42 = vshll.u32 %v12658_v6, 16  ;;  %v7359_v44 = vshrl.u32 %v12658_v6, 16  ;;  %v7488_v38 = vrot.slane %v12658_v6, 1 }
 0x380   : > { %v12668_v13 = vadd.f32 %v12632_v26, %v4609_v18 }
 0x381   : > { %v8761_v9 = vpop.f32.mrf.mxu0  ;;  %v7363_v45 = vrot.slane %v7361_v42, 1  ;;  %v12696_v51 = vsel %vm976_vm1, %v7488_v38, %v7489_v8 }
 0x382   : > { %v4708_v1 = vmin.f32 %v12668_v13, 0.0  ;;  %vm4667_vm12 = vcmp.gt.f32.partialorder %v12668_v13, 0.0 }
 0x383   : > { %v4612_v36 = vpop.f32.mrf.mxu0  ;;  %v7364_v22 = vor.u32 %v7363_v45, %v7359_v44  ;;  %v7701_v20 = vpop.permute.xlu0 %7700 }
 0x384   : > { %v4785_v7 = vmul.f32 1.442695, %v4708_v1  ;;  %v12676_v0 = vadd.f32 %v12632_v26, %v4612_v36  ;;  %v7964_v10 = vsel %vm7946_vm10, %v7931_v2, %v7701_v20  ;;  %v7590_v57 = vpop.permute.xlu1 %7589 }
 0x385   : > { %v9020_v19 = vpop.eup %9019  ;;  %v8762_v59 = vpop.f32.mrf.mxu0  ;;  %v12679_v12 = vsel %vm633_vm0, %v7364_v22, %v7368_v35 }
 0x386   : > { %v8560_v49 = vadd.f32 -1.0, %v9020_v19  ;;  %9023 = vpow2.f32 %v4785_v7  ;;  %v4709_v11 = vmin.f32 %v12676_v0, 0.0  ;;  %7597 = vrot.lane.b32.xlu1 %v12679_v12, %s9110_s9  ;;  %7708 = vrot.lane.b32.xlu0 %v12679_v12, %s9119_s25 }
 0x388   : > { %v4870_v30 = vsel %vm4665_vm6, %v12635_v16, %v8560_v49  ;;  %v4787_v17 = vmul.f32 1.442695, %v4709_v11  ;;  %v7737_v16 = vpop.permute.xlu0 %7736  ;;  %vm4668_vm6 = vcmp.gt.f32.partialorder %v12676_v0, 0.0 }
 0x389   : > { %v9022_v23 = vpop.eup %9021  ;;  %v5496_v55 = vcombine.high %v4870_v30, %v4870_v30  ;;  %v5503_v41 = vrot.slane %v4870_v30, %v10710_v28  ;;  %v7997_v31 = vsel %vm7979_vm2, %v7964_v10, %v7737_v16 }
 0x38a   : > { %v8561_v39 = vadd.f32 -1.0, %v9022_v23  ;;  %9025 = vpow2.f32 %v4787_v17  ;;  %7633 = vrot.lane.b32.xlu1 %v12696_v51, %s9117_s20  ;;  %7744 = vrot.lane.b32.xlu0 %v12696_v51, %s9120_s26 }
 0x38b   : > { %v5510_v61 = vrot.slane %v5496_v55, %v10710_v28  ;;  %v5511_v5 = vcombine.high %v5503_v41, %v5503_v41  ;;  %8835 = vmatprep.mubr.msk.bf16.mxu1 %vm8055_vm5, %v7997_v31  ;;  %v6524_v50 = vcombine.low %v5495_v56, %v5503_v41  ;;  %v7626_v41 = vpop.permute.xlu1 %7625 }
 0x38c   : > { %v4871_v40 = vsel %vm4666_vm14, %v12647_v33, %v8561_v39 }
 0x38d   : > { %v6525_v4 = vcombine.low %v5511_v5, %v5510_v61  ;;  %v5512_v25 = vcombine.high %v5510_v61, %v5510_v61  ;;  %v5513_v58 = vcombine.high %v4871_v40, %v4871_v40  ;;  %v5520_v47 = vrot.slane %v4871_v40, %v10710_v28 }
 0x38e   : > { %v6532_v21 = vrot.slane %v6524_v50, %v10710_v28 }
 0x38f   : > { %v6539_v29 = vrot.slane %v6525_v4, %v10710_v28  ;;  %v5527_v63 = vrot.slane %v5513_v58, %v10710_v28  ;;  %v5528_v32 = vcombine.high %v5520_v47, %v5520_v47  ;;  %v6541_v27 = vcombine.low %v5512_v25, %v5520_v47  ;;  %v13265_v58 = vld [vmem:[#allocation19_spill] sm:$0xff] }
 0x390   : > { %v7771_v47 = vsel %vm1660_vm4, %v13265_v58, %v12682_v15 }
 0x391   : > { %v5529_v33 = vcombine.high %v5527_v63, %v5527_v63  ;;  %v6542_v18 = vcombine.low %v5528_v32, %v5527_v63  ;;  %v6540_v60 = vcombine.low %v6532_v21, %v6539_v29  ;;  %v6549_v44 = vrot.slane %v6541_v27, %v10710_v28 }
 0x392   : > { %v4617_v9 = vpop.f32.mrf.mxu1  ;;  %v7803_v27 = vsel %vm1806_vm7, %v7771_v47, %v12709_v24 }
 0x393   : > { %v9024_v42 = vpop.eup %9023  ;;  %v6564_v34 = vrot.slane %v5529_v33, %v10710_v28  ;;  %v6556_v45 = vrot.slane %v6542_v18, %v10710_v28  ;;  %v12720_v36 = vadd.f32 %v12632_v26, %v4617_v9  ;;  %v6746_v38 = vsel %vm5687_vm15, %v6540_v60, 0.0 }
 0x394   : > { %v8562_v1 = vadd.f32 -1.0, %v9024_v42  ;;  %v8765_v22 = vpop.f32.mrf.mxu1 }
 0x395   : > { %v6748_v35 = vsel %vm5746_vm13, %v6564_v34, 0.0  ;;  %v6557_v52 = vcombine.low %v6549_v44, %v6556_v45  ;;  %v4710_v19 = vmin.f32 %v12720_v36, 0.0  ;;  %v7835_v34 = vsel %vm1952_vm9, %v7803_v27, %v7546_v14 }
 0x396   : > { %v4872_v7 = vsel %vm4667_vm12, %v12668_v13, %v8562_v1  ;;  %v4620_v26 = vpop.f32.mrf.mxu1  ;;  %v6786_v20 = vpack.c.bf16 %v6748_v35, %v6748_v35  ;;  %v7867_v1 = vsel %vm2098_vm11, %v7835_v34, %v7590_v57  ;;  %vm4669_vm14 = vcmp.gt.f32.partialorder %v12720_v36, 0.0 }
 0x397   : > { %v9026_v59 = vpop.eup %9025  ;;  %v5530_v49 = vcombine.high %v4872_v7, %v4872_v7  ;;  %v5537_v11 = vrot.slane %v4872_v7, %v10710_v28  ;;  %v12730_v43 = vpack.c.bf16 %v6557_v52, %v6746_v38  ;;  %v4789_v30 = vmul.f32 1.442695, %v4710_v19 }
 0x398   : > { %v8563_v8 = vadd.f32 -1.0, %v9026_v59  ;;  %v8766_v13 = vpop.f32.mrf.mxu1  ;;  %v7492_v23 = vrot.slane %v6786_v20, 1  ;;  %v7378_v31 = vshll.u32 %v6786_v20, 16  ;;  %v7900_v24 = vsel %vm7880_vm8, %v7867_v1, %v7626_v41 }
 0x399   : > { %v5544_v3 = vrot.slane %v5530_v49, %v10710_v28  ;;  %v5545_v17 = vcombine.high %v5537_v11, %v5537_v11  ;;  %9027 = vpow2.f32 %v4789_v30  ;;  %7666 = vrot.lane.b32.xlu1 %v12730_v43, %s9118_s24  ;;  %v7491_v2 = vrot.slane %v12730_v43, 1 }
 0x39a   : > { %v4873_v55 = vsel %vm4668_vm6, %v12676_v0, %v8563_v8  ;;  %v4625_v16 = vpop.f32.mrf.mxu1  ;;  %v7373_v5 = vshll.u32 %v12730_v43, 16  ;;  %v7371_v63 = vshrl.u32 %v12730_v43, 16  ;;  %v7380_v44 = vrot.slane %v7378_v31, 1 }
 0x39b   : > { %v5546_v56 = vcombine.high %v5544_v3, %v5544_v3  ;;  %v5547_v39 = vcombine.high %v4873_v55, %v4873_v55  ;;  %v5554_v10 = vrot.slane %v4873_v55, %v10710_v28  ;;  %v7493_v61 = vsel %vm976_vm1, %v7491_v2, %v7492_v23  ;;  %v7659_v29 = vpop.permute.xlu1 %7658 }
 0x39c   : > { %v6565_v40 = vcombine.low %v5537_v11, %v5545_v17  ;;  %7746 = vrot.lane.b32.xlu0 %v7493_v61, %s9120_s26  ;;  %v8769_v25 = vpop.f32.mrf.mxu1  ;;  %v7375_v32 = vrot.slane %v7373_v5, 1  ;;  %v7933_v19 = vsel %vm7913_vm3, %v7900_v24, %v7659_v29 }
 0x39d   : > { %v6566_v50 = vcombine.low %v5544_v3, %v5546_v56  ;;  %v5561_v0 = vrot.slane %v5547_v39, %v10710_v28  ;;  %v5562_v4 = vcombine.high %v5554_v10, %v5554_v10 }
 0x39e   : > { %v4628_v42 = vpop.f32.mrf.mxu1  ;;  %v7739_v60 = vpop.permute.xlu0 %7738  ;;  %v7376_v9 = vor.u32 %v7375_v32, %v7371_v63  ;;  %v6573_v45 = vrot.slane %v6565_v40, %v10710_v28 }
 0x39f   : > { %v6580_v21 = vrot.slane %v6566_v50, %v10710_v28  ;;  %v5563_v33 = vcombine.high %v5561_v0, %v5561_v0  ;;  %v6582_v18 = vcombine.low %v5554_v10, %v5562_v4 }
 0x3a0   : > { %7522 = vrot.lane.b32.xlu0 %v12696_v51, %s9105_s19  ;;  %v8770_v22 = vpop.f32.mrf.mxu1  ;;  %v7381_v35 = vsel %vm633_vm0, %v7376_v9, %v7380_v44 }
 0x3a1   : > { %v6583_v15 = vcombine.low %v5561_v0, %v5563_v33  ;;  %v6581_v52 = vcombine.low %v6573_v45, %v6580_v21  ;;  %v6590_v7 = vrot.slane %v6582_v18, %v10710_v28  ;;  %7710 = vrot.lane.b32.xlu1 %v7381_v35, %s9119_s25  ;;  %v13266_v22 = vmov 0.0|0.0  }
 0x3a2   : > { %v7703_v59 = vpop.permute.xlu1 %7702  ;;  %v12761_v38 = vpop.f32.mrf.mxu1 }
 0x3a3   : > { %v6597_v14 = vrot.slane %v6583_v15, %v10710_v28  ;;  %v7966_v57 = vsel %vm7946_vm10, %v7933_v19, %v7703_v59  ;;  %v7515_v51 = vpop.permute.xlu0 %7514  ;;  %v6749_v30 = vsel %vm5687_vm15, %v6581_v52, 0.0 }
 0x3a4   : > { %7555 = vrot.lane.b32.xlu0 %v12730_v43, %s9107_s23  ;;  %v12766_v11 = vpop.f32.mrf.mxu1  ;;  %v7999_v26 = vsel %vm7979_vm2, %v7966_v57, %v7739_v60 }
 0x3a5   : > { %v6598_v49 = vcombine.low %v6590_v7, %v6597_v14  ;;  %8836 = vmatmul.mubr.msk.bf16.gmra.mxu1 %vm8055_vm5, %v7999_v26  ;;  %7410 = vrot.lane.b32.xlu1 %v12679_v12, %s9104_s18 }
 0x3a6   : > { %v9028_v20 = vpop.eup %9027  ;;  %v12772_v8 = vpop.f32.mrf.mxu1 }
 0x3a7   : > { %v8564_v3 = vadd.f32 -1.0, %v9028_v20  ;;  %v6787_v17 = vpack.c.bf16 %v6598_v49, %v6749_v30  ;;  %v7548_v55 = vpop.permute.xlu0 %7547  ;;  %v7403_v50 = vpop.permute.xlu1 %7402  ;;  %v13267_v49 = vld [vmem:[#allocation7_spill] sm:$0xff] }
 0x3a8   : > { %7599 = vrot.lane.b32.xlu0 %v7381_v35, %s9110_s9  ;;  %v12778_v13 = vpop.f32.mrf.mxu1 }
 0x3a9   : > { %v4874_v23 = vsel %vm4669_vm14, %v12720_v36, %v8564_v3  ;;  %7412 = vrot.lane.b32.xlu1 %v7381_v35, %s9104_s18  ;;  %v7562_v2 = vshll.u32 %v6787_v17, 16  ;;  %v7560_v40 = vshrl.u32 %v6787_v17, 16  ;;  %v7604_v32 = vrot.slane %v6787_v17, 1 }
 0x3aa   : > { %v5571_v41 = vrot.slane %v4874_v23, %v10710_v28  ;;  %v12783_v12 = vpop.f32.mrf.mxu1 }
 0x3ab   : > { %v7592_v16 = vpop.permute.xlu0 %7591  ;;  %v7564_v5 = vrot.slane %v7562_v2, 1  ;;  %v7405_v34 = vpop.permute.xlu1 %7404 }
 0x3ac   : > { %v6605_v62 = vrot.slane %v5571_v41, %v10710_v28  ;;  %7635 = vrot.lane.b32.xlu0 %v7493_v61, %s9117_s20  ;;  %v12787_v56 = vpop.f32.mrf.mxu1 }
 0x3ad   : > { %7524 = vrot.lane.b32.xlu1 %v7493_v61, %s9105_s19  ;;  %v7565_v54 = vor.u32 %v7564_v5, %v7560_v40  ;;  %v7773_v61 = vsel %vm1660_vm4, %v12312_v48, %v7403_v50  ;;  %v12816_v48 = vld [vmem:[%s13109_s6] ss:$0 sm:$0xff] }
 0x3ae   : > { %v6751_v39 = vsel %vm5746_vm13, %v6605_v62, 0.0  ;;  %v12792_v36 = vpop.f32.mrf.mxu1  ;;  %v7805_v27 = vsel %vm1806_vm7, %v7773_v61, %v7515_v51 }
 0x3af   : > { %v6788_v10 = vpack.c.bf16 %v6751_v39, %v6751_v39  ;;  %v7628_v58 = vpop.permute.xlu0 %7627  ;;  %v7837_v60 = vsel %vm1952_vm9, %v7805_v27, %v7548_v55  ;;  %v7517_v19 = vpop.permute.xlu1 %7516  ;;  %v13268_v55 = vld [vmem:[#allocation15_spill] sm:$0xff] }
 0x3b0   : > { %7668 = vrot.lane.b32.xlu0 %v6787_v17, %s9118_s24  ;;  %v12795_v31 = vpop.f32.mrf.mxu1  ;;  %v7869_v1 = vsel %vm2098_vm11, %v7837_v60, %v7592_v16 }
 0x3b1   : > { %v7567_v28 = vshll.u32 %v6788_v10, 16  ;;  %7557 = vrot.lane.b32.xlu1 %v6787_v17, %s9107_s23  ;;  %v7605_v29 = vrot.slane %v6788_v10, 1  ;;  %v7902_v35 = vsel %vm7880_vm8, %v7869_v1, %v7628_v58 }
 0x3b2   : > { %v12798_v0 = vpop.f32.mrf.mxu1 }
 0x3b3   : > { %v7569_v4 = vrot.slane %v7567_v28, 1  ;;  %v7606_v33 = vsel %vm976_vm1, %v7604_v32, %v7605_v29 }
 0x3b4   : > { %v12800_v25 = vpop.f32.mrf.mxu1 }
 0x3b5   : > { %v7570_v47 = vsel %vm633_vm0, %v7565_v54, %v7569_v4  ;;  %v7661_v18 = vpop.permute.xlu0 %7660  ;;  %v7550_v17 = vpop.permute.xlu1 %7549 }
 0x3b6   : > { %7601 = vrot.lane.b32.xlu1 %v7570_v47, %s9110_s9  ;;  %7712 = vrot.lane.b32.xlu0 %v7570_v47, %s9119_s25  ;;  %v12807_v63 = vpop.f32.mrf.mxu1  ;;  %v7935_v7 = vsel %vm7913_vm3, %v7902_v35, %v7661_v18  ;;  %v7775_v47 = vsel %vm1660_vm4, %v12472_v46, %v7405_v34 }
 0x3b7   : > { %v7807_v32 = vsel %vm1806_vm7, %v7775_v47, %v7517_v19 }
 0x3b8   : > { %v12810_v21 = vpop.f32.mrf.mxu1  ;;  %v7839_v18 = vsel %vm1952_vm9, %v7807_v32, %v7550_v17 }
 0x3ba   : > { %7637 = vrot.lane.b32.xlu1 %v7606_v33, %s9117_s20  ;;  %7748 = vrot.lane.b32.xlu0 %v7606_v33, %s9120_s26  ;;  %v8791_v42 = vpop.f32.mrf.mxu1  ;;  %s8616_s20 = sshll.u32 %s13274_s27, 8 }
 0x3bb   : > { %v12822_v9 = vadd.f32 %v8791_v42, %v12816_v48 }
 0x3bc   : > { %v7111_v44 = vpop.f32.mrf.mxu1  ;;  %v7705_v15 = vpop.permute.xlu0 %7704 }
 0x3bd   : > { %v12825_v45 = vadd.f32 %v12816_v48, %v7111_v44  ;;  %v7968_v57 = vsel %vm7946_vm10, %v7935_v7, %v7705_v15  ;;  %v7594_v39 = vpop.permute.xlu1 %7593 }
 0x3be   : > { %7670 = vrot.lane.b32.xlu1 %v13266_v22, %s9118_s24  ;;  %v8792_v24 = vpop.f32.mrf.mxu1  ;;  %v7871_v60 = vsel %vm2098_vm11, %v7839_v18, %v7594_v39 }
 0x3bf   : > { %v12832_v52 = vadd.f32 %v8792_v24, %v12816_v48 }
 0x3c0   : > { %v7114_v14 = vpop.f32.mrf.mxu1  ;;  %v7741_v51 = vpop.permute.xlu0 %7740 }
 0x3c1   : > { %v12836_v59 = vadd.f32 %v12816_v48, %v7114_v14  ;;  %v8001_v20 = vsel %vm7979_vm2, %v7968_v57, %v7741_v51  ;;  %v7630_v54 = vpop.permute.xlu1 %7629 }
 0x3c2   : > { %7714 = vrot.lane.b32.xlu1 %v13267_v49, %s9119_s25  ;;  %v8795_v26 = vpop.f32.mrf.mxu1  ;;  %8839 = vmatprep.mubr.msk.bf16.mxu1 %vm8055_vm5, %v8001_v20  ;;  %v7904_v15 = vsel %vm7880_vm8, %v7871_v60, %v7630_v54  ;;  %v7067_v60 = vadd.f32 %v12816_v48, %v12778_v13  ;;  %v7080_v13 = vadd.f32 %v12816_v48, %v12787_v56 }
 0x3c3   : > { %v12843_v30 = vadd.f32 %v8795_v26, %v12816_v48 }
 0x3c4   : > { %v7127_v3 = vpop.f32.mrf.mxu1 }
 0x3c5   : > { %v12847_v23 = vadd.f32 %v12816_v48, %v7127_v3 }
 0x3c6   : > { %7750 = vrot.lane.b32.xlu1 %v13268_v55, %s9120_s26  ;;  %v8796_v41 = vpop.f32.mrf.mxu1  ;;  %s12915_s26 = scalar_lea.vmem %s13111_s8, %s8616_s20 }
 0x3c7   : > { %v12852_v2 = vadd.f32 %v8796_v41, %v12816_v48  ;;  %v12903_v41 = vld [vmem:[%s13110_s7] ss:$0 sm:$0xff] }
 0x3c8   : > { %v7130_v62 = vpop.f32.mrf.mxu1 }
 0x3c9   : > { %v12855_v10 = vadd.f32 %v12816_v48, %v7130_v62 }
 0x3ca   : > { %v8799_v16 = vpop.f32.mrf.mxu1 }
 0x3cb   : > { %v12858_v5 = vadd.f32 %v8799_v16, %v12816_v48  ;;  %v7072_v16 = vadd.f32 %v12761_v38, %v12816_v48  ;;  %v7075_v38 = vadd.f32 %v12772_v8, %v12816_v48  ;;  %v7088_v8 = vadd.f32 %v12783_v12, %v12816_v48 }
 0x3cc   : > { %v7143_v40 = vpop.f32.mrf.mxu1  ;;  %v7091_v12 = vadd.f32 %v12792_v36, %v12816_v48 }
 0x3cd   : > { %v12861_v28 = vadd.f32 %v12816_v48, %v7143_v40 }
 0x3ce   : > { %v8800_v50 = vpop.f32.mrf.mxu1 }
 0x3cf   : > { %v12864_v4 = vadd.f32 %v8800_v50, %v12816_v48 }
 0x3d0   : > { %v7146_v61 = vpop.f32.mrf.mxu1  ;;  %v7663_v33 = vpop.permute.xlu1 %7662 }
 0x3d1   : > { %v12867_v58 = vadd.f32 %v12816_v48, %v7146_v61  ;;  %v7937_v46 = vsel %vm7913_vm3, %v7904_v15, %v7663_v33  ;;  %v7064_v61 = vadd.f32 %v12816_v48, %v12766_v11 }
 0x3d2   : > { %v8803_v29 = vpop.f32.mrf.mxu1 }
 0x3d3   : > { %v12873_v27 = vadd.f32 %v8803_v29, %v12816_v48  ;;  %v7743_v22 = vpop.permute.xlu0 %7742 }
 0x3d4   : > { %v7159_v42 = vpop.f32.mrf.mxu1 }
 0x3d5   : > { %v12878_v44 = vadd.f32 %v12816_v48, %v7159_v42 }
 0x3d6   : > { %v8804_v1 = vpop.f32.mrf.mxu1 }
 0x3d7   : > { %v12883_v34 = vadd.f32 %v8804_v1, %v12816_v48  ;;  %v7707_v24 = vpop.permute.xlu1 %7706  ;;  %v7519_v20 = vpop.permute.xlu0 %7518 }
 0x3d8   : > { %v7162_v35 = vpop.f32.mrf.mxu1  ;;  %v7970_v7 = vsel %vm7946_vm10, %v7937_v46, %v7707_v24 }
 0x3d9   : > { %v12887_v14 = vadd.f32 %v12816_v48, %v7162_v35  ;;  %v8003_v19 = vsel %vm7979_vm2, %v7970_v7, %v7743_v22 }
 0x3da   : > { %v8807_v57 = vpop.f32.mrf.mxu1  ;;  %8840 = vmatmul.mubr.msk.bf16.gmra.mxu1 %vm8055_vm5, %v8003_v19 }
 0x3db   : > { %v12892_v51 = vadd.f32 %v8807_v57, %v12816_v48  ;;  %v7552_v40 = vpop.permute.xlu0 %7551  ;;  %v7407_v35 = vpop.permute.xlu1 %7406 }
 0x3dc   : > { %v7175_v49 = vpop.f32.mrf.mxu1 }
 0x3dd   : > { %v12895_v26 = vadd.f32 %v12816_v48, %v7175_v49 }
 0x3de   : > { %v8808_v3 = vpop.f32.mrf.mxu1 }
 0x3df   : > { %v12898_v17 = vadd.f32 %v8808_v3, %v12816_v48  ;;  %v7596_v11 = vpop.permute.xlu0 %7595  ;;  %v7777_v3 = vsel %vm1660_vm4, %v12540_v53, %v7407_v35 }
 0x3e0   : > { %v7178_v55 = vpop.f32.mrf.mxu1  ;;  %v7809_v36 = vsel %vm1806_vm7, %v7777_v3, %v7519_v20 }
 0x3e1   : > { %v12906_v62 = vadd.f32 %v12816_v48, %v7178_v55 }
 0x3e2   : > { %v8821_v39 = vpop.f32.mrf.mxu1 }
 0x3e3   : > { %v8135_v50 = vadd.f32 %v8821_v39, %v12903_v41  ;;  %v7632_v55 = vpop.permute.xlu0 %7631 }
 0x3e4   : > { %v8126_v54 = vpop.f32.mrf.mxu1 }
 0x3e5   : > { %v8255_v47 = vadd.f32 %v8135_v50, %v7072_v16  ;;  %v8127_v29 = vadd.f32 %v12903_v41, %v8126_v54  ;;  %v7083_v50 = vadd.f32 %v12816_v48, %v12795_v31  ;;  %v7104_v31 = vadd.f32 %v12798_v0, %v12816_v48 }
 0x3e6   : > { %v8822_v32 = vpop.f32.mrf.mxu1 }
 0x3e7   : > { %8287 = vst.msk [vmem:[%s12915_s26 + $0x10] sm:$0xff] %vm1660_vm4, %v8255_v47  ;;  %v8253_v33 = vadd.f32 %v8127_v29, %v7064_v61  ;;  %v8138_v18 = vadd.f32 %v8822_v32, %v12903_v41  ;;  %v7841_v29 = vsel %vm1952_vm9, %v7809_v36, %v7552_v40 }
 0x3e8   : > { %v8129_v42 = vpop.f32.mrf.mxu1 }
 0x3e9   : > { %8285 = vst.msk [vmem:[%s12915_s26] sm:$0xff] %vm1660_vm4, %v8253_v33  ;;  %v8256_v15 = vadd.f32 %v8138_v18, %v7075_v38  ;;  %v8130_v1 = vadd.f32 %v12903_v41, %v8129_v42  ;;  %v7409_v18 = vpop.permute.xlu1 %7408  ;;  %v7873_v42 = vsel %vm2098_vm11, %v7841_v29, %v7596_v11 }
 0x3ea   : > { %v8825_v46 = vpop.f32.mrf.mxu1  ;;  %v7906_v40 = vsel %vm7880_vm8, %v7873_v42, %v7632_v55 }
 0x3eb   : > { %8288 = vst.msk [vmem:[%s12915_s26 + $0x18] sm:$0xff] %vm1660_vm4, %v8256_v15  ;;  %v8254_v22 = vadd.f32 %v8130_v1, %v7067_v60  ;;  %v8151_v24 = vadd.f32 %v8825_v46, %v12903_v41  ;;  %v7096_v60 = vadd.f32 %v12816_v48, %v12800_v25 }
 0x3ec   : > { %v8142_v7 = vpop.f32.mrf.mxu1 }
 0x3ed   : > { %8286 = vst.msk [vmem:[%s12915_s26 + $0x8] sm:$0xff] %vm1660_vm4, %v8254_v22  ;;  %v8259_v19 = vadd.f32 %v8151_v24, %v7088_v8  ;;  %v8143_v57 = vadd.f32 %v12903_v41, %v8142_v7  ;;  %v7107_v8 = vadd.f32 %v12807_v63, %v12816_v48 }
 0x3ee   : > { %v8826_v49 = vpop.f32.mrf.mxu1 }
 0x3ef   : > { %8291 = vst.msk [vmem:[%s12915_s26 + $0x30] sm:$0xff] %vm1660_vm4, %v8259_v19  ;;  %v8257_v39 = vadd.f32 %v8143_v57, %v7080_v13  ;;  %v8154_v56 = vadd.f32 %v8826_v49, %v12903_v41  ;;  %v7099_v13 = vadd.f32 %v12816_v48, %v12810_v21  ;;  %v7521_v57 = vpop.permute.xlu1 %7520  ;;  %v7779_v21 = vsel %vm1660_vm4, %v12594_v37, %v7409_v18 }
 0x3f0   : > { %v8145_v16 = vpop.f32.mrf.mxu1  ;;  %v7811_v48 = vsel %vm1806_vm7, %v7779_v21, %v7521_v57 }
 0x3f1   : > { %8289 = vst.msk [vmem:[%s12915_s26 + $0x20] sm:$0xff] %vm1660_vm4, %v8257_v39  ;;  %v8260_v54 = vadd.f32 %v8154_v56, %v7091_v12  ;;  %v8146_v61 = vadd.f32 %v12903_v41, %v8145_v16  ;;  %v7665_v47 = vpop.permute.xlu0 %7664 }
 0x3f2   : > { %v7939_v46 = vsel %vm7913_vm3, %v7906_v40, %v7665_v47 }
 0x3f3   : > { %8292 = vst.msk [vmem:[%s12915_s26 + $0x38] sm:$0xff] %vm1660_vm4, %v8260_v54  ;;  %v8258_v53 = vadd.f32 %v8146_v61, %v7083_v50  ;;  %v7554_v12 = vpop.permute.xlu1 %7553 }
 0x3f4   : > { %v7843_v16 = vsel %vm1952_vm9, %v7811_v48, %v7554_v12 }
 0x3f5   : > { %8290 = vst.msk [vmem:[%s12915_s26 + $0x28] sm:$0xff] %vm1660_vm4, %v8258_v53 }
 0x3f7   : > { %v8829_v32 = vpop.f32.mrf.mxu1 }
 0x3f8   : > { %v8167_v38 = vadd.f32 %v8829_v32, %v12903_v41  ;;  %v7709_v33 = vpop.permute.xlu0 %7708  ;;  %v7598_v3 = vpop.permute.xlu1 %7597 }
 0x3f9   : > { %v8158_v20 = vpop.f32.mrf.mxu1  ;;  %v7972_v25 = vsel %vm7946_vm10, %v7939_v46, %v7709_v33  ;;  %v7875_v50 = vsel %vm2098_vm11, %v7843_v16, %v7598_v3 }
 0x3fa   : > { %v8263_v15 = vadd.f32 %v8167_v38, %v7104_v31  ;;  %v8159_v1 = vadd.f32 %v12903_v41, %v8158_v20 }
 0x3fb   : > { %v8830_v0 = vpop.f32.mrf.mxu1 }
 0x3fc   : > { %8295 = vst.msk [vmem:[%s12915_s26 + $0x50] sm:$0xff] %vm1660_vm4, %v8263_v15  ;;  %v8261_v11 = vadd.f32 %v8159_v1, %v7096_v60  ;;  %v8170_v22 = vadd.f32 %v8830_v0, %v12903_v41  ;;  %v7745_v24 = vpop.permute.xlu0 %7744  ;;  %v7634_v55 = vpop.permute.xlu1 %7633 }
 0x3fd   : > { %v8161_v35 = vpop.f32.mrf.mxu1  ;;  %v8005_v7 = vsel %vm7979_vm2, %v7972_v25, %v7745_v24  ;;  %v7908_v61 = vsel %vm7880_vm8, %v7875_v50, %v7634_v55 }
 0x3fe   : > { %8293 = vst.msk [vmem:[%s12915_s26 + $0x40] sm:$0xff] %vm1660_vm4, %v8261_v11  ;;  %v8264_v19 = vadd.f32 %v8170_v22, %v7107_v8  ;;  %v8162_v63 = vadd.f32 %v12903_v41, %v8161_v35  ;;  %8843 = vmatprep.mubr.msk.bf16.mxu1 %vm8055_vm5, %v8005_v7 }
 0x400   : > { %8296 = vst.msk [vmem:[%s12915_s26 + $0x58] sm:$0xff] %vm1660_vm4, %v8264_v19  ;;  %v8262_v49 = vadd.f32 %v8162_v63, %v7099_v13 }
 0x402   : > { %8294 = vst.msk [vmem:[%s12915_s26 + $0x48] sm:$0xff] %vm1660_vm4, %v8262_v49 }
 0x40b   : > { %v7667_v56 = vpop.permute.xlu1 %7666 }
 0x40c   : > { %v7941_v36 = vsel %vm7913_vm3, %v7908_v61, %v7667_v56 }
 0x40e   : > { %v7747_v39 = vpop.permute.xlu0 %7746 }
 0x412   : > { %v7523_v54 = vpop.permute.xlu0 %7522 }
 0x413   : > { %v7711_v53 = vpop.permute.xlu1 %7710 }
 0x414   : > { %v7974_v47 = vsel %vm7946_vm10, %v7941_v36, %v7711_v53 }
 0x415   : > { %v8007_v29 = vsel %vm7979_vm2, %v7974_v47, %v7747_v39 }
 0x416   : > { %v7556_v32 = vpop.permute.xlu0 %7555  ;;  %8844 = vmatmul.mubr.msk.bf16.gmra.mxu1 %vm8055_vm5, %v8007_v29 }
 0x417   : > { %v7411_v37 = vpop.permute.xlu1 %7410 }
 0x418   : > { %v7781_v18 = vsel %vm1660_vm4, %v12658_v6, %v7411_v37 }
 0x419   : > { %v7813_v20 = vsel %vm1806_vm7, %v7781_v18, %v7523_v54 }
 0x41a   : > { %v7600_v31 = vpop.permute.xlu0 %7599  ;;  %v7845_v15 = vsel %vm1952_vm9, %v7813_v20, %v7556_v32 }
 0x41b   : > { %v7413_v38 = vpop.permute.xlu1 %7412  ;;  %v7877_v0 = vsel %vm2098_vm11, %v7845_v15, %v7600_v31 }
 0x41c   : > { %v7783_v12 = vsel %vm1660_vm4, %v12730_v43, %v7413_v38 }
 0x41e   : > { %v7636_v33 = vpop.permute.xlu0 %7635 }
 0x41f   : > { %v7525_v42 = vpop.permute.xlu1 %7524  ;;  %v7910_v8 = vsel %vm7880_vm8, %v7877_v0, %v7636_v33 }
 0x420   : > { %v7815_v39 = vsel %vm1806_vm7, %v7783_v12, %v7525_v42 }
 0x422   : > { %v7669_v40 = vpop.permute.xlu0 %7668 }
 0x423   : > { %v7558_v60 = vpop.permute.xlu1 %7557  ;;  %v7943_v11 = vsel %vm7913_vm3, %v7910_v8, %v7669_v40 }
 0x424   : > { %v7847_v48 = vsel %vm1952_vm9, %v7815_v39, %v7558_v60 }
 0x428   : > { %v7602_v1 = vpop.permute.xlu1 %7601  ;;  %v7713_v46 = vpop.permute.xlu0 %7712 }
 0x429   : > { %v7976_v22 = vsel %vm7946_vm10, %v7943_v11, %v7713_v46  ;;  %v7879_v43 = vsel %vm2098_vm11, %v7847_v48, %v7602_v1 }
 0x42a   : > { %v8833_v35 = vpop.f32.mrf.mxu1 }
 0x42b   : > { %v8183_v7 = vadd.f32 %v8833_v35, %v12903_v41 }
 0x42c   : > { %v7638_v25 = vpop.permute.xlu1 %7637  ;;  %v7749_v6 = vpop.permute.xlu0 %7748 }
 0x42d   : > { %v8009_v24 = vsel %vm7979_vm2, %v7976_v22, %v7749_v6  ;;  %v8174_v13 = vpop.f32.mrf.mxu1  ;;  %v8267_v63 = vadd.f32 %v8183_v7, %v12822_v9  ;;  %v7912_v50 = vsel %vm7880_vm8, %v7879_v43, %v7638_v25 }
 0x42e   : > { %8847 = vmatprep.mubr.msk.bf16.mxu1 %vm8055_vm5, %v8009_v24  ;;  %v8175_v57 = vadd.f32 %v12903_v41, %v8174_v13 }
 0x42f   : > { %v8834_v49 = vpop.f32.mrf.mxu1  ;;  %8299 = vst.msk [vmem:[%s12915_s26 + $0x70] sm:$0xff] %vm1660_vm4, %v8267_v63 }
 0x430   : > { %v7671_v19 = vpop.permute.xlu1 %7670  ;;  %v8265_v3 = vadd.f32 %v8175_v57, %v12825_v45  ;;  %v8186_v55 = vadd.f32 %v8834_v49, %v12903_v41 }
 0x431   : > { %v8177_v21 = vpop.f32.mrf.mxu1  ;;  %v7945_v54 = vsel %vm7913_vm3, %v7912_v50, %v7671_v19 }
 0x432   : > { %8297 = vst.msk [vmem:[%s12915_s26 + $0x60] sm:$0xff] %vm1660_vm4, %v8265_v3  ;;  %v8268_v56 = vadd.f32 %v8186_v55, %v12832_v52  ;;  %v8178_v16 = vadd.f32 %v12903_v41, %v8177_v21 }
 0x434   : > { %v7715_v9 = vpop.permute.xlu1 %7714  ;;  %8300 = vst.msk [vmem:[%s12915_s26 + $0x78] sm:$0xff] %vm1660_vm4, %v8268_v56  ;;  %v8266_v45 = vadd.f32 %v8178_v16, %v12836_v59 }
 0x435   : > { %v7978_v61 = vsel %vm7946_vm10, %v7945_v54, %v7715_v9 }
 0x436   : > { %8298 = vst.msk [vmem:[%s12915_s26 + $0x68] sm:$0xff] %vm1660_vm4, %v8266_v45 }
 0x438   : > { %v7751_v36 = vpop.permute.xlu1 %7750 }
 0x439   : > { %v8011_v52 = vsel %vm7979_vm2, %v7978_v61, %v7751_v36 }
 0x43a   : > { %8848 = vmatmul.mubr.msk.bf16.gmra.mxu1 %vm8055_vm5, %v8011_v52 }
 0x465   : > { %v8837_v53 = vpop.f32.mrf.mxu1 }
 0x466   : > { %v8199_v47 = vadd.f32 %v8837_v53, %v12903_v41 }
 0x467   : > { %v8190_v29 = vpop.f32.mrf.mxu1 }
 0x468   : > { %v8271_v59 = vadd.f32 %v8199_v47, %v12843_v30  ;;  %v8191_v32 = vadd.f32 %v12903_v41, %v8190_v29 }
 0x469   : > { %v8838_v37 = vpop.f32.mrf.mxu1 }
 0x46a   : > { %8303 = vst.msk [vmem:[%s12915_s26 + $0x90] sm:$0xff] %vm1660_vm4, %v8271_v59  ;;  %v8269_v31 = vadd.f32 %v8191_v32, %v12847_v23  ;;  %v8202_v38 = vadd.f32 %v8838_v37, %v12903_v41 }
 0x46b   : > { %v8193_v33 = vpop.f32.mrf.mxu1 }
 0x46c   : > { %8301 = vst.msk [vmem:[%s12915_s26 + $0x80] sm:$0xff] %vm1660_vm4, %v8269_v31  ;;  %v8272_v18 = vadd.f32 %v8202_v38, %v12852_v2  ;;  %v8194_v42 = vadd.f32 %v12903_v41, %v8193_v33 }
 0x46e   : > { %8304 = vst.msk [vmem:[%s12915_s26 + $0x98] sm:$0xff] %vm1660_vm4, %v8272_v18  ;;  %v8270_v30 = vadd.f32 %v8194_v42, %v12855_v10 }
 0x470   : > { %8302 = vst.msk [vmem:[%s12915_s26 + $0x88] sm:$0xff] %vm1660_vm4, %v8270_v30 }
 0x49a   : > { %v8841_v20 = vpop.f32.mrf.mxu1 }
 0x49b   : > { %v8215_v23 = vadd.f32 %v8841_v20, %v12903_v41 }
 0x49c   : > { %v8206_v60 = vpop.f32.mrf.mxu1 }
 0x49d   : > { %v8275_v40 = vadd.f32 %v8215_v23, %v12858_v5  ;;  %v8207_v15 = vadd.f32 %v12903_v41, %v8206_v60 }
 0x49e   : > { %v8842_v1 = vpop.f32.mrf.mxu1 }
 0x49f   : > { %8307 = vst.msk [vmem:[%s12915_s26 + $0xb0] sm:$0xff] %vm1660_vm4, %v8275_v40  ;;  %v8273_v2 = vadd.f32 %v8207_v15, %v12861_v28  ;;  %v8218_v46 = vadd.f32 %v8842_v1, %v12903_v41 }
 0x4a0   : > { %v8209_v10 = vpop.f32.mrf.mxu1 }
 0x4a1   : > { %8305 = vst.msk [vmem:[%s12915_s26 + $0xa0] sm:$0xff] %vm1660_vm4, %v8273_v2  ;;  %v8276_v0 = vadd.f32 %v8218_v46, %v12864_v4  ;;  %v8210_v8 = vadd.f32 %v12903_v41, %v8209_v10 }
 0x4a3   : > { %8308 = vst.msk [vmem:[%s12915_s26 + $0xb8] sm:$0xff] %vm1660_vm4, %v8276_v0  ;;  %v8274_v5 = vadd.f32 %v8210_v8, %v12867_v58 }
 0x4a5   : > { %8306 = vst.msk [vmem:[%s12915_s26 + $0xa8] sm:$0xff] %vm1660_vm4, %v8274_v5 }
 0x4d6   : > { %v8845_v11 = vpop.f32.mrf.mxu1 }
 0x4d7   : > { %v8231_v28 = vadd.f32 %v8845_v11, %v12903_v41 }
 0x4d8   : > { %v8222_v22 = vpop.f32.mrf.mxu1 }
 0x4d9   : > { %v8279_v25 = vadd.f32 %v8231_v28, %v12873_v27  ;;  %v8223_v6 = vadd.f32 %v12903_v41, %v8222_v22 }
 0x4da   : > { %v8846_v24 = vpop.f32.mrf.mxu1 }
 0x4db   : > { %8311 = vst.msk [vmem:[%s12915_s26 + $0xd0] sm:$0xff] %vm1660_vm4, %v8279_v25  ;;  %v8277_v4 = vadd.f32 %v8223_v6, %v12878_v44  ;;  %v8234_v35 = vadd.f32 %v8846_v24, %v12903_v41 }
 0x4dc   : > { %v8225_v58 = vpop.f32.mrf.mxu1 }
 0x4dd   : > { %8309 = vst.msk [vmem:[%s12915_s26 + $0xc0] sm:$0xff] %vm1660_vm4, %v8277_v4  ;;  %v8280_v7 = vadd.f32 %v8234_v35, %v12883_v34  ;;  %v8226_v13 = vadd.f32 %v12903_v41, %v8225_v58 }
 0x4df   : > { %8312 = vst.msk [vmem:[%s12915_s26 + $0xd8] sm:$0xff] %vm1660_vm4, %v8280_v7  ;;  %v8278_v27 = vadd.f32 %v8226_v13, %v12887_v14 }
 0x4e1   : > { %8310 = vst.msk [vmem:[%s12915_s26 + $0xc8] sm:$0xff] %vm1660_vm4, %v8278_v27 }
 0x4fa   : > { %v8849_v19 = vpop.f32.mrf.mxu1 }
 0x4fb   : > { %v8247_v44 = vadd.f32 %v8849_v19, %v12903_v41 }
 0x4fc   : > { %v8238_v63 = vpop.f32.mrf.mxu1 }
 0x4fd   : > { %v8283_v57 = vadd.f32 %v8247_v44, %v12892_v51  ;;  %v8239_v49 = vadd.f32 %v12903_v41, %v8238_v63 }
 0x4fe   : > { %v8850_v12 = vpop.f32.mrf.mxu1 }
 0x4ff   : > { %8315 = vst.msk [vmem:[%s12915_s26 + $0xf0] sm:$0xff] %vm1660_vm4, %v8283_v57  ;;  %v8281_v34 = vadd.f32 %v8239_v49, %v12895_v26  ;;  %v8250_v3 = vadd.f32 %v8850_v12, %v12903_v41 }
 0x500   : > { %v8241_v55 = vpop.f32.mrf.mxu1 }
 0x501   : > { %8313 = vst.msk [vmem:[%s12915_s26 + $0xe0] sm:$0xff] %vm1660_vm4, %v8281_v34  ;;  %v8284_v14 = vadd.f32 %v8250_v3, %v12898_v17  ;;  %v8242_v39 = vadd.f32 %v12903_v41, %v8241_v55 }
 0x503   : > { %8316 = vst.msk [vmem:[%s12915_s26 + $0xf8] sm:$0xff] %vm1660_vm4, %v8284_v14  ;;  %v8282_v51 = vadd.f32 %v8242_v39, %v12906_v62 }
 0x505   : > { %8314 = vst.msk [vmem:[%s12915_s26 + $0xe8] sm:$0xff] %vm1660_vm4, %v8282_v51 }
 0x506 PF: > { %s18_s29 = sadd.s32 1, %s9101_s29   ;;  %s13269_s27 = smov %s9097_s28 }
 0x507   : > { %p15_p5 = scmp.ge.s32.totalorder %s18_s29, 4   ;;  %s13270_s28 = smov %s13272_s30 }
 0x509   :  { %17 = sbr.rel (!%p15_p5) target bundleno = 2 (0x2), region = 85 }

</bundles_post_ra>
